<compile_context>
chip_gen: v5e
topology: v5e:2x2
jax: 0.10.0
libtpu: 0.0.40
codegen_flags: <defaults>
</compile_context>

<pallas_src>
import jax
import jax.numpy as jnp
from jax.experimental import pallas as pl
from jax.experimental.pallas import tpu as pltpu


def fused_cnn_kernel(x_ref, w1_ref, b1_ref, w2_ref, b2_ref, o_ref, ypad_ref):
    # x_ref   : (Bc, H, W, Kp)        bf16  im2col patches of the input (Kp = 9*Cin padded)
    # w1_ref  : (Kp, C1)              bf16
    # b1_ref  : (1, C1)               f32
    # w2_ref  : (3, 3*C1, C2)         bf16  dy-indexed, K = dx-merged (3*C1)
    # b2_ref  : (1, C2)               f32
    # o_ref   : (Bc, H//2, (W//2)*C2) f32   lane-dense pooled output
    # ypad_ref: (Bc, H+2, W, 3*C1)    bf16  VMEM scratch: dx-merged, zero-padded intermediate
    Bc, H, W, Kp = x_ref.shape
    C1 = w1_ref.shape[1]
    C2 = w2_ref.shape[2]
    Ho, Wo = H // 2, W // 2
    M = Bc * H * W

    # ---- conv11 + ReLU: ONE MXU matmul (im2col already done by XLA in the wrapper) ----
    acc1 = jnp.dot(x_ref[...].reshape(M, Kp), w1_ref[...],
                   preferred_element_type=jnp.float32)
    y = jnp.maximum(acc1 + b1_ref[...], 0.0).astype(jnp.bfloat16).reshape(Bc, H, W, C1)

    # ---- stage the conv2 input in VMEM, dx-merged along lanes: (Bc, H+2, W, 3*C1) ----
    # staged[b, r, w, dx*C1 + c] = y_pad[b, r, w + dx, c]   (y_pad = y with 1-wide zero halo)
    zero_col = jnp.zeros((Bc, H, 1, C1), jnp.bfloat16)
    y_left = jnp.concatenate([zero_col, y[:, :, :W - 1, :]], axis=2)    # dx = 0 tap
    y_right = jnp.concatenate([y[:, :, 1:, :], zero_col], axis=2)       # dx = 2 tap
    zero_row = jnp.zeros((Bc, 1, W, 3 * C1), jnp.bfloat16)
    ypad_ref[:, 0:1, :, :] = zero_row            # only the 2 H-halo rows are zeroed; re-done
    ypad_ref[:, H + 1:H + 2, :, :] = zero_row    # every step so the "parallel" grid stays safe
    ypad_ref[:, 1:H + 1, :, :] = jnp.concatenate([y_left, y, y_right], axis=-1)

    # ---- conv12: 3 MXU matmuls with K = 3*C1 (dy taps are free H-slices of the scratch) ----
    acc2 = jnp.zeros((M, C2), jnp.float32)
    for dy in range(3):
        patch = ypad_ref[:, dy:dy + H, :, :].reshape(M, 3 * C1)
        acc2 = acc2 + jnp.dot(patch, w2_ref[dy, :, :],
                              preferred_element_type=jnp.float32)

    # ---- MaxPool2d(2,2) BEFORE bias+ReLU (exact: max commutes with monotone bias+ReLU) ----
    ph = jnp.max(acc2.reshape(Bc * Ho, 2, W, C2), axis=1)       # pool H-pairs
    pw = jnp.max(ph.reshape(Bc * Ho, Wo, 2, C2), axis=2)        # pool W-pairs
    z = jnp.maximum(pw + b2_ref[...], 0.0)                      # bias + ReLU on 1/4 the rows
    o_ref[...] = z.reshape(Bc, Ho, Wo * C2)                     # lane-dense (512-lane) store


def _plan_batch(n, target=32):
    """Return (batch rows per grid step, padded batch size).

    Keeps >= 2 grid steps when possible (both v7x TensorCores get work) and pads awkward
    batch sizes minimally instead of degenerating to block=1 (no divisor cliff)."""
    steps = max(1, -(-n // target))        # ceil(n / target)
    if n >= 2:
        steps = max(steps, 2)
    block = -(-n // steps)                 # ceil(n / steps)
    return block, steps * block


@jax.jit
def bottom_model_forward(x_nchw, w1_oihw, b1, w2_oihw, b2):
    N, Cin, H, W = x_nchw.shape
    assert H % 2 == 0 and W % 2 == 0, "2x2 maxpool needs even spatial dims"
    C1, C2 = w1_oihw.shape[0], w2_oihw.shape[0]
    Ho, Wo = H // 2, W // 2
    Bc, Npad = _plan_batch(N, target=32)
    K = 9 * Cin
    Kp = -(-K // 32) * 32                  # pad conv1's K for clean alignment (27 -> 32)

    # ---- XLA prologue: NCHW -> NHWC bf16, pad=1, im2col (tap-major, channel-minor) ----
    x = jnp.transpose(x_nchw, (0, 2, 3, 1)).astype(jnp.bfloat16)
    xp = jnp.pad(x, ((0, 0), (1, 1), (1, 1), (0, 0)))
    patches = jnp.concatenate(
        [xp[:, dy:dy + H, dx:dx + W, :] for dy in range(3) for dx in range(3)], axis=-1)
    patches = jnp.pad(patches, ((0, Npad - N), (0, 0), (0, 0), (0, Kp - K)))

    # ---- kernel-ready weights: w1 -> (Kp, C1); w2 -> dx-merged (3, 3*C1, C2); bf16 ----
    w1_mat = jnp.transpose(w1_oihw, (2, 3, 1, 0)).reshape(K, C1)   # row = (dy*3+dx)*Cin + c
    w1_mat = jnp.pad(w1_mat, ((0, Kp - K), (0, 0))).astype(jnp.bfloat16)
    w2_mat = jnp.transpose(w2_oihw, (2, 3, 1, 0)).reshape(3, 3 * C1, C2).astype(jnp.bfloat16)
    b1r = b1.reshape(1, C1).astype(jnp.float32)
    b2r = b2.reshape(1, C2).astype(jnp.float32)

    out = pl.pallas_call(
        fused_cnn_kernel,
        out_shape=jax.ShapeDtypeStruct((Npad, Ho, Wo * C2), jnp.float32),
        grid=(Npad // Bc,),
        in_specs=[
            pl.BlockSpec((Bc, H, W, Kp), lambda n: (n, 0, 0, 0)),
            pl.BlockSpec((Kp, C1), lambda n: (0, 0)),
            pl.BlockSpec((1, C1), lambda n: (0, 0)),
            pl.BlockSpec((3, 3 * C1, C2), lambda n: (0, 0, 0)),
            pl.BlockSpec((1, C2), lambda n: (0, 0)),
        ],
        out_specs=pl.BlockSpec((Bc, Ho, Wo * C2), lambda n: (n, 0, 0)),
        scratch_shapes=[pltpu.VMEM((Bc, H + 2, W, 3 * C1), jnp.bfloat16)],
        compiler_params=pltpu.CompilerParams(
            dimension_semantics=("parallel",),
            # ~25-30 MB live at Bc=32: above every generation's scoped-VMEM default,
            # safely below v7x's 64 MiB physical VMEM per TensorCore.
            vmem_limit_bytes=48 * 1024 * 1024,
        ),
    )(patches, w1_mat, b1r, w2_mat, b2r)

    out = out[:N].reshape(N, Ho, Wo, C2)       # drop batch padding, un-pack lane-dense block
    return jnp.transpose(out, (0, 3, 1, 2))    # back to NCHW to match the PyTorch module


def init_params(key, cin=3, cmid=64, cout=64):
    k1, k2, k3, k4 = jax.random.split(key, 4)
    w1 = 0.1 * jax.random.normal(k1, (cmid, cin, 3, 3), jnp.float32)
    b1 = 0.1 * jax.random.normal(k2, (cmid,), jnp.float32)
    w2 = 0.1 * jax.random.normal(k3, (cout, cmid, 3, 3), jnp.float32)
    b2 = 0.1 * jax.random.normal(k4, (cout,), jnp.float32)
    # Round weights to the bf16 grid once so kernel (bf16 matmuls) and f32 reference see the
    # same operand values; the remaining diff is the bf16 intermediate activation.
    w1 = w1.astype(jnp.bfloat16).astype(jnp.float32)
    w2 = w2.astype(jnp.bfloat16).astype(jnp.float32)
    return w1, b1, w2, b2


def _reference_forward(x_nchw, w1_oihw, b1, w2_oihw, b2):
    dn = ("NCHW", "OIHW", "NCHW")
    y = jax.lax.conv_general_dilated(
        x_nchw, w1_oihw, (1, 1), ((1, 1), (1, 1)),
        dimension_numbers=jax.lax.conv_dimension_numbers(x_nchw.shape, w1_oihw.shape, dn))
    y = jax.nn.relu(y + b1.reshape(1, -1, 1, 1))
    z = jax.lax.conv_general_dilated(
        y, w2_oihw, (1, 1), ((1, 1), (1, 1)),
        dimension_numbers=jax.lax.conv_dimension_numbers(y.shape, w2_oihw.shape, dn))
    z = jax.nn.relu(z + b2.reshape(1, -1, 1, 1))
    return jax.lax.reduce_window(z, -jnp.inf, jax.lax.max,
                                 (1, 1, 2, 2), (1, 1, 2, 2), "VALID")


if __name__ == "__main__":
    key = jax.random.PRNGKey(0)
    kx, kp = jax.random.split(key)
    # CIFAR-like input at small shape: batch=2, channels=3, spatial 16x16 (NCHW).
    x = jax.random.normal(kx, (2, 3, 16, 16), jnp.float32)
    x = x.astype(jnp.bfloat16).astype(jnp.float32)   # round input once (shared by both paths)
    w1, b1, w2, b2 = init_params(kp)

    out = jax.block_until_ready(bottom_model_forward(x, w1, b1, w2, b2))
    assert out.shape == (2, 64, 8, 8), out.shape

    ref = jax.block_until_ready(_reference_forward(x, w1, b1, w2, b2))
    max_err = float(jnp.max(jnp.abs(out - ref)))
    assert jnp.allclose(out, ref, rtol=3e-2, atol=3e-2), max_err

    print("KERNEL_OK")
</pallas_src>

<mosaic_0001>
module attributes {stable_mosaic.version = 11 : i64} {
  func.func @fused_cnn_kernel(%arg0: i32, %arg1: memref<1x16x16x32xbf16, #tpu.memory_space<vmem>>, %arg2: memref<32x64xbf16, #tpu.memory_space<vmem>>, %arg3: memref<1x64xf32, #tpu.memory_space<vmem>>, %arg4: memref<3x192x64xbf16, #tpu.memory_space<vmem>>, %arg5: memref<1x64xf32, #tpu.memory_space<vmem>>, %arg6: memref<1x8x512xf32, #tpu.memory_space<vmem>>, %arg7: memref<1x18x16x192xbf16, #tpu.memory_space<vmem>>) attributes {dimension_semantics = [#tpu.dimension_semantics<parallel>], iteration_bounds = array<i64: 2>, scalar_prefetch = 0 : i64, scratch_operands = 1 : i64, tpu.core_type = #tpu.core_type<tc>, window_params = [{transform_indices = @transform_0, window_bounds = array<i64: 1, 16, 16, 32>}, {pipeline_mode = #tpu.pipeline_mode<synchronous>, transform_indices = @transform_1, window_bounds = array<i64: 32, 64>}, {pipeline_mode = #tpu.pipeline_mode<synchronous>, transform_indices = @transform_2, window_bounds = array<i64: 1, 64>}, {pipeline_mode = #tpu.pipeline_mode<synchronous>, transform_indices = @transform_3, window_bounds = array<i64: 3, 192, 64>}, {pipeline_mode = #tpu.pipeline_mode<synchronous>, transform_indices = @transform_4, window_bounds = array<i64: 1, 64>}, {transform_indices = @transform_5, window_bounds = array<i64: 1, 8, 512>}]} {
    %c0 = arith.constant 0 : index
    %c0_0 = arith.constant 0 : index
    %c0_1 = arith.constant 0 : index
    %c0_2 = arith.constant 0 : index
    %0 = vector.load %arg1[%c0, %c0_0, %c0_1, %c0_2] : memref<1x16x16x32xbf16, #tpu.memory_space<vmem>>, vector<1x16x16x32xbf16>
    %1 = vector.shape_cast %0 : vector<1x16x16x32xbf16> to vector<256x32xbf16>
    %c0_3 = arith.constant 0 : index
    %c0_4 = arith.constant 0 : index
    %2 = vector.load %arg2[%c0_3, %c0_4] : memref<32x64xbf16, #tpu.memory_space<vmem>>, vector<32x64xbf16>
    %cst = arith.constant dense<0.000000e+00> : vector<256x64xf32>
    %3 = tpu.matmul %1, %2, %cst {dimension_numbers = #tpu.dot_dimension_numbers<[1], [0], [0], [1], [0, 0, 1, 1], [], []>} : vector<256x32xbf16>, vector<32x64xbf16>, vector<256x64xf32> -> vector<256x64xf32>
    %c0_5 = arith.constant 0 : index
    %c0_6 = arith.constant 0 : index
    %4 = vector.load %arg3[%c0_5, %c0_6] : memref<1x64xf32, #tpu.memory_space<vmem>>, vector<1x64xf32>
    %5 = vector.broadcast %4 : vector<1x64xf32> to vector<256x64xf32>
    %6 = arith.addf %3, %5 : vector<256x64xf32>
    %cst_7 = arith.constant 0.000000e+00 : f32
    %7 = vector.broadcast %cst_7 : f32 to vector<256x64xf32>
    %8 = arith.maximumf %6, %7 : vector<256x64xf32>
    %9 = arith.truncf %8 : vector<256x64xf32> to vector<256x64xbf16>
    %10 = vector.shape_cast %9 : vector<256x64xbf16> to vector<1x16x16x64xbf16>
    %cst_8 = arith.constant 0.000000e+00 : bf16
    %11 = vector.broadcast %cst_8 : bf16 to vector<1x16x1x64xbf16>
    %12 = vector.extract_strided_slice %10 {offsets = [0, 0, 0, 0], sizes = [1, 16, 15, 64], strides = [1, 1, 1, 1]} : vector<1x16x16x64xbf16> to vector<1x16x15x64xbf16>
    %13 = tpu.concatenate %11, %12 in 2 : vector<1x16x1x64xbf16>, vector<1x16x15x64xbf16> -> vector<1x16x16x64xbf16>
    %14 = vector.extract_strided_slice %10 {offsets = [0, 0, 1, 0], sizes = [1, 16, 15, 64], strides = [1, 1, 1, 1]} : vector<1x16x16x64xbf16> to vector<1x16x15x64xbf16>
    %15 = tpu.concatenate %14, %11 in 2 : vector<1x16x15x64xbf16>, vector<1x16x1x64xbf16> -> vector<1x16x16x64xbf16>
    %cst_9 = arith.constant 0.000000e+00 : bf16
    %16 = vector.broadcast %cst_9 : bf16 to vector<1x1x16x192xbf16>
    %c0_10 = arith.constant 0 : index
    %c0_11 = arith.constant 0 : index
    %c0_12 = arith.constant 0 : index
    %c0_13 = arith.constant 0 : index
    %17 = vector.load %arg7[%c0_10, %c0_11, %c0_12, %c0_13] : memref<1x18x16x192xbf16, #tpu.memory_space<vmem>>, vector<1x1x16x192xbf16>
    tpu.vector_store %arg7[%c0_10, %c0_11, %c0_12, %c0_13], %16 {strides = array<i32>} : memref<1x18x16x192xbf16, #tpu.memory_space<vmem>>, vector<1x1x16x192xbf16>,
    %c0_14 = arith.constant 0 : index
    %c17 = arith.constant 17 : index
    %c0_15 = arith.constant 0 : index
    %c0_16 = arith.constant 0 : index
    %18 = vector.load %arg7[%c0_14, %c17, %c0_15, %c0_16] : memref<1x18x16x192xbf16, #tpu.memory_space<vmem>>, vector<1x1x16x192xbf16>
    tpu.vector_store %arg7[%c0_14, %c17, %c0_15, %c0_16], %16 {strides = array<i32>} : memref<1x18x16x192xbf16, #tpu.memory_space<vmem>>, vector<1x1x16x192xbf16>,
    %19 = tpu.concatenate %13, %10, %15 in 3 : vector<1x16x16x64xbf16>, vector<1x16x16x64xbf16>, vector<1x16x16x64xbf16> -> vector<1x16x16x192xbf16>
    %c0_17 = arith.constant 0 : index
    %c1 = arith.constant 1 : index
    %c0_18 = arith.constant 0 : index
    %c0_19 = arith.constant 0 : index
    %20 = vector.load %arg7[%c0_17, %c1, %c0_18, %c0_19] : memref<1x18x16x192xbf16, #tpu.memory_space<vmem>>, vector<1x16x16x192xbf16>
    tpu.vector_store %arg7[%c0_17, %c1, %c0_18, %c0_19], %19 {strides = array<i32>} : memref<1x18x16x192xbf16, #tpu.memory_space<vmem>>, vector<1x16x16x192xbf16>,
    %cst_20 = arith.constant 0.000000e+00 : f32
    %21 = vector.broadcast %cst_20 : f32 to vector<256x64xf32>
    %c0_21 = arith.constant 0 : index
    %c0_22 = arith.constant 0 : index
    %c0_23 = arith.constant 0 : index
    %c0_24 = arith.constant 0 : index
    %22 = vector.load %arg7[%c0_21, %c0_22, %c0_23, %c0_24] : memref<1x18x16x192xbf16, #tpu.memory_space<vmem>>, vector<1x16x16x192xbf16>
    %23 = vector.shape_cast %22 : vector<1x16x16x192xbf16> to vector<256x192xbf16>
    %c0_25 = arith.constant 0 : index
    %c0_26 = arith.constant 0 : index
    %c0_27 = arith.constant 0 : index
    %24 = vector.load %arg4[%c0_25, %c0_26, %c0_27] : memref<3x192x64xbf16, #tpu.memory_space<vmem>>, vector<1x192x64xbf16>
    %25 = vector.shape_cast %24 : vector<1x192x64xbf16> to vector<192x64xbf16>
    %cst_28 = arith.constant dense<0.000000e+00> : vector<256x64xf32>
    %26 = tpu.matmul %23, %25, %cst_28 {dimension_numbers = #tpu.dot_dimension_numbers<[1], [0], [0], [1], [0, 0, 1, 1], [], []>} : vector<256x192xbf16>, vector<192x64xbf16>, vector<256x64xf32> -> vector<256x64xf32>
    %27 = arith.addf %21, %26 : vector<256x64xf32>
    %c0_29 = arith.constant 0 : index
    %c1_30 = arith.constant 1 : index
    %c0_31 = arith.constant 0 : index
    %c0_32 = arith.constant 0 : index
    %28 = vector.load %arg7[%c0_29, %c1_30, %c0_31, %c0_32] : memref<1x18x16x192xbf16, #tpu.memory_space<vmem>>, vector<1x16x16x192xbf16>
    %29 = vector.shape_cast %28 : vector<1x16x16x192xbf16> to vector<256x192xbf16>
    %c1_33 = arith.constant 1 : index
    %c0_34 = arith.constant 0 : index
    %c0_35 = arith.constant 0 : index
    %30 = vector.load %arg4[%c1_33, %c0_34, %c0_35] : memref<3x192x64xbf16, #tpu.memory_space<vmem>>, vector<1x192x64xbf16>
    %31 = vector.shape_cast %30 : vector<1x192x64xbf16> to vector<192x64xbf16>
    %cst_36 = arith.constant dense<0.000000e+00> : vector<256x64xf32>
    %32 = tpu.matmul %29, %31, %cst_36 {dimension_numbers = #tpu.dot_dimension_numbers<[1], [0], [0], [1], [0, 0, 1, 1], [], []>} : vector<256x192xbf16>, vector<192x64xbf16>, vector<256x64xf32> -> vector<256x64xf32>
    %33 = arith.addf %27, %32 : vector<256x64xf32>
    %c0_37 = arith.constant 0 : index
    %c2 = arith.constant 2 : index
    %c0_38 = arith.constant 0 : index
    %c0_39 = arith.constant 0 : index
    %34 = vector.load %arg7[%c0_37, %c2, %c0_38, %c0_39] : memref<1x18x16x192xbf16, #tpu.memory_space<vmem>>, vector<1x16x16x192xbf16>
    %35 = vector.shape_cast %34 : vector<1x16x16x192xbf16> to vector<256x192xbf16>
    %c2_40 = arith.constant 2 : index
    %c0_41 = arith.constant 0 : index
    %c0_42 = arith.constant 0 : index
    %36 = vector.load %arg4[%c2_40, %c0_41, %c0_42] : memref<3x192x64xbf16, #tpu.memory_space<vmem>>, vector<1x192x64xbf16>
    %37 = vector.shape_cast %36 : vector<1x192x64xbf16> to vector<192x64xbf16>
    %cst_43 = arith.constant dense<0.000000e+00> : vector<256x64xf32>
    %38 = tpu.matmul %35, %37, %cst_43 {dimension_numbers = #tpu.dot_dimension_numbers<[1], [0], [0], [1], [0, 0, 1, 1], [], []>} : vector<256x192xbf16>, vector<192x64xbf16>, vector<256x64xf32> -> vector<256x64xf32>
    %39 = arith.addf %33, %38 : vector<256x64xf32>
    %40 = vector.shape_cast %39 : vector<256x64xf32> to vector<8x2x16x64xf32>
    %cst_44 = arith.constant dense<0xFF800000> : vector<8x16x64xf32>
    %41 = vector.multi_reduction <maximumf>, %40, %cst_44 [1] : vector<8x2x16x64xf32> to vector<8x16x64xf32>
    %42 = vector.shape_cast %41 : vector<8x16x64xf32> to vector<8x8x2x64xf32>
    %cst_45 = arith.constant dense<0xFF800000> : vector<8x8x64xf32>
    %43 = vector.multi_reduction <maximumf>, %42, %cst_45 [2] : vector<8x8x2x64xf32> to vector<8x8x64xf32>
    %c0_46 = arith.constant 0 : index
    %c0_47 = arith.constant 0 : index
    %44 = vector.load %arg5[%c0_46, %c0_47] : memref<1x64xf32, #tpu.memory_space<vmem>>, vector<1x64xf32>
    %45 = vector.shape_cast %44 : vector<1x64xf32> to vector<1x1x64xf32>
    %46 = vector.broadcast %45 : vector<1x1x64xf32> to vector<8x8x64xf32>
    %47 = arith.addf %43, %46 : vector<8x8x64xf32>
    %cst_48 = arith.constant 0.000000e+00 : f32
    %48 = vector.broadcast %cst_48 : f32 to vector<8x8x64xf32>
    %49 = arith.maximumf %47, %48 : vector<8x8x64xf32>
    %50 = vector.shape_cast %49 : vector<8x8x64xf32> to vector<1x8x512xf32>
    %c0_49 = arith.constant 0 : index
    %c0_50 = arith.constant 0 : index
    %c0_51 = arith.constant 0 : index
    %51 = vector.load %arg6[%c0_49, %c0_50, %c0_51] : memref<1x8x512xf32, #tpu.memory_space<vmem>>, vector<1x8x512xf32>
    tpu.vector_store %arg6[%c0_49, %c0_50, %c0_51], %50 {strides = array<i32>} : memref<1x8x512xf32, #tpu.memory_space<vmem>>, vector<1x8x512xf32>,
    return
  }
  func.func @transform_0(%arg0: i32) -> (i32, i32, i32, i32) {
    %c0_i32 = arith.constant 0 : i32
    %c0_i32_0 = arith.constant 0 : i32
    %c0_i32_1 = arith.constant 0 : i32
    %c0_i32_2 = arith.constant 0 : i32
    return %arg0, %c0_i32, %c0_i32_0, %c0_i32_1 : i32, i32, i32, i32
  }
  func.func @transform_1(%arg0: i32) -> (i32, i32) {
    %c0_i32 = arith.constant 0 : i32
    %c0_i32_0 = arith.constant 0 : i32
    %c0_i32_1 = arith.constant 0 : i32
    return %c0_i32, %c0_i32_0 : i32, i32
  }
  func.func @transform_2(%arg0: i32) -> (i32, i32) {
    %c0_i32 = arith.constant 0 : i32
    %c0_i32_0 = arith.constant 0 : i32
    %c0_i32_1 = arith.constant 0 : i32
    return %c0_i32, %c0_i32_0 : i32, i32
  }
  func.func @transform_3(%arg0: i32) -> (i32, i32, i32) {
    %c0_i32 = arith.constant 0 : i32
    %c0_i32_0 = arith.constant 0 : i32
    %c0_i32_1 = arith.constant 0 : i32
    %c0_i32_2 = arith.constant 0 : i32
    return %c0_i32, %c0_i32_0, %c0_i32_1 : i32, i32, i32
  }
  func.func @transform_4(%arg0: i32) -> (i32, i32) {
    %c0_i32 = arith.constant 0 : i32
    %c0_i32_0 = arith.constant 0 : i32
    %c0_i32_1 = arith.constant 0 : i32
    return %c0_i32, %c0_i32_0 : i32, i32
  }
  func.func @transform_5(%arg0: i32) -> (i32, i32, i32) {
    %c0_i32 = arith.constant 0 : i32
    %c0_i32_0 = arith.constant 0 : i32
    %c0_i32_1 = arith.constant 0 : i32
    return %arg0, %c0_i32, %c0_i32_0 : i32, i32, i32
  }
}

</mosaic_0001>

<bundles_post_ra>
// kernel: bottom_model_forward.1
= control target key start
LH: loop header
LB: loop body
LE: loop exit
PB: predicated region body
PF: predicated region fallthrough
CT: control target
= control target key end

     0   :  { %s4743_s18 = smov 0   ;;  %s5993_s0 = inlined_call_operand.vmem [shape: bf16[2,16,16,32], index: 0, kind: input, shape index: {}]   ;;  %s5994_s1 = inlined_call_operand.vmem [shape: bf16[32,64], index: 1, kind: input, shape index: {}]   ;;  %s5995_s2 = inlined_call_operand.vmem [shape: f32[1,64], index: 2, kind: input, shape index: {}]   ;;  %s5996_s3 = inlined_call_operand.vmem [shape: bf16[3,192,64], index: 3, kind: input, shape index: {}]   ;;  %s5997_s4 = inlined_call_operand.vmem [shape: f32[1,64], index: 4, kind: input, shape index: {}]   ;;  %s5998_s5 = inlined_call_operand.vmem [shape: f32[2,8,512], index: 5, kind: output, shape index: {}]  }
   0x1 LB: > { %s3789_s19 = sadd.s32 4294967295, %s4707_s18   ;;  %p3793_p0 = scmp.ge.s32.totalorder %s4707_s18, 1  ;;  %s4707_s18 = sphi %s4743_s18, %s15_s18  }
   0x2   : > { %p187_p1 = scmp.lt.s32.totalorder %s4707_s18, 3 }
   0x4   : > { %p188_p2 = pnand %p3793_p0, %p187_p1 }
   0x6   : > { %191 = sbr.rel (%p188_p2) target bundleno = 1165 (0x48d), region = 40 }
   0xb   : > { %v4531_v0 = vld [vmem:[%s5994_s1 + $0x8] sm:$0xff]  ;;  %p215_p3 = scmp.lt.s32.totalorder %s3789_s19, 1  ;;  %v4530_v1 = vld [vmem:[%s5994_s1] sm:$0xff]  ;;  %vm358_vm0 = vcmask 261120   ;;  %s4709_s30 = smov 64   ;;  %vm854_vm1 = vcmask 1043456  }
   0xc   : > { %413 = vmatpush.bf16.msra.mxu0 %v4531_v0  ;;  %4664 = vmatpush.bf16.msra.mxu3 %v4531_v0  ;;  %v4788_v12 = vld [vmem:[%s5995_s2] ss:$0 sm:$0xff]  ;;  %vm855_vm2 = vcmask 523268   ;;  %vm894_vm4 = vcmask 523264   ;;  %vm835_vm5 = vcmask 1047552   ;;  %vm768_vm7 = vcmask 1040384  }
   0xd   : > { %s6045_s19 = smov (!%p215_p3, %s3789_s19), 1  ;;  %vm4850_vm3 = vmor %vm855_vm2, %vm854_vm1  ;;  %vm836_vm6 = vsmask.f32 7424  ;;  %vm769_vm8 = vsmask.f32 256  ;;  %vm2825_vm11 = vcmask 517120  }
   0xe   : > { %s4512_s24 = sshll.u32 %s6045_s19, 7  ;;  %vm4917_vm9 = vmand %vm835_vm5, %vm836_vm6  ;;  %vm3471_vm12 = vcmask 1041409   ;;  %vm3474_vm13 = vcmask 1042434   ;;  %vm3477_vm14 = vcmask 1043459   ;;  %vm3480_vm15 = vcmask 1044484   ;;  %s4513_s16 = sshll.u32 %s6045_s19, 5 }
   0xf   : > { %s4763_s27 = scalar_lea.vmem %s5993_s0, %s4512_s24  ;;  %vm4921_vm10 = vmand %vm768_vm7, %vm769_vm8  ;;  %vm3486_vm1 = vcmask 1046534   ;;  %vm3489_vm2 = vcmask 1047559   ;;  %s224_s21 = scalar_lea.vmem %s5998_s5, %s4513_s16 }
  0x10   : > { %414 = vmatpush.bf16.msra.mxu0 %v4530_v1  ;;  %v4514_v2 = vld [vmem:[%s4763_s27] sm:$0xff]  ;;  %4665 = vmatpush.bf16.msra.mxu3 %v4530_v1  ;;  %v4515_v3 = vld [vmem:[%s4763_s27 + $0x8] sm:$0xff]  ;;  %v4516_v4 = vld [vmem:[%s4763_s27 + $0x10] sm:$0xff] }
  0x11   : > { %v4517_v5 = vld [vmem:[%s4763_s27 + $0x18] sm:$0xff]  ;;  %v4527_v6 = vld [vmem:[%s4763_s27 + $0x68] sm:$0xff]  ;;  %v4518_v7 = vld [vmem:[%s4763_s27 + $0x20] sm:$0xff] }
  0x12   : > { %v4528_v8 = vld [vmem:[%s4763_s27 + $0x70] sm:$0xff]  ;;  %v4519_v9 = vld [vmem:[%s4763_s27 + $0x28] sm:$0xff]  ;;  %v4521_v11 = vld [vmem:[%s4763_s27 + $0x38] sm:$0xff] }
  0x13   : > { %3870 = vmatmul.msk.bf16.vlgmr.msra.gmra.mxu0 %vm358_vm0, %v4514_v2  ;;  %3883 = vmatmul.msk.bf16.vlgmr.msra.gmra.mxu3 %vm358_vm0, %v4527_v6  ;;  %v4520_v10 = vld [vmem:[%s4763_s27 + $0x30] sm:$0xff]  ;;  %v4522_v13 = vld [vmem:[%s4763_s27 + $0x40] sm:$0xff]  ;;  %v4523_v24 = vld [vmem:[%s4763_s27 + $0x48] sm:$0xff] }
  0x14   : > { %v4524_v36 = vld [vmem:[%s4763_s27 + $0x50] sm:$0xff]  ;;  %v4529_v45 = vld [vmem:[%s4763_s27 + $0x78] sm:$0xff]  ;;  %v4526_v62 = vld [vmem:[%s4763_s27 + $0x60] sm:$0xff] }
  0x15   : > { %v4525_v49 = vld [vmem:[%s4763_s27 + $0x58] sm:$0xff] }
  0x23   : > { %3871 = vmatmul.msk.bf16.gmra.mxu0 %vm358_vm0, %v4515_v3  ;;  %3884 = vmatmul.msk.bf16.gmra.mxu3 %vm358_vm0, %v4528_v8  ;;  %v4575_v8 = vld [vmem:[%s5996_s3 + $0x58] sm:$0xff] }
  0x24   : > { %2048 = vmatpush.bf16.msrb.mxu0 %v4575_v8 }
  0x33   : > { %3872 = vmatmul.msk.bf16.gmra.mxu0 %vm358_vm0, %v4516_v4  ;;  %3885 = vmatmul.msk.bf16.gmra.mxu3 %vm358_vm0, %v4529_v45  ;;  %v4610_v45 = vld [vmem:[%s5996_s3 + $0x70] sm:$0xff] }
  0x43   : > { %3873 = vmatmul.msk.bf16.gmra.mxu0 %vm358_vm0, %v4517_v5 }
  0x53   : > { %3874 = vmatmul.msk.bf16.gmra.mxu0 %vm358_vm0, %v4518_v7  ;;  %v4615_v7 = vld [vmem:[%s5996_s3 + $0x98] sm:$0xff] }
  0x54   : > { %1513 = vmatpush.bf16.msra.mxu1 %v4615_v7  ;;  %4666 = vmatpush.bf16.msrb.mxu3 %v4615_v7 }
  0x63   : > { %3875 = vmatmul.msk.bf16.gmra.mxu0 %vm358_vm0, %v4519_v9 }
  0x73   : > { %3876 = vmatmul.msk.bf16.gmra.mxu0 %vm358_vm0, %v4520_v10 }
  0x83   : > { %3877 = vmatmul.msk.bf16.gmra.mxu0 %vm358_vm0, %v4521_v11 }
  0x90   : > { %v416_v14 = vpop.f32.mrf.mxu0 }
  0x91   : > { %v417_v15 = vadd.f32 %v4788_v12, %v416_v14  ;;  %v4614_v14 = vld [vmem:[%s5996_s3 + $0x90] sm:$0xff] }
  0x92   : > { %1514 = vmatpush.bf16.msra.mxu1 %v4614_v14  ;;  %4667 = vmatpush.bf16.msrb.mxu3 %v4614_v14 }
  0x93   : > { %3878 = vmatmul.msk.bf16.gmra.mxu0 %vm358_vm0, %v4522_v13  ;;  %v496_v16 = vmax.f32 %v417_v15, 0.0  ;;  %v4574_v15 = vld [vmem:[%s5996_s3 + $0x50] sm:$0xff] }
  0x94   : > { %2049 = vmatpush.bf16.msrb.mxu0 %v4574_v15 }
  0x95   : > { %v528_v19 = vpack.c.bf16 %v496_v16, %v496_v16 }
  0x96   : > { %v4820_v56 = vpop.f32.mrf.mxu3 }
  0x97   : > { %v592_v22 = vunpack.c.l.b16 %v528_v19 }
  0x98   : > { %v418_v17 = vpop.f32.mrf.mxu0 }
  0x99   : > { %v419_v18 = vadd.f32 %v4788_v12, %v418_v17 }
  0x9b   : > { %v497_v20 = vmax.f32 %v419_v18, 0.0 }
  0x9d   : > { %v529_v21 = vpack.c.bf16 %v497_v20, %v497_v20 }
  0x9e   : > { %v4827_v1 = vpop.f32.mrf.mxu3 }
  0x9f   : > { %v593_v23 = vunpack.c.l.b16 %v529_v21 }
  0xa0   : > { %v421_v25 = vpop.f32.mrf.mxu0 }
  0xa1   : > { %v4795_v26 = vpack.c.b16 %v593_v23, %v592_v22  ;;  %v422_v27 = vadd.f32 %v4788_v12, %v421_v25  ;;  %v4710_v22 = vmov 0   ;;  %v4613_v23 = vld [vmem:[%s5996_s3 + $0x88] sm:$0xff] }
  0xa2   : > { %857 = vst.msk [vmem:[#allocation2] sm:$0xff] %vm4850_vm3, %v4710_v22  ;;  %1515 = vmatpush.bf16.msra.mxu1 %v4613_v23  ;;  %4668 = vmatpush.bf16.msrb.mxu3 %v4613_v23 }
  0xa3   : > { %3879 = vmatmul.msk.bf16.gmra.mxu0 %vm358_vm0, %v4523_v24  ;;  %862 = vrot.lane.b32.xlu0 %v4795_v26, %s4709_s30  ;;  %v498_v28 = vmax.f32 %v422_v27, 0.0  ;;  %v4573_v24 = vld [vmem:[%s5996_s3 + $0x48] sm:$0xff]  ;;  %858 = vst.msk [vmem:[#allocation2 + $0x8] sm:$0xff] %vm4850_vm3, %v4710_v22 }
  0xa4   : > { %860 = vst.msk [vmem:[#allocation2 + $0x110] sm:$0xff] %vm4850_vm3, %v4710_v22  ;;  %2050 = vmatpush.bf16.msrb.mxu0 %v4573_v24 }
  0xa5   : > { %v530_v31 = vpack.c.bf16 %v498_v28, %v498_v28  ;;  %861 = vst.msk [vmem:[#allocation2 + $0x118] sm:$0xff] %vm4850_vm3, %v4710_v22 }
  0xa6   : > { %v486_v3 = vpop.f32.mrf.mxu3 }
  0xa7   : > { %v594_v34 = vunpack.c.l.b16 %v530_v31  ;;  %v487_v10 = vadd.f32 %v4788_v12, %v486_v3  ;;  %v4661_v3 = vld [vmem:[%s5996_s3 + $0x108] sm:$0xff] }
  0xa8   : > { %v423_v29 = vpop.f32.mrf.mxu0 }
  0xa9   : > { %v424_v30 = vadd.f32 %v4788_v12, %v423_v29  ;;  %v524_v20 = vmax.f32 %v487_v10, 0.0 }
  0xab   : > { %v499_v32 = vmax.f32 %v424_v30, 0.0  ;;  %v556_v29 = vpack.c.bf16 %v524_v20, %v524_v20 }
  0xad   : > { %v531_v33 = vpack.c.bf16 %v499_v32, %v499_v32  ;;  %v4612_v32 = vld [vmem:[%s5996_s3 + $0x80] sm:$0xff] }
  0xae   : > { %v488_v6 = vpop.f32.mrf.mxu3  ;;  %1516 = vmatpush.bf16.msra.mxu1 %v4612_v32  ;;  %4669 = vmatpush.bf16.msrb.mxu3 %v4612_v32 }
  0xaf   : > { %v595_v35 = vunpack.c.l.b16 %v531_v33  ;;  %v489_v11 = vadd.f32 %v4788_v12, %v488_v6  ;;  %v4572_v33 = vld [vmem:[%s5996_s3 + $0x40] sm:$0xff] }
  0xb0   : > { %v426_v37 = vpop.f32.mrf.mxu0  ;;  %2051 = vmatpush.bf16.msrb.mxu0 %v4572_v33 }
  0xb1   : > { %v4803_v38 = vpack.c.b16 %v595_v35, %v594_v34  ;;  %v427_v39 = vadd.f32 %v4788_v12, %v426_v37  ;;  %v525_v21 = vmax.f32 %v489_v11, 0.0  ;;  %v4532_v35 = vld [vmem:[#allocation2 + $0x4] sm:$0xf] }
  0xb3   : > { %3880 = vmatmul.msk.bf16.gmra.mxu0 %vm358_vm0, %v4524_v36  ;;  %864 = vrot.lane.b32.xlu0 %v4803_v38, %s4709_s30  ;;  %v500_v40 = vmax.f32 %v427_v39, 0.0  ;;  %v557_v30 = vpack.c.bf16 %v525_v21, %v525_v21  ;;  %v620_v36 = vunpack.c.l.b16 %v556_v29  ;;  %v4106_v39 = vld [vmem:[#allocation2 + $0x8] sm:$0xf0]  ;;  %v651_v14 = vshll.u32 %v4803_v38, 16 }
  0xb5   : > { %v532_v43 = vpack.c.bf16 %v500_v40, %v500_v40  ;;  %v621_v37 = vunpack.c.l.b16 %v557_v30  ;;  %v4109_v40 = vor.u32 %v4532_v35, %v4106_v39  ;;  %v789_v23 = vrot.slane %v651_v14, 1 }
  0xb7   : > { %v596_v47 = vunpack.c.l.b16 %v532_v43  ;;  %v4887_v43 = vpack.c.b16 %v621_v37, %v620_v36 }
  0xb8   : > { %v428_v41 = vpop.f32.mrf.mxu0 }
  0xb9   : > { %v429_v42 = vadd.f32 %v4788_v12, %v428_v41  ;;  %v4611_v41 = vld [vmem:[%s5996_s3 + $0x78] sm:$0xff] }
  0xba   : > { %1517 = vmatpush.bf16.msra.mxu1 %v4611_v41  ;;  %4670 = vmatpush.bf16.msrb.mxu3 %v4611_v41 }
  0xbb   : > { %v501_v44 = vmax.f32 %v429_v42, 0.0  ;;  %v4619_v42 = vld [vmem:[%s5996_s3 + $0xb8] sm:$0xff] }
  0xbc   : > { %1606 = vmatpush.bf16.msra.mxu2 %v4619_v42 }
  0xbd   : > { %v533_v46 = vpack.c.bf16 %v501_v44, %v501_v44 }
  0xbe   : > { %1518 = vmatpush.bf16.msra.mxu1 %v4610_v45  ;;  %4671 = vmatpush.bf16.msrb.mxu3 %v4610_v45 }
  0xbf   : > { %v597_v48 = vunpack.c.l.b16 %v533_v46  ;;  %v4618_v46 = vld [vmem:[%s5996_s3 + $0xb0] sm:$0xff] }
  0xc0   : > { %v431_v50 = vpop.f32.mrf.mxu0  ;;  %1607 = vmatpush.bf16.msra.mxu2 %v4618_v46 }
  0xc1   : > { %v4813_v51 = vpack.c.b16 %v597_v48, %v596_v47  ;;  %v432_v52 = vadd.f32 %v4788_v12, %v431_v50  ;;  %v4609_v47 = vld [vmem:[%s5996_s3 + $0x68] sm:$0xff]  ;;  %v4608_v50 = vld [vmem:[%s5996_s3 + $0x60] sm:$0xff] }
  0xc2   : > { %v4617_v48 = vld [vmem:[%s5996_s3 + $0xa8] sm:$0xff]  ;;  %1519 = vmatpush.bf16.msra.mxu1 %v4609_v47  ;;  %4672 = vmatpush.bf16.msrb.mxu3 %v4609_v47 }
  0xc3   : > { %3881 = vmatmul.msk.bf16.gmra.mxu0 %vm358_vm0, %v4525_v49  ;;  %866 = vrot.lane.b32.xlu1 %v4813_v51, %s4709_s30  ;;  %v502_v53 = vmax.f32 %v432_v52, 0.0  ;;  %v4616_v52 = vld [vmem:[%s5996_s3 + $0xa0] sm:$0xff] }
  0xc4   : > { %1608 = vmatpush.bf16.msra.mxu2 %v4617_v48 }
  0xc5   : > { %v534_v57 = vpack.c.bf16 %v502_v53, %v502_v53  ;;  %v644_v53 = vshll.u32 %v4795_v26, 16 }
  0xc6   : > { %1520 = vmatpush.bf16.msra.mxu1 %v4608_v50  ;;  %4673 = vmatpush.bf16.msrb.mxu3 %v4608_v50 }
  0xc7   : > { %v598_v60 = vunpack.c.l.b16 %v534_v57  ;;  %v787_v57 = vrot.slane %v644_v53, 1 }
  0xc8   : > { %v433_v54 = vpop.f32.mrf.mxu0  ;;  %1609 = vmatpush.bf16.msra.mxu2 %v4616_v52 }
  0xc9   : > { %v434_v55 = vadd.f32 %v4788_v12, %v433_v54 }
  0xca   : > { %4674 = vmatpush.bf16.msra.mxu3 %v4619_v42 }
  0xcb   : > { %v503_v58 = vmax.f32 %v434_v55, 0.0  ;;  %v641_v55 = vshrl.u32 %v4795_v26, 16 }
  0xcd   : > { %v535_v59 = vpack.c.bf16 %v503_v58, %v503_v58  ;;  %v643_v58 = vrot.slane %v641_v55, 7 }
  0xce   : > { %4675 = vmatpush.bf16.msra.mxu3 %v4618_v46 }
  0xcf   : > { %v599_v61 = vunpack.c.l.b16 %v535_v59  ;;  %v788_v59 = vor.u32 %v787_v57, %v641_v55 }
  0xd0   : > { %v4823_v63 = vpop.f32.mrf.mxu0 }
  0xd1   : > { %v4825_v0 = vpack.c.b16 %v599_v61, %v598_v60  ;;  %v5242_v61 = vld [vmem:[%s5996_s3 + $0xd8] sm:$0xff] }
  0xd2   : > { %4676 = vmatpush.bf16.msra.mxu3 %v4617_v48 }
  0xd3   : > { %3882 = vmatmul.msk.bf16.gmra.mxu0 %vm358_vm0, %v4526_v62  ;;  %868 = vrot.lane.b32.xlu1 %v4825_v0, %s4709_s30  ;;  %v646_v62 = vor.u32 %v644_v53, %v643_v58  ;;  %v658_v58 = vshll.u32 %v4813_v51, 16  ;;  %vm3483_vm0 = vcmask 1045509  }
  0xd5   : > { %v771_v6 = vsel %vm4921_vm10, 0, %v646_v62 }
  0xd6   : > { %4677 = vmatpush.bf16.msra.mxu3 %v4616_v52 }
  0xd8   : > { %v4832_v2 = vpop.f32.mrf.mxu0 }
  0xe0   : > { %v441_v4 = vpop.f32.mrf.mxu0 }
  0xe1   : > { %v442_v5 = vadd.f32 %v4788_v12, %v441_v4  ;;  %v838_v4 = vsel %vm4917_vm9, %v788_v59, 0 }
  0xe2   : > { %v976_v8 = vunpack.c.l.b16 %v838_v4 }
  0xe3   : > { %v506_v9 = vmax.f32 %v442_v5, 0.0  ;;  %4278 = vmatmul.msk.bf16.vlgmr.msrb.gmra.mxu0 %vm894_vm4, %v4109_v40 }
  0xe5   : > { %v538_v18 = vpack.c.bf16 %v506_v9, %v506_v9  ;;  %v978_v9 = vunpack.c.h.b16 %v838_v4  ;;  %v791_v4 = vrot.slane %v658_v58, 1 }
  0xe7   : > { %v602_v27 = vunpack.c.l.b16 %v538_v18 }
  0xe8   : > { %v443_v13 = vpop.f32.mrf.mxu0 }
  0xe9   : > { %v444_v16 = vadd.f32 %v4788_v12, %v443_v13 }
  0xeb   : > { %v507_v19 = vmax.f32 %v444_v16, 0.0  ;;  %v648_v16 = vshrl.u32 %v4803_v38, 16 }
  0xed   : > { %v539_v25 = vpack.c.bf16 %v507_v19, %v507_v19  ;;  %v790_v29 = vor.u32 %v789_v23, %v648_v16 }
  0xef   : > { %v603_v28 = vunpack.c.l.b16 %v539_v25  ;;  %v650_v25 = vrot.slane %v648_v16, 7  ;;  %v839_v37 = vsel %vm4917_vm9, %v790_v29, 0 }
  0xf0   : > { %v4868_v31 = vpop.f32.mrf.mxu0  ;;  %v980_v50 = vunpack.c.l.b16 %v839_v37  ;;  %v982_v53 = vunpack.c.h.b16 %v839_v37 }
  0xf1   : > { %v4876_v34 = vpack.c.b16 %v603_v28, %v602_v27  ;;  %v653_v32 = vor.u32 %v651_v14, %v650_v25 }
  0xf3   : > { %872 = vrot.lane.b32.xlu1 %v4876_v34, %s4709_s30  ;;  %v772_v46 = vsel %vm4921_vm10, 0, %v653_v32  ;;  %v662_v32 = vshrl.u32 %v4825_v0, 16 }
  0xf5   : > { %v664_v37 = vrot.slane %v662_v32, 7 }
  0xf8   : > { %v4889_v44 = vpop.f32.mrf.mxu0 }
  0xfb   : > { %890 = vrot.lane.b32.xlu1 %v4887_v43, %s4709_s30 }
 0x100   : > { %v4905_v49 = vpop.f32.mrf.mxu0 }
 0x108   : > { %v4914_v54 = vpop.f32.mrf.mxu0 }
 0x110   : > { %v456_v60 = vpop.f32.mrf.mxu0 }
 0x111   : > { %v457_v26 = vadd.f32 %v4788_v12, %v456_v60  ;;  %v655_v60 = vshrl.u32 %v4813_v51, 16 }
 0x113   : > { %v512_v10 = vmax.f32 %v457_v26, 0.0 }
 0x115   : > { %v863_v5 = vpop.permute.xlu0 %862  ;;  %v544_v21 = vpack.c.bf16 %v512_v10, %v512_v10 }
 0x116   : > { %v897_v7 = vsel %vm894_vm4, %v771_v6, %v863_v5  ;;  %v657_v5 = vrot.slane %v655_v60, 7  ;;  %v792_v6 = vor.u32 %v791_v4, %v655_v60 }
 0x117   : > { %v975_v11 = vunpack.c.l.b16 %v897_v7  ;;  %v977_v13 = vunpack.c.h.b16 %v897_v7  ;;  %v608_v27 = vunpack.c.l.b16 %v544_v21 }
 0x118   : > { %v458_v15 = vpop.f32.mrf.mxu0  ;;  %v840_v51 = vsel %vm4917_vm9, %v792_v6, 0 }
 0x119   : > { %v1039_v18 = vpack.c.b16 %v976_v8, %v975_v11  ;;  %v1040_v19 = vpack.c.b16 %v978_v9, %v977_v13  ;;  %v459_v20 = vadd.f32 %v4788_v12, %v458_v15  ;;  %v660_v8 = vor.u32 %v658_v58, %v657_v5 }
 0x11a   : > { %v984_v23 = vunpack.c.l.b16 %v840_v51 }
 0x11b   : > { %1104 = vst.msk [vmem:[#allocation2 + $0x10] sm:$0xff] %vm4850_vm3, %v1039_v18  ;;  %v513_v22 = vmax.f32 %v459_v20, 0.0  ;;  %v773_v20 = vsel %vm4921_vm10, 0, %v660_v8 }
 0x11c   : > { %1105 = vst.msk [vmem:[#allocation2 + $0x18] sm:$0xff] %vm4850_vm3, %v1040_v19 }
 0x11d   : > { %v545_v24 = vpack.c.bf16 %v513_v22, %v513_v22 }
 0x11f   : > { %v609_v28 = vunpack.c.l.b16 %v545_v24 }
 0x120   : > { %v4938_v30 = vpop.f32.mrf.mxu0 }
 0x121   : > { %v4940_v38 = vpack.c.b16 %v609_v28, %v608_v27  ;;  %v986_v27 = vunpack.c.h.b16 %v840_v51  ;;  %v665_v28 = vshll.u32 %v4825_v0, 16 }
 0x122   : > { %v3912_v33 = vld [vmem:[#allocation2 + $0x10] sm:$0xf]  ;;  %v4576_v35 = vld [vmem:[#allocation2 + $0x14] sm:$0xf] }
 0x123   : > { %v4534_v36 = vld [vmem:[#allocation2 + $0x14] sm:$0xf]  ;;  %878 = vrot.lane.b32.xlu1 %v4940_v38, %s4709_s30  ;;  %v4577_v39 = vld [vmem:[#allocation2 + $0x14] sm:$0xf0]  ;;  %v3914_v40 = vld [vmem:[#allocation2 + $0x18] sm:$0xf0] }
 0x124   : > { %v3913_v41 = vor.u32 %v4577_v39, %v3912_v33  ;;  %v3917_v42 = vor.u32 %v4576_v35, %v3914_v40  ;;  %v4114_v45 = vld [vmem:[#allocation2 + $0x18] sm:$0xf0] }
 0x125   : > { %v865_v47 = vpop.permute.xlu0 %864  ;;  %v4117_v48 = vor.u32 %v4534_v36, %v4114_v45  ;;  %v793_v36 = vrot.slane %v665_v28, 1 }
 0x126   : > { %v900_v52 = vsel %vm894_vm4, %v772_v46, %v865_v47  ;;  %1521 = vmatmul.bf16.vlgmr.msra.gmra.mxu1 %v3913_v41  ;;  %4086 = vmatmul.msk.bf16.vlgmr.msra.gmra.mxu2 %vm894_vm4, %v3917_v42  ;;  %v667_v41 = vor.u32 %v665_v28, %v664_v37 }
 0x127   : > { %v979_v55 = vunpack.c.l.b16 %v900_v52  ;;  %v981_v57 = vunpack.c.h.b16 %v900_v52  ;;  %4279 = vmatmul.msk.bf16.gmra.mxu0 %vm894_vm4, %v4117_v48  ;;  %v794_v39 = vor.u32 %v793_v36, %v662_v32 }
 0x128   : > { %v4952_v59 = vpop.f32.mrf.mxu0 }
 0x129   : > { %v1041_v62 = vpack.c.b16 %v980_v50, %v979_v55  ;;  %v1042_v26 = vpack.c.b16 %v982_v53, %v981_v57  ;;  %v841_v0 = vsel %vm4917_vm9, %v794_v39, 0  ;;  %v774_v57 = vsel %vm4921_vm10, 0, %v667_v41 }
 0x12a   : > { %v990_v5 = vunpack.c.h.b16 %v841_v0 }
 0x12b   : > { %1106 = vst.msk [vmem:[#allocation2 + $0x20] sm:$0xff] %vm4850_vm3, %v1041_v62  ;;  %v988_v62 = vunpack.c.l.b16 %v841_v0 }
 0x12c   : > { %1107 = vst.msk [vmem:[#allocation2 + $0x28] sm:$0xff] %vm4850_vm3, %v1042_v26 }
 0x130   : > { %v4959_v7 = vpop.f32.mrf.mxu0 }
 0x132   : > { %v3920_v9 = vld [vmem:[#allocation2 + $0x20] sm:$0xf]  ;;  %v4578_v10 = vld [vmem:[#allocation2 + $0x24] sm:$0xf] }
 0x133   : > { %v4536_v11 = vld [vmem:[#allocation2 + $0x24] sm:$0xf]  ;;  %v4579_v13 = vld [vmem:[#allocation2 + $0x24] sm:$0xf0]  ;;  %v3922_v14 = vld [vmem:[#allocation2 + $0x28] sm:$0xf0] }
 0x134   : > { %v3921_v15 = vor.u32 %v4579_v13, %v3920_v9  ;;  %v3925_v16 = vor.u32 %v4578_v10, %v3922_v14  ;;  %v4122_v18 = vld [vmem:[#allocation2 + $0x28] sm:$0xf0]  ;;  %v439_v10 = vadd.f32 %v4788_v12, %v4832_v2  ;;  %v437_v14 = vadd.f32 %v4788_v12, %v4823_v63 }
 0x135   : > { %v867_v19 = vpop.permute.xlu1 %866  ;;  %v4125_v21 = vor.u32 %v4536_v11, %v4122_v18  ;;  %v482_v2 = vadd.f32 %v4788_v12, %v4820_v56 }
 0x136   : > { %v903_v22 = vsel %vm894_vm4, %v773_v20, %v867_v19  ;;  %1526 = vmatmul.bf16.gmra.mxu1 %v3921_v15  ;;  %4087 = vmatmul.msk.bf16.gmra.mxu2 %vm894_vm4, %v3925_v16  ;;  %v505_v18 = vmax.f32 %v439_v10, 0.0  ;;  %v504_v20 = vmax.f32 %v437_v14, 0.0 }
 0x137   : > { %v983_v24 = vunpack.c.l.b16 %v903_v22  ;;  %v985_v25 = vunpack.c.h.b16 %v903_v22  ;;  %4280 = vmatmul.msk.bf16.gmra.mxu0 %vm894_vm4, %v4125_v21  ;;  %v484_v21 = vadd.f32 %v4788_v12, %v4827_v1  ;;  %v522_v36 = vmax.f32 %v482_v2, 0.0 }
 0x138   : > { %v4969_v29 = vpop.f32.mrf.mxu0 }
 0x139   : > { %v1043_v33 = vpack.c.b16 %v984_v23, %v983_v24  ;;  %v1044_v35 = vpack.c.b16 %v986_v27, %v985_v25  ;;  %v537_v24 = vpack.c.bf16 %v505_v18, %v505_v18  ;;  %v523_v37 = vmax.f32 %v484_v21, 0.0 }
 0x13b   : > { %1108 = vst.msk [vmem:[#allocation2 + $0x30] sm:$0xff] %vm4850_vm3, %v1043_v33  ;;  %v491_v33 = vpop.f32.mrf.mxu3 }
 0x13c   : > { %1109 = vst.msk [vmem:[#allocation2 + $0x38] sm:$0xff] %vm4850_vm3, %v1044_v35  ;;  %v536_v35 = vpack.c.bf16 %v504_v20, %v504_v20  ;;  %v492_v14 = vadd.f32 %v4788_v12, %v491_v33 }
 0x13e   : > { %v600_v0 = vunpack.c.l.b16 %v536_v35 }
 0x140   : > { %v471_v40 = vpop.f32.mrf.mxu0 }
 0x141   : > { %v472_v47 = vadd.f32 %v4788_v12, %v471_v40 }
 0x142   : > { %v3928_v42 = vld [vmem:[#allocation2 + $0x30] sm:$0xf]  ;;  %v4580_v45 = vld [vmem:[#allocation2 + $0x34] sm:$0xf] }
 0x143   : > { %v4538_v46 = vld [vmem:[#allocation2 + $0x34] sm:$0xf]  ;;  %v4581_v48 = vld [vmem:[#allocation2 + $0x34] sm:$0xf0]  ;;  %v3930_v50 = vld [vmem:[#allocation2 + $0x38] sm:$0xf0] }
 0x144   : > { %v3929_v52 = vor.u32 %v4581_v48, %v3928_v42  ;;  %v3933_v53 = vor.u32 %v4580_v45, %v3930_v50  ;;  %v4130_v55 = vld [vmem:[#allocation2 + $0x38] sm:$0xf0]  ;;  %v518_v4 = vmax.f32 %v472_v47, 0.0  ;;  %v601_v45 = vunpack.c.l.b16 %v537_v24 }
 0x145   : > { %v869_v58 = vpop.permute.xlu1 %868  ;;  %v4133_v60 = vor.u32 %v4538_v46, %v4130_v55  ;;  %v679_v47 = vshll.u32 %v4876_v34, 16  ;;  %v554_v48 = vpack.c.bf16 %v522_v36, %v522_v36  ;;  %v555_v50 = vpack.c.bf16 %v523_v37, %v523_v37 }
 0x146   : > { %v906_v26 = vsel %vm894_vm4, %v774_v57, %v869_v58  ;;  %1531 = vmatmul.bf16.gmra.mxu1 %v3929_v52  ;;  %4088 = vmatmul.msk.bf16.gmra.mxu2 %vm894_vm4, %v3933_v53  ;;  %v550_v15 = vpack.c.bf16 %v518_v4, %v518_v4  ;;  %v447_v53 = vadd.f32 %v4788_v12, %v4868_v31  ;;  %v676_v55 = vshrl.u32 %v4876_v34, 16 }
 0x147   : > { %v987_v6 = vunpack.c.l.b16 %v906_v26  ;;  %v989_v8 = vunpack.c.h.b16 %v906_v26  ;;  %4281 = vmatmul.msk.bf16.gmra.mxu0 %vm894_vm4, %v4133_v60  ;;  %v449_v57 = vadd.f32 %v4788_v12, %v4889_v44  ;;  %v454_v58 = vadd.f32 %v4788_v12, %v4914_v54 }
 0x148   : > { %v473_v9 = vpop.f32.mrf.mxu0  ;;  %v614_v22 = vunpack.c.l.b16 %v550_v15  ;;  %v5015_v4 = vpack.c.b16 %v601_v45, %v600_v0  ;;  %v508_v34 = vmax.f32 %v447_v53, 0.0  ;;  %v678_v54 = vrot.slane %v676_v55, 7 }
 0x149   : > { %v1045_v11 = vpack.c.b16 %v988_v62, %v987_v6  ;;  %v1046_v51 = vpack.c.b16 %v990_v5, %v989_v8  ;;  %v474_v13 = vadd.f32 %v4788_v12, %v473_v9  ;;  %v452_v62 = vadd.f32 %v4788_v12, %v4905_v49 }
 0x14a   : > { %v797_v5 = vrot.slane %v679_v47, 1  ;;  %v618_v6 = vunpack.c.l.b16 %v554_v48  ;;  %v619_v8 = vunpack.c.l.b16 %v555_v50  ;;  %v509_v44 = vmax.f32 %v449_v57, 0.0 }
 0x14b   : > { %1110 = vst.msk [vmem:[#allocation2 + $0x40] sm:$0xff] %vm4850_vm3, %v1045_v11  ;;  %v519_v16 = vmax.f32 %v474_v13, 0.0  ;;  %v511_v10 = vmax.f32 %v454_v58, 0.0  ;;  %v493_v11 = vpop.f32.mrf.mxu3  ;;  %v739_v49 = vshrl.u32 %v4887_v43, 16  ;;  %v540_v21 = vpack.c.bf16 %v508_v34, %v508_v34 }
 0x14c   : > { %1111 = vst.msk [vmem:[#allocation2 + $0x48] sm:$0xff] %vm4850_vm3, %v1046_v51  ;;  %v510_v51 = vmax.f32 %v452_v62, 0.0  ;;  %v798_v15 = vor.u32 %v797_v5, %v676_v55  ;;  %v5022_v2 = vpack.c.b16 %v619_v8, %v618_v6  ;;  %v494_v20 = vadd.f32 %v4788_v12, %v493_v11 }
 0x14d   : > { %v551_v19 = vpack.c.bf16 %v519_v16, %v519_v16  ;;  %v742_v16 = vshll.u32 %v4887_v43, 16  ;;  %v526_v43 = vmax.f32 %v492_v14, 0.0  ;;  %v741_v37 = vrot.slane %v739_v49, 7 }
 0x14e   : > { %v542_v24 = vpack.c.bf16 %v510_v51, %v510_v51  ;;  %v843_v33 = vsel %vm4917_vm9, %v798_v15, 0  ;;  %v527_v36 = vmax.f32 %v494_v20, 0.0  ;;  %v469_v62 = vadd.f32 %v4788_v12, %v4969_v29 }
 0x14f   : > { %v615_v23 = vunpack.c.l.b16 %v551_v19  ;;  %v815_v35 = vrot.slane %v742_v16, 1  ;;  %v744_v55 = vor.u32 %v742_v16, %v741_v37 }
 0x150   : > { %v476_v63 = vpop.f32.mrf.mxu0  ;;  %v559_v53 = vpack.c.bf16 %v527_v36, %v527_v36 }
 0x151   : > { %v4997_v25 = vpack.c.b16 %v615_v23, %v614_v22  ;;  %v477_v39 = vadd.f32 %v4788_v12, %v476_v63  ;;  %v541_v22 = vpack.c.bf16 %v509_v44, %v509_v44  ;;  %v543_v23 = vpack.c.bf16 %v511_v10, %v511_v10 }
 0x152   : > { %v3936_v27 = vld [vmem:[#allocation2 + $0x40] sm:$0xf]  ;;  %v4582_v28 = vld [vmem:[#allocation2 + $0x44] sm:$0xf]  ;;  %v681_v63 = vor.u32 %v679_v47, %v678_v54  ;;  %v558_v47 = vpack.c.bf16 %v526_v43, %v526_v43  ;;  %v816_v48 = vor.u32 %v815_v35, %v739_v49  ;;  %v623_v34 = vunpack.c.l.b16 %v559_v53 }
 0x153   : > { %v4540_v32 = vld [vmem:[#allocation2 + $0x44] sm:$0xf]  ;;  %884 = vrot.lane.b32.xlu2 %v4997_v25, %s4709_s30  ;;  %v4583_v56 = vld [vmem:[#allocation2 + $0x44] sm:$0xf0]  ;;  %v3938_v1 = vld [vmem:[#allocation2 + $0x48] sm:$0xf0] }
 0x154   : > { %v3937_v40 = vor.u32 %v4583_v56, %v3936_v27  ;;  %v3941_v41 = vor.u32 %v4582_v28, %v3938_v1  ;;  %v4138_v42 = vld [vmem:[#allocation2 + $0x48] sm:$0xf0]  ;;  %v520_v52 = vmax.f32 %v477_v39, 0.0  ;;  %v464_v27 = vadd.f32 %v4788_v12, %v4952_v59 }
 0x155   : > { %v4141_v46 = vor.u32 %v4540_v32, %v4138_v42  ;;  %v462_v32 = vadd.f32 %v4788_v12, %v4938_v30  ;;  %v604_v39 = vunpack.c.l.b16 %v540_v21  ;;  %v605_v59 = vunpack.c.l.b16 %v541_v22 }
 0x156   : > { %1536 = vmatmul.bf16.gmra.mxu1 %v3937_v40  ;;  %4089 = vmatmul.msk.bf16.gmra.mxu2 %vm894_vm4, %v3941_v41  ;;  %v552_v31 = vpack.c.bf16 %v520_v52, %v520_v52  ;;  %v607_v56 = vunpack.c.l.b16 %v543_v23  ;;  %v776_v1 = vsel %vm4921_vm10, 0, %v681_v63  ;;  %v606_v30 = vunpack.c.l.b16 %v542_v24  ;;  %v5080_v24 = vld [vmem:[%s5996_s3 + $0xf8] sm:$0xff] }
 0x157   : > { %4282 = vmatmul.msk.bf16.gmra.mxu0 %vm894_vm4, %v4141_v46  ;;  %v515_v40 = vmax.f32 %v464_v27, 0.0  ;;  %v996_v41 = vunpack.c.l.b16 %v843_v33  ;;  %v998_v42 = vunpack.c.h.b16 %v843_v33  ;;  %v514_v46 = vmax.f32 %v462_v32, 0.0  ;;  %2455 = vmatpush.bf16.msrb.mxu2 %v5080_v24 }
 0x158   : > { %v478_v60 = vpop.f32.mrf.mxu0  ;;  %v616_v18 = vunpack.c.l.b16 %v552_v31  ;;  %v5040_v57 = vpack.c.b16 %v607_v56, %v606_v30  ;;  %v5042_v58 = vpack.c.b16 %v605_v59, %v604_v39  ;;  %v852_v8 = vsel %vm4917_vm9, %v816_v48, 0 }
 0x159   : > { %v479_v26 = vadd.f32 %v4788_v12, %v478_v60  ;;  %v547_v60 = vpack.c.bf16 %v515_v40, %v515_v40  ;;  %v546_v6 = vpack.c.bf16 %v514_v46, %v514_v46  ;;  %v467_v31 = vadd.f32 %v4788_v12, %v4959_v7 }
 0x15a   : > { %v785_v29 = vsel %vm4921_vm10, 0, %v744_v55  ;;  %v517_v10 = vmax.f32 %v469_v62, 0.0  ;;  %v1032_v12 = vunpack.c.l.b16 %v852_v8  ;;  %v1034_v7 = vunpack.c.h.b16 %v852_v8 }
 0x15b   : > { %v521_v9 = vmax.f32 %v479_v26, 0.0  ;;  %870 = vrot.lane.b32.xlu2 %v5015_v4, %s4709_s30  ;;  %v611_v44 = vunpack.c.l.b16 %v547_v60  ;;  %v610_v11 = vunpack.c.l.b16 %v546_v6  ;;  %v700_v27 = vshll.u32 %v4940_v38, 16 }
 0x15c   : > { %v549_v16 = vpack.c.bf16 %v517_v10, %v517_v10  ;;  %v697_v32 = vshrl.u32 %v4940_v38, 16  ;;  %v4663_v38 = vld [vmem:[%s5996_s3 + $0x118] sm:$0xff]  ;;  %v721_v46 = vshll.u32 %v4997_v25, 16  ;;  %v672_v55 = vshll.u32 %v5015_v4, 16 }
 0x15d   : > { %v553_v13 = vpack.c.bf16 %v521_v9, %v521_v9  ;;  %v622_v9 = vunpack.c.l.b16 %v558_v47  ;;  %v803_v43 = vrot.slane %v700_v27, 1  ;;  %2548 = vmatpush.bf16.msrb.mxu1 %v4663_v38  ;;  %v718_v47 = vshrl.u32 %v4997_v25, 16 }
 0x15e   : > { %v613_v22 = vunpack.c.l.b16 %v549_v16  ;;  %v699_v33 = vrot.slane %v697_v32, 7  ;;  %v809_v48 = vrot.slane %v721_v46, 1  ;;  %v669_v60 = vshrl.u32 %v5015_v4, 16 }
 0x15f   : > { %v617_v19 = vunpack.c.l.b16 %v553_v13  ;;  %v516_v13 = vmax.f32 %v467_v31, 0.0  ;;  %v5061_v49 = vpack.c.b16 %v623_v34, %v622_v9  ;;  %v804_v35 = vor.u32 %v803_v43, %v697_v32 }
 0x160   : > { %v702_v36 = vor.u32 %v700_v27, %v699_v33  ;;  %v810_v53 = vor.u32 %v809_v48, %v718_v47  ;;  %v795_v8 = vrot.slane %v672_v55, 1  ;;  %v671_v34 = vrot.slane %v669_v60, 7 }
 0x161   : > { %v5027_v28 = vpack.c.b16 %v617_v19, %v616_v18  ;;  %v5063_v18 = vpack.c.b16 %v611_v44, %v610_v11  ;;  %v548_v21 = vpack.c.bf16 %v516_v13, %v516_v13  ;;  %v846_v37 = vsel %vm4917_vm9, %v804_v35, 0 }
 0x162   : > { %v779_v39 = vsel %vm4921_vm10, 0, %v702_v36  ;;  %v1010_v30 = vunpack.c.h.b16 %v846_v37  ;;  %v849_v6 = vsel %vm4917_vm9, %v810_v53, 0  ;;  %v732_v11 = vshrl.u32 %v5022_v2, 16 }
 0x163   : > { %888 = vrot.lane.b32.xlu2 %v5022_v2, %s4709_s30  ;;  %886 = vrot.lane.b32.xlu0 %v5027_v28, %s4709_s30  ;;  %v612_v23 = vunpack.c.l.b16 %v548_v21  ;;  %v1020_v10 = vunpack.c.l.b16 %v849_v6  ;;  %v693_v36 = vshll.u32 %v5040_v57, 16 }
 0x165   : > { %v873_v45 = vpop.permute.xlu1 %872  ;;  %v5073_v63 = vpack.c.b16 %v613_v22, %v612_v23  ;;  %v734_v22 = vrot.slane %v732_v11, 7  ;;  %v801_v38 = vrot.slane %v693_v36, 1 }
 0x166   : > { %v912_v0 = vsel %vm894_vm4, %v776_v1, %v873_v45  ;;  %v1008_v1 = vunpack.c.l.b16 %v846_v37  ;;  %v690_v37 = vshrl.u32 %v5040_v57, 16 }
 0x167   : > { %v995_v50 = vunpack.c.l.b16 %v912_v0  ;;  %v997_v52 = vunpack.c.h.b16 %v912_v0 }
 0x168   : > { %v692_v48 = vrot.slane %v690_v37, 7 }
 0x169   : > { %v1049_v26 = vpack.c.b16 %v996_v41, %v995_v50  ;;  %v1050_v5 = vpack.c.b16 %v998_v42, %v997_v52  ;;  %v5102_v50 = vld [vmem:[%s5996_s3 + $0xf0] sm:$0xff]  ;;  %v720_v52 = vrot.slane %v718_v47, 7 }
 0x16a   : > { %2456 = vmatpush.bf16.msrb.mxu2 %v5102_v50 }
 0x16b   : > { %1114 = vst.msk [vmem:[#allocation2 + $0x60] sm:$0xff] %vm4850_vm3, %v1049_v26  ;;  %876 = vrot.lane.b32.xlu2 %v5040_v57, %s4709_s30  ;;  %874 = vrot.lane.b32.xlu0 %v5042_v58, %s4709_s30  ;;  %v723_v26 = vor.u32 %v721_v46, %v720_v52  ;;  %v5144_v46 = vld [vmem:[%s5996_s3 + $0xe8] sm:$0xff] }
 0x16c   : > { %1115 = vst.msk [vmem:[#allocation2 + $0x68] sm:$0xff] %vm4850_vm3, %v1050_v5 }
 0x16d   : > { %v891_v54 = vpop.permute.xlu1 %890  ;;  %v782_v9 = vsel %vm4921_vm10, 0, %v723_v26  ;;  %v802_v26 = vor.u32 %v801_v38, %v690_v37 }
 0x16e   : > { %v939_v51 = vsel %vm894_vm4, %v785_v29, %v891_v54  ;;  %v735_v54 = vshll.u32 %v5022_v2, 16  ;;  %2457 = vmatpush.bf16.msrb.mxu2 %v5144_v46 }
 0x16f   : > { %v1031_v14 = vunpack.c.l.b16 %v939_v51  ;;  %v1033_v15 = vunpack.c.h.b16 %v939_v51 }
 0x171   : > { %v1067_v19 = vpack.c.b16 %v1032_v12, %v1031_v14  ;;  %v1068_v20 = vpack.c.b16 %v1034_v7, %v1033_v15  ;;  %v1022_v12 = vunpack.c.h.b16 %v849_v6  ;;  %v796_v7 = vor.u32 %v795_v8, %v669_v60 }
 0x172   : > { %v674_v15 = vor.u32 %v672_v55, %v671_v34  ;;  %v707_v6 = vshll.u32 %v5063_v18, 16  ;;  %v704_v8 = vshrl.u32 %v5063_v18, 16 }
 0x173   : > { %880 = vrot.lane.b32.xlu2 %v5063_v18, %s4709_s30  ;;  %892 = vrot.lane.b32.xlu0 %v5061_v49, %s4709_s30  ;;  %1132 = vst.msk [vmem:[#allocation2 + $0xf0] sm:$0xff] %vm4850_vm3, %v1067_v19  ;;  %v842_v19 = vsel %vm4917_vm9, %v796_v7, 0 }
 0x174   : > { %1133 = vst.msk [vmem:[#allocation2 + $0xf8] sm:$0xff] %vm4850_vm3, %v1068_v20  ;;  %v813_v20 = vrot.slane %v735_v54, 1  ;;  %v775_v2 = vsel %vm4921_vm10, 0, %v674_v15  ;;  %v992_v32 = vunpack.c.l.b16 %v842_v19  ;;  %v994_v33 = vunpack.c.h.b16 %v842_v19 }
 0x176   : > { %v814_v35 = vor.u32 %v813_v20, %v732_v11 }
 0x178   : > { %v851_v57 = vsel %vm4917_vm9, %v814_v35, 0  ;;  %v725_v35 = vshrl.u32 %v5027_v28, 16 }
 0x179   : > { %v1028_v53 = vunpack.c.l.b16 %v851_v57  ;;  %v1030_v55 = vunpack.c.h.b16 %v851_v57 }
 0x17a   : > { %v727_v57 = vrot.slane %v725_v35, 7 }
 0x17b   : > { %882 = vrot.lane.b32.xlu0 %v5073_v63, %s4709_s30 }
 0x195   : > { %v879_v59 = vpop.permute.xlu1 %878 }
 0x196   : > { %v921_v56 = vsel %vm894_vm4, %v779_v39, %v879_v59 }
 0x197   : > { %v1007_v40 = vunpack.c.l.b16 %v921_v56  ;;  %v1009_v41 = vunpack.c.h.b16 %v921_v56 }
 0x199   : > { %v1055_v42 = vpack.c.b16 %v1008_v1, %v1007_v40  ;;  %v1056_v45 = vpack.c.b16 %v1010_v30, %v1009_v41  ;;  %v737_v1 = vor.u32 %v735_v54, %v734_v22  ;;  %v845_v54 = vsel %vm4917_vm9, %v802_v26, 0 }
 0x19a   : > { %v1004_v22 = vunpack.c.l.b16 %v845_v54  ;;  %v686_v26 = vshll.u32 %v5042_v58, 16 }
 0x19b   : > { %1120 = vst.msk [vmem:[#allocation2 + $0x90] sm:$0xff] %vm4850_vm3, %v1055_v42  ;;  %v784_v47 = vsel %vm4921_vm10, 0, %v737_v1 }
 0x19c   : > { %1121 = vst.msk [vmem:[#allocation2 + $0x98] sm:$0xff] %vm4850_vm3, %v1056_v45 }
 0x1a3   : > { %v1522_v0 = vpop.f32.mrf.mxu1 }
 0x1a9   : > { %v1611_v62 = vpop.f32.mrf.mxu2 }
 0x1aa   : > { %v5107_v5 = vadd.f32 %v1611_v62, %v1522_v0 }
 0x1ab   : > { %v5109_v25 = vpop.f32.mrf.mxu1 }
 0x1ad   : > { %v885_v31 = vpop.permute.xlu2 %884 }
 0x1ae   : > { %v930_v29 = vsel %vm894_vm4, %v782_v9, %v885_v31 }
 0x1af   : > { %v1019_v44 = vunpack.c.l.b16 %v930_v29  ;;  %v1021_v4 = vunpack.c.h.b16 %v930_v29  ;;  %v695_v29 = vor.u32 %v693_v36, %v692_v48 }
 0x1b1   : > { %v1061_v51 = vpack.c.b16 %v1020_v10, %v1019_v44  ;;  %v1062_v13 = vpack.c.b16 %v1022_v12, %v1021_v4  ;;  %v5118_v14 = vpop.f32.mrf.mxu2 }
 0x1b3   : > { %1126 = vst.msk [vmem:[#allocation2 + $0xc0] sm:$0xff] %vm4850_vm3, %v1061_v51  ;;  %v1527_v16 = vpop.f32.mrf.mxu1 }
 0x1b4   : > { %1127 = vst.msk [vmem:[#allocation2 + $0xc8] sm:$0xff] %vm4850_vm3, %v1062_v13  ;;  %v805_v13 = vrot.slane %v707_v6, 1 }
 0x1b5   : > { %v871_v21 = vpop.permute.xlu2 %870 }
 0x1b6   : > { %v909_v23 = vsel %vm894_vm4, %v775_v2, %v871_v21  ;;  %v706_v21 = vrot.slane %v704_v8, 7 }
 0x1b7   : > { %v991_v27 = vunpack.c.l.b16 %v909_v23  ;;  %v993_v43 = vunpack.c.h.b16 %v909_v23  ;;  %v1006_v23 = vunpack.c.h.b16 %v845_v54 }
 0x1b9   : > { %v1047_v39 = vpack.c.b16 %v992_v32, %v991_v27  ;;  %v1048_v59 = vpack.c.b16 %v994_v33, %v993_v43  ;;  %v1616_v56 = vpop.f32.mrf.mxu2  ;;  %v806_v43 = vor.u32 %v805_v13, %v704_v8  ;;  %v728_v33 = vshll.u32 %v5027_v28, 16  ;;  %v4662_v28 = vld [vmem:[%s5996_s3 + $0x110] sm:$0xff] }
 0x1ba   : > { %v5131_v30 = vadd.f32 %v1616_v56, %v1527_v16  ;;  %v4000_v40 = vld [vmem:[#allocation2 + $0xc0] sm:$0xf]  ;;  %v778_v16 = vsel %vm4921_vm10, 0, %v695_v29  ;;  %2549 = vmatpush.bf16.msrb.mxu1 %v4662_v28  ;;  %v4587_v29 = vld [vmem:[#allocation2 + $0x64] sm:$0xf0] }
 0x1bb   : > { %1112 = vst.msk [vmem:[#allocation2 + $0x50] sm:$0xff] %vm4850_vm3, %v1047_v39  ;;  %v5135_v41 = vpop.f32.mrf.mxu1  ;;  %v4599_v42 = vld [vmem:[#allocation2 + $0xc4] sm:$0xf0]  ;;  %v847_v1 = vsel %vm4917_vm9, %v806_v43, 0 }
 0x1bc   : > { %1113 = vst.msk [vmem:[#allocation2 + $0x58] sm:$0xff] %vm4850_vm3, %v1048_v59  ;;  %v4001_v45 = vor.u32 %v4599_v42, %v4000_v40  ;;  %v709_v59 = vor.u32 %v707_v6, %v706_v21  ;;  %v811_v40 = vrot.slane %v728_v33, 1  ;;  %v1014_v48 = vunpack.c.h.b16 %v847_v1 }
 0x1bd   : > { %v889_v0 = vpop.permute.xlu2 %888 }
 0x1be   : > { %1576 = vmatmul.bf16.vlgmr.msrb.gmra.mxu3 %v4001_v45  ;;  %v936_v52 = vsel %vm894_vm4, %v784_v47, %v889_v0  ;;  %v780_v42 = vsel %vm4921_vm10, 0, %v709_v59  ;;  %v1012_v0 = vunpack.c.l.b16 %v847_v1  ;;  %2550 = vmatpush.bf16.msrb.mxu1 %v4661_v3 }
 0x1bf   : > { %v1027_v60 = vunpack.c.l.b16 %v936_v52  ;;  %v1029_v62 = vunpack.c.h.b16 %v936_v52 }
 0x1c1   : > { %v1065_v31 = vpack.c.b16 %v1028_v53, %v1027_v60  ;;  %v1066_v9 = vpack.c.b16 %v1030_v55, %v1029_v62  ;;  %v5152_v34 = vpop.f32.mrf.mxu2  ;;  %v683_v55 = vshrl.u32 %v5042_v58, 16  ;;  %v812_v60 = vor.u32 %v811_v40, %v725_v35  ;;  %v3952_v62 = vld [vmem:[#allocation2 + $0x60] sm:$0xf] }
 0x1c2   : > { %v3944_v44 = vld [vmem:[#allocation2 + $0x50] sm:$0xf]  ;;  %v4584_v10 = vld [vmem:[#allocation2 + $0x54] sm:$0xf]  ;;  %v3953_v58 = vor.u32 %v4587_v29, %v3952_v62 }
 0x1c3   : > { %v4542_v4 = vld [vmem:[#allocation2 + $0x54] sm:$0xf]  ;;  %1130 = vst.msk [vmem:[#allocation2 + $0xe0] sm:$0xff] %vm4850_vm3, %v1065_v31  ;;  %v4585_v12 = vld [vmem:[#allocation2 + $0x54] sm:$0xf0]  ;;  %v1532_v15 = vpop.f32.mrf.mxu1 }
 0x1c4   : > { %v3946_v7 = vld [vmem:[#allocation2 + $0x58] sm:$0xf0]  ;;  %1131 = vst.msk [vmem:[#allocation2 + $0xe8] sm:$0xff] %vm4850_vm3, %v1066_v9  ;;  %v3945_v18 = vor.u32 %v4585_v12, %v3944_v44  ;;  %v730_v9 = vor.u32 %v728_v33, %v727_v57  ;;  %v4586_v44 = vld [vmem:[#allocation2 + $0x64] sm:$0xf] }
 0x1c5   : > { %v3949_v11 = vor.u32 %v4584_v10, %v3946_v7  ;;  %v4146_v51 = vld [vmem:[#allocation2 + $0x58] sm:$0xf0]  ;;  %v877_v19 = vpop.permute.xlu2 %876  ;;  %v3954_v10 = vld [vmem:[#allocation2 + $0x68] sm:$0xf0]  ;;  %v850_v7 = vsel %vm4917_vm9, %v812_v60, 0 }
 0x1c6   : > { %v4149_v20 = vor.u32 %v4542_v4, %v4146_v51  ;;  %v918_v2 = vsel %vm894_vm4, %v778_v16, %v877_v19  ;;  %1541 = vmatmul.bf16.gmra.mxu1 %v3945_v18  ;;  %v4544_v4 = vld [vmem:[#allocation2 + $0x64] sm:$0xf]  ;;  %v4154_v12 = vld [vmem:[#allocation2 + $0x68] sm:$0xf0]  ;;  %v3957_v54 = vor.u32 %v4586_v44, %v3954_v10  ;;  %v799_v18 = vrot.slane %v686_v26, 1 }
 0x1c7   : > { %4090 = vmatmul.msk.bf16.gmra.mxu2 %vm894_vm4, %v3949_v11  ;;  %v1003_v27 = vunpack.c.l.b16 %v918_v2  ;;  %v1005_v32 = vunpack.c.h.b16 %v918_v2  ;;  %v5196_v11 = vld [vmem:[%s5996_s3 + $0xe0] sm:$0xff]  ;;  %v783_v51 = vsel %vm4921_vm10, 0, %v730_v9  ;;  %v685_v16 = vrot.slane %v683_v55, 7 }
 0x1c8   : > { %4283 = vmatmul.msk.bf16.gmra.mxu0 %vm894_vm4, %v4149_v20  ;;  %v1024_v20 = vunpack.c.l.b16 %v850_v7  ;;  %v1026_v21 = vunpack.c.h.b16 %v850_v7  ;;  %2458 = vmatpush.bf16.msrb.mxu2 %v5196_v11 }
 0x1c9   : > { %v1053_v36 = vpack.c.b16 %v1004_v22, %v1003_v27  ;;  %v1054_v37 = vpack.c.b16 %v1006_v23, %v1005_v32  ;;  %v1621_v39 = vpop.f32.mrf.mxu2  ;;  %v800_v23 = vor.u32 %v799_v18, %v683_v55  ;;  %v749_v27 = vshll.u32 %v5061_v49, 16 }
 0x1ca   : > { %v5167_v56 = vadd.f32 %v1621_v39, %v1532_v15  ;;  %v4157_v15 = vor.u32 %v4544_v4, %v4154_v12  ;;  %v746_v32 = vshrl.u32 %v5061_v49, 16 }
 0x1cb   : > { %1118 = vst.msk [vmem:[#allocation2 + $0x80] sm:$0xff] %vm4850_vm3, %v1053_v36  ;;  %v5181_v47 = vpop.f32.mrf.mxu1  ;;  %v844_v59 = vsel %vm4917_vm9, %v800_v23, 0  ;;  %v817_v1 = vrot.slane %v749_v27, 1 }
 0x1cc   : > { %1119 = vst.msk [vmem:[#allocation2 + $0x88] sm:$0xff] %vm4850_vm3, %v1054_v37  ;;  %v688_v37 = vor.u32 %v686_v26, %v685_v16  ;;  %v748_v28 = vrot.slane %v746_v32, 7  ;;  %v1002_v57 = vunpack.c.h.b16 %v844_v59  ;;  %2459 = vmatpush.bf16.msrb.mxu2 %v5242_v61 }
 0x1cd   : > { %v881_v45 = vpop.permute.xlu2 %880 }
 0x1ce   : > { %v924_v38 = vsel %vm894_vm4, %v780_v42, %v881_v45  ;;  %v777_v49 = vsel %vm4921_vm10, 0, %v688_v37  ;;  %v1000_v45 = vunpack.c.l.b16 %v844_v59  ;;  %v751_v62 = vor.u32 %v749_v27, %v748_v28 }
 0x1cf   : > { %v1011_v52 = vunpack.c.l.b16 %v924_v38  ;;  %v1013_v53 = vunpack.c.h.b16 %v924_v38 }
 0x1d0   : > { %v786_v44 = vsel %vm4921_vm10, 0, %v751_v62 }
 0x1d1   : > { %v1057_v6 = vpack.c.b16 %v1012_v0, %v1011_v52  ;;  %v1058_v8 = vpack.c.b16 %v1014_v48, %v1013_v53  ;;  %v5185_v31 = vpop.f32.mrf.mxu2  ;;  %v818_v48 = vor.u32 %v817_v1, %v746_v32  ;;  %v714_v52 = vshll.u32 %v5073_v63, 16 }
 0x1d2   : > { %v711_v53 = vshrl.u32 %v5073_v63, 16 }
 0x1d3   : > { %1122 = vst.msk [vmem:[#allocation2 + $0xa0] sm:$0xff] %vm4850_vm3, %v1057_v6  ;;  %v1537_v43 = vpop.f32.mrf.mxu1  ;;  %v853_v9 = vsel %vm4917_vm9, %v818_v48, 0  ;;  %v807_v29 = vrot.slane %v714_v52, 1  ;;  %v4590_v48 = vld [vmem:[#allocation2 + $0x84] sm:$0xf] }
 0x1d4   : > { %1123 = vst.msk [vmem:[#allocation2 + $0xa8] sm:$0xff] %vm4850_vm3, %v1058_v8  ;;  %v713_v10 = vrot.slane %v711_v53, 7  ;;  %v1036_v12 = vunpack.c.l.b16 %v853_v9  ;;  %v1038_v7 = vunpack.c.h.b16 %v853_v9  ;;  %v4571_v9 = vld [vmem:[%s5996_s3 + $0x38] sm:$0xff] }
 0x1d5   : > { %v887_v13 = vpop.permute.xlu0 %886  ;;  %v808_v18 = vor.u32 %v807_v29, %v711_v53  ;;  %v4548_v53 = vld [vmem:[#allocation2 + $0x84] sm:$0xf]  ;;  %v5260_v29 = vld [vmem:[%s5996_s3 + $0xd0] sm:$0xff]  ;;  %1955 = vmatpush.bf16.msrb.mxu3 %v4571_v9 }
 0x1d6   : > { %v933_v19 = vsel %vm894_vm4, %v783_v51, %v887_v13  ;;  %1546 = vmatmul.bf16.gmra.mxu1 %v3953_v58  ;;  %2460 = vmatpush.bf16.msrb.mxu2 %v5260_v29  ;;  %v4620_v9 = vld [vmem:[#allocation2 + $0x24] sm:$0xf] }
 0x1d7   : > { %4091 = vmatmul.msk.bf16.gmra.mxu2 %vm894_vm4, %v3957_v54  ;;  %v1023_v2 = vunpack.c.l.b16 %v933_v19  ;;  %v1025_v22 = vunpack.c.h.b16 %v933_v19 }
 0x1d8   : > { %4284 = vmatmul.msk.bf16.gmra.mxu0 %vm894_vm4, %v4157_v15  ;;  %v716_v15 = vor.u32 %v714_v52, %v713_v10  ;;  %v3970_v52 = vld [vmem:[#allocation2 + $0x88] sm:$0xf0]  ;;  %v4593_v10 = vld [vmem:[#allocation2 + $0x94] sm:$0xf0] }
 0x1d9   : > { %v1063_v33 = vpack.c.b16 %v1024_v20, %v1023_v2  ;;  %v1064_v35 = vpack.c.b16 %v1026_v21, %v1025_v22  ;;  %v1626_v36 = vpop.f32.mrf.mxu2  ;;  %v848_v22 = vsel %vm4917_vm9, %v808_v18, 0  ;;  %v3973_v62 = vor.u32 %v4590_v48, %v3970_v52  ;;  %v4565_v52 = vld [vmem:[%s5996_s3 + $0x8] sm:$0xff] }
 0x1da   : > { %v5206_v39 = vadd.f32 %v1626_v36, %v1537_v43  ;;  %v781_v43 = vsel %vm4921_vm10, 0, %v716_v15  ;;  %v1016_v37 = vunpack.c.l.b16 %v848_v22  ;;  %v1018_v59 = vunpack.c.h.b16 %v848_v22 }
 0x1db   : > { %1128 = vst.msk [vmem:[#allocation2 + $0xd0] sm:$0xff] %vm4850_vm3, %v1063_v33  ;;  %v4595_v22 = vld [vmem:[#allocation2 + $0xa4] sm:$0xf0] }
 0x1dc   : > { %1129 = vst.msk [vmem:[#allocation2 + $0xd8] sm:$0xff] %vm4850_vm3, %v1064_v35 }
 0x1dd   : > { %v875_v40 = vpop.permute.xlu0 %874 }
 0x1de   : > { %v915_v42 = vsel %vm894_vm4, %v777_v49, %v875_v40 }
 0x1df   : > { %v999_v38 = vunpack.c.l.b16 %v915_v42  ;;  %v1001_v0 = vunpack.c.h.b16 %v915_v42  ;;  %v4016_v42 = vld [vmem:[#allocation2 + $0xe0] sm:$0xf] }
 0x1e1   : > { %v1051_v55 = vpack.c.b16 %v1000_v45, %v999_v38  ;;  %v1052_v60 = vpack.c.b16 %v1002_v57, %v1001_v0  ;;  %v4603_v45 = vld [vmem:[#allocation2 + $0xe4] sm:$0xf0]  ;;  %v3968_v38 = vld [vmem:[#allocation2 + $0x80] sm:$0xf] }
 0x1e2   : > { %v4008_v26 = vld [vmem:[#allocation2 + $0xd0] sm:$0xf]  ;;  %v4017_v57 = vor.u32 %v4603_v45, %v4016_v42  ;;  %v4591_v0 = vld [vmem:[#allocation2 + $0x84] sm:$0xf0]  ;;  %v5292_v42 = vpop.f32.mrf.mxu0 }
 0x1e3   : > { %1116 = vst.msk [vmem:[#allocation2 + $0x70] sm:$0xff] %vm4850_vm3, %v1051_v55  ;;  %v4601_v6 = vld [vmem:[#allocation2 + $0xd4] sm:$0xf0]  ;;  %v4170_v55 = vld [vmem:[#allocation2 + $0x88] sm:$0xf0] }
 0x1e4   : > { %1117 = vst.msk [vmem:[#allocation2 + $0x78] sm:$0xff] %vm4850_vm3, %v1052_v60  ;;  %v4009_v8 = vor.u32 %v4601_v6, %v4008_v26  ;;  %v3969_v60 = vor.u32 %v4591_v0, %v3968_v38  ;;  %v4173_v26 = vor.u32 %v4548_v53, %v4170_v55  ;;  %v4024_v6 = vld [vmem:[#allocation2 + $0xf0] sm:$0xf] }
 0x1e5   : > { %v893_v63 = vpop.permute.xlu0 %892 }
 0x1e6   : > { %1581 = vmatmul.bf16.gmra.mxu3 %v4009_v8  ;;  %v942_v4 = vsel %vm894_vm4, %v786_v44, %v893_v63  ;;  %v4605_v8 = vld [vmem:[#allocation2 + $0xf4] sm:$0xf0]  ;;  %v3976_v44 = vld [vmem:[#allocation2 + $0x90] sm:$0xf] }
 0x1e7   : > { %v1035_v58 = vunpack.c.l.b16 %v942_v4  ;;  %v1037_v54 = vunpack.c.h.b16 %v942_v4  ;;  %v4025_v17 = vor.u32 %v4605_v8, %v4024_v6  ;;  %v4570_v63 = vld [vmem:[%s5996_s3 + $0x30] sm:$0xff]  ;;  %v4026_v6 = vld [vmem:[#allocation2 + $0xf8] sm:$0xf0] }
 0x1e8   : > { %v4592_v4 = vld [vmem:[#allocation2 + $0x94] sm:$0xf]  ;;  %1956 = vmatpush.bf16.msrb.mxu3 %v4570_v63  ;;  %v4002_v63 = vld [vmem:[#allocation2 + $0xc8] sm:$0xf0] }
 0x1e9   : > { %v1069_v51 = vpack.c.b16 %v1036_v12, %v1035_v58  ;;  %v1070_v13 = vpack.c.b16 %v1038_v7, %v1037_v54  ;;  %v3978_v12 = vld [vmem:[#allocation2 + $0x98] sm:$0xf0]  ;;  %v4550_v7 = vld [vmem:[#allocation2 + $0x94] sm:$0xf]  ;;  %v3977_v54 = vor.u32 %v4593_v10, %v3976_v44  ;;  %v4598_v44 = vld [vmem:[#allocation2 + $0xc4] sm:$0xf] }
 0x1ea   : > { %v3960_v16 = vld [vmem:[#allocation2 + $0x70] sm:$0xf]  ;;  %v4588_v19 = vld [vmem:[#allocation2 + $0x74] sm:$0xf]  ;;  %v4178_v58 = vld [vmem:[#allocation2 + $0x98] sm:$0xf0]  ;;  %v3981_v18 = vor.u32 %v4592_v4, %v3978_v12  ;;  %v5303_v8 = vpop.f32.mrf.mxu0 }
 0x1eb   : > { %v4546_v20 = vld [vmem:[#allocation2 + $0x74] sm:$0xf]  ;;  %1134 = vst.msk [vmem:[#allocation2 + $0x100] sm:$0xff] %vm4850_vm3, %v1069_v51  ;;  %v4589_v21 = vld [vmem:[#allocation2 + $0x74] sm:$0xf0]  ;;  %v4181_v51 = vor.u32 %v4550_v7, %v4178_v58  ;;  %v5307_v7 = vpop.f32.mrf.mxu1  ;;  %v4652_v58 = vld [vmem:[%s5996_s3 + $0xc0] sm:$0xff] }
 0x1ec   : > { %v3962_v2 = vld [vmem:[#allocation2 + $0x78] sm:$0xf0]  ;;  %1135 = vst.msk [vmem:[#allocation2 + $0x108] sm:$0xff] %vm4850_vm3, %v1070_v13  ;;  %v3961_v23 = vor.u32 %v4589_v21, %v3960_v16  ;;  %v4569_v13 = vld [vmem:[%s5996_s3 + $0x28] sm:$0xff]  ;;  %v4660_v21 = vld [vmem:[%s5996_s3 + $0x100] sm:$0xff] }
 0x1ed   : > { %v3965_v27 = vor.u32 %v4588_v19, %v3962_v2  ;;  %v4162_v32 = vld [vmem:[#allocation2 + $0x78] sm:$0xf0]  ;;  %v883_v33 = vpop.permute.xlu0 %882  ;;  %1957 = vmatpush.bf16.msrb.mxu3 %v4569_v13  ;;  %v3984_v2 = vld [vmem:[#allocation2 + $0xa0] sm:$0xf]  ;;  %2551 = vmatpush.bf16.msrb.mxu1 %v4660_v21  ;;  %v4322_v10 = vld [vmem:[#allocation2 + $0x28] sm:$0xf0] }
 0x1ee   : > { %v4165_v35 = vor.u32 %v4546_v20, %v4162_v32  ;;  %v927_v36 = vsel %vm894_vm4, %v781_v43, %v883_v33  ;;  %1551 = vmatmul.bf16.gmra.mxu1 %v3961_v23  ;;  %v4568_v20 = vld [vmem:[%s5996_s3 + $0x20] sm:$0xff]  ;;  %v4186_v43 = vld [vmem:[#allocation2 + $0xa8] sm:$0xf0]  ;;  %v3985_v33 = vor.u32 %v4595_v22, %v3984_v2  ;;  %v4600_v2 = vld [vmem:[#allocation2 + $0xd4] sm:$0xf] }
 0x1ef   : > { %4092 = vmatmul.msk.bf16.gmra.mxu2 %vm894_vm4, %v3965_v27  ;;  %v1015_v1 = vunpack.c.l.b16 %v927_v36  ;;  %v1017_v49 = vunpack.c.h.b16 %v927_v36  ;;  %v4594_v23 = vld [vmem:[#allocation2 + $0xa4] sm:$0xf]  ;;  %v3986_v27 = vld [vmem:[#allocation2 + $0xa8] sm:$0xf0]  ;;  %v4010_v22 = vld [vmem:[#allocation2 + $0xd8] sm:$0xf0] }
 0x1f0   : > { %4285 = vmatmul.msk.bf16.gmra.mxu0 %vm894_vm4, %v4165_v35  ;;  %v4552_v32 = vld [vmem:[#allocation2 + $0xa4] sm:$0xf]  ;;  %v3989_v35 = vor.u32 %v4594_v23, %v3986_v27  ;;  %v4202_v12 = vld [vmem:[#allocation2 + $0xc8] sm:$0xf0]  ;;  %v4330_v23 = vld [vmem:[#allocation2 + $0x38] sm:$0xf0] }
 0x1f1   : > { %v1059_v40 = vpack.c.b16 %v1016_v37, %v1015_v1  ;;  %v1060_v28 = vpack.c.b16 %v1018_v59, %v1017_v49  ;;  %1958 = vmatpush.bf16.msrb.mxu3 %v4568_v20  ;;  %v4189_v36 = vor.u32 %v4552_v32, %v4186_v43  ;;  %v4567_v37 = vld [vmem:[%s5996_s3 + $0x18] sm:$0xff]  ;;  %v4602_v59 = vld [vmem:[#allocation2 + $0xe4] sm:$0xf]  ;;  %v4018_v1 = vld [vmem:[#allocation2 + $0xe8] sm:$0xf0]  ;;  %v4013_v43 = vor.u32 %v4600_v2, %v4010_v22 }
 0x1f2   : > { %v4032_v15 = vld [vmem:[#allocation2 + $0x100] sm:$0xf]  ;;  %v5285_v49 = vld [vmem:[%s5996_s3 + $0xc8] sm:$0xff]  ;;  %v4021_v3 = vor.u32 %v4602_v59, %v4018_v1  ;;  %v4556_v4 = vld [vmem:[#allocation2 + $0xc4] sm:$0xf] }
 0x1f3   : > { %1124 = vst.msk [vmem:[#allocation2 + $0xb0] sm:$0xff] %vm4850_vm3, %v1059_v40  ;;  %v4607_v16 = vld [vmem:[#allocation2 + $0x104] sm:$0xf0]  ;;  %2461 = vmatpush.bf16.msrb.mxu2 %v5285_v49  ;;  %v4566_v40 = vld [vmem:[%s5996_s3 + $0x10] sm:$0xff]  ;;  %v4606_v13 = vld [vmem:[#allocation2 + $0x104] sm:$0xf] }
 0x1f4   : > { %1125 = vst.msk [vmem:[#allocation2 + $0xb8] sm:$0xff] %vm4850_vm3, %v1060_v28  ;;  %v4033_v19 = vor.u32 %v4607_v16, %v4032_v15  ;;  %v4034_v15 = vld [vmem:[#allocation2 + $0x108] sm:$0xf0]  ;;  %v4622_v20 = vld [vmem:[#allocation2 + $0x34] sm:$0xf]  ;;  %vm3598_vm3 = vcmask 1047556  }
 0x1f5   : > { %1959 = vmatpush.bf16.msrb.mxu3 %v4567_v37  ;;  %v4558_v27 = vld [vmem:[#allocation2 + $0xd4] sm:$0xf]  ;;  %v4210_v32 = vld [vmem:[#allocation2 + $0xd8] sm:$0xf0] }
 0x1f6   : > { %1586 = vmatmul.bf16.gmra.mxu3 %v4017_v57 }
 0x1f7   : > { %2462 = vmatpush.bf16.msrb.mxu2 %v4652_v58 }
 0x1f9   : > { %1960 = vmatpush.bf16.msrb.mxu3 %v4566_v40 }
 0x1fa   : > { %v3992_v28 = vld [vmem:[#allocation2 + $0xb0] sm:$0xf]  ;;  %v4596_v57 = vld [vmem:[#allocation2 + $0xb4] sm:$0xf] }
 0x1fb   : > { %v4597_v45 = vld [vmem:[#allocation2 + $0xb4] sm:$0xf0]  ;;  %v3994_v38 = vld [vmem:[#allocation2 + $0xb8] sm:$0xf0]  ;;  %v4554_v0 = vld [vmem:[#allocation2 + $0xb4] sm:$0xf] }
 0x1fc   : > { %v4194_v48 = vld [vmem:[#allocation2 + $0xb8] sm:$0xf0]  ;;  %v3993_v53 = vor.u32 %v4597_v45, %v3992_v28  ;;  %v3997_v55 = vor.u32 %v4596_v57, %v3994_v38  ;;  %v4320_v28 = vld [vmem:[#allocation2 + $0x20] sm:$0xf]  ;;  %v4621_v57 = vld [vmem:[#allocation2 + $0x24] sm:$0xf0] }
 0x1fd   : > { %1961 = vmatpush.bf16.msrb.mxu3 %v4565_v52  ;;  %v4624_v38 = vld [vmem:[#allocation2 + $0x44] sm:$0xf] }
 0x1fe   : > { %1556 = vmatmul.bf16.gmra.mxu1 %v3969_v60  ;;  %v4197_v60 = vor.u32 %v4554_v0, %v4194_v48  ;;  %v4338_v0 = vld [vmem:[#allocation2 + $0x48] sm:$0xf0]  ;;  %v4560_v52 = vld [vmem:[#allocation2 + $0xe4] sm:$0xf] }
 0x1ff   : > { %4093 = vmatmul.msk.bf16.gmra.mxu2 %vm894_vm4, %v3973_v62  ;;  %v4564_v62 = vld [vmem:[%s5996_s3] sm:$0xff] }
 0x200   : > { %4286 = vmatmul.msk.bf16.gmra.mxu0 %vm894_vm4, %v4173_v26  ;;  %v4604_v26 = vld [vmem:[#allocation2 + $0xf4] sm:$0xf] }
 0x201   : > { %1962 = vmatpush.bf16.msrb.mxu3 %v4564_v62  ;;  %v4341_v62 = vor.u32 %v4624_v38, %v4338_v0 }
 0x206   : > { %1591 = vmatmul.bf16.gmra.mxu3 %v4025_v17  ;;  %v4029_v17 = vor.u32 %v4604_v26, %v4026_v6 }
 0x20e   : > { %1561 = vmatmul.bf16.gmra.mxu1 %v3977_v54  ;;  %v4325_v54 = vor.u32 %v4620_v9, %v4322_v10 }
 0x20f   : > { %4094 = vmatmul.msk.bf16.gmra.mxu2 %vm894_vm4, %v3981_v18  ;;  %v5313_v18 = vpop.f32.mrf.mxu0 }
 0x210   : > { %4287 = vmatmul.msk.bf16.gmra.mxu0 %vm894_vm4, %v4181_v51  ;;  %v4205_v51 = vor.u32 %v4556_v4, %v4202_v12 }
 0x216   : > { %1596 = vmatmul.bf16.gmra.mxu3 %v4033_v19 }
 0x217   : > { %v5323_v19 = vpop.f32.mrf.mxu0 }
 0x21e   : > { %1566 = vmatmul.bf16.gmra.mxu1 %v3985_v33 }
 0x21f   : > { %4095 = vmatmul.msk.bf16.gmra.mxu2 %vm894_vm4, %v3989_v35  ;;  %v4213_v35 = vor.u32 %v4558_v27, %v4210_v32  ;;  %v5332_v37 = vpop.f32.mrf.mxu0  ;;  %v4120_v32 = vld [vmem:[#allocation2 + $0x20] sm:$0xf] }
 0x220   : > { %4288 = vmatmul.msk.bf16.gmra.mxu0 %vm894_vm4, %v4189_v36  ;;  %v4533_v36 = vld [vmem:[#allocation2 + $0x4] sm:$0xf0] }
 0x226   : > { %4099 = vmatmul.msk.bf16.vlgmr.msra.gmra.mxu3 %vm894_vm4, %v4021_v3 }
 0x227   : > { %4678 = vmatpush.bf16.msra.mxu3 %v5080_v24  ;;  %v4005_v24 = vor.u32 %v4598_v44, %v4002_v63  ;;  %v4112_v44 = vld [vmem:[#allocation2 + $0x10] sm:$0xf]  ;;  %v4535_v63 = vld [vmem:[#allocation2 + $0x14] sm:$0xf0] }
 0x228   : > { %v4113_v4 = vor.u32 %v4535_v63, %v4112_v44  ;;  %v4344_v44 = vld [vmem:[#allocation2 + $0x50] sm:$0xf] }
 0x22b   : > { %4679 = vmatpush.bf16.msra.mxu3 %v5102_v50  ;;  %v5319_v50 = vpop.f32.mrf.mxu2 }
 0x22e   : > { %1571 = vmatmul.bf16.gmra.mxu1 %v3993_v53  ;;  %v4218_v53 = vld [vmem:[#allocation2 + $0xe8] sm:$0xf0] }
 0x22f   : > { %4096 = vmatmul.msk.bf16.gmra.mxu2 %vm894_vm4, %v3997_v55  ;;  %4680 = vmatpush.bf16.msra.mxu3 %v5144_v46  ;;  %v4037_v46 = vor.u32 %v4606_v13, %v4034_v15  ;;  %v5340_v55 = vpop.f32.mrf.mxu0  ;;  %v4221_v26 = vor.u32 %v4560_v52, %v4218_v53  ;;  %v4346_v13 = vld [vmem:[#allocation2 + $0x58] sm:$0xf0]  ;;  %v4562_v15 = vld [vmem:[#allocation2 + $0xf4] sm:$0xf] }
 0x230   : > { %4289 = vmatmul.msk.bf16.gmra.mxu0 %vm894_vm4, %v4197_v60  ;;  %v4321_v60 = vor.u32 %v4621_v57, %v4320_v28  ;;  %v4354_v28 = vld [vmem:[#allocation2 + $0x68] sm:$0xf0] }
 0x233   : > { %4681 = vmatpush.bf16.msra.mxu3 %v5196_v11 }
 0x236   : > { %4100 = vmatmul.msk.bf16.gmra.mxu3 %vm894_vm4, %v4029_v17 }
 0x237   : > { %4682 = vmatpush.bf16.msra.mxu3 %v5242_v61  ;;  %v4333_v61 = vor.u32 %v4622_v20, %v4330_v23  ;;  %v5348_v12 = vpop.f32.mrf.mxu0 }
 0x23b   : > { %4683 = vmatpush.bf16.msra.mxu3 %v5260_v29  ;;  %v4104_v29 = vld [vmem:[#allocation2] sm:$0xf] }
 0x23c   : > { %v4105_v3 = vor.u32 %v4533_v36, %v4104_v29  ;;  %v4336_v29 = vld [vmem:[#allocation2 + $0x40] sm:$0xf] }
 0x23e   : > { %4494 = vmatmul.msk.bf16.vlgmr.msrb.gmra.mxu1 %vm894_vm4, %v4325_v54  ;;  %v4623_v54 = vld [vmem:[#allocation2 + $0x34] sm:$0xf0] }
 0x23f   : > { %4097 = vmatmul.msk.bf16.gmra.mxu2 %vm894_vm4, %v4005_v24  ;;  %4684 = vmatpush.bf16.msra.mxu3 %v5285_v49  ;;  %v5353_v22 = vpop.f32.mrf.mxu0 }
 0x240   : > { %4290 = vmatmul.msk.bf16.gmra.mxu0 %vm894_vm4, %v4205_v51  ;;  %v4626_v51 = vld [vmem:[#allocation2 + $0x54] sm:$0xf] }
 0x241   : > { %v5336_v49 = vpop.f32.mrf.mxu3 }
 0x242   : > { %6005 = vst [vmem:[#allocation3_spill] sm:$0xff] %v5336_v49 }
 0x243   : > { %v1542_v16 = vpop.f32.mrf.mxu1  ;;  %4685 = vmatpush.bf16.msra.mxu3 %v4652_v58  ;;  %v4328_v58 = vld [vmem:[#allocation2 + $0x30] sm:$0xf] }
 0x244   : > { %v4329_v20 = vor.u32 %v4623_v54, %v4328_v58  ;;  %v4627_v58 = vld [vmem:[#allocation2 + $0x54] sm:$0xf0]  ;;  %v4630_v54 = vld [vmem:[#allocation2 + $0x74] sm:$0xf] }
 0x246   : > { %4101 = vmatmul.msk.bf16.gmra.mxu3 %vm894_vm4, %v4037_v46 }
 0x249   : > { %v5344_v6 = vpop.f32.mrf.mxu3 }
 0x24a   : > { %v1631_v21 = vpop.f32.mrf.mxu2  ;;  %6006 = vst [vmem:[#allocation4_spill] sm:$0xff] %v5344_v6 }
 0x24b   : > { %v5326_v11 = vadd.f32 %v1631_v21, %v1542_v16  ;;  %v1544_v33 = vpop.f32.mrf.mxu1  ;;  %v4226_v16 = vld [vmem:[#allocation2 + $0xf8] sm:$0xf0]  ;;  %v4349_v21 = vor.u32 %v4626_v51, %v4346_v13 }
 0x24c   : > { %v4229_v2 = vor.u32 %v4562_v15, %v4226_v16  ;;  %v4362_v51 = vld [vmem:[#allocation2 + $0x78] sm:$0xf0]  ;;  %v4345_v16 = vor.u32 %v4627_v58, %v4344_v44 }
 0x24e   : > { %4495 = vmatmul.msk.bf16.gmra.mxu1 %vm894_vm4, %v4333_v61 }
 0x24f   : > { %4098 = vmatmul.msk.bf16.gmra.mxu2 %vm894_vm4, %v4013_v43  ;;  %v4537_v43 = vld [vmem:[#allocation2 + $0x24] sm:$0xf0] }
 0x250   : > { %4291 = vmatmul.msk.bf16.gmra.mxu0 %vm894_vm4, %v4213_v35  ;;  %v4121_v35 = vor.u32 %v4537_v43, %v4120_v32 }
 0x252   : > { %v1633_v59 = vpop.f32.mrf.mxu2 }
 0x253   : > { %v5334_v1 = vadd.f32 %v1633_v59, %v1544_v33  ;;  %v1547_v40 = vpop.f32.mrf.mxu1 }
 0x256   : > { %1963 = vmatmul.bf16.vlgmr.msrb.gmra.mxu3 %v4105_v3  ;;  %v4625_v3 = vld [vmem:[#allocation2 + $0x44] sm:$0xf0] }
 0x257   : > { %v4337_v38 = vor.u32 %v4625_v3, %v4336_v29  ;;  %v4629_v3 = vld [vmem:[#allocation2 + $0x64] sm:$0xf0] }
 0x25a   : > { %v1636_v45 = vpop.f32.mrf.mxu2 }
 0x25b   : > { %v5338_v48 = vadd.f32 %v1636_v45, %v1547_v40  ;;  %v1549_v17 = vpop.f32.mrf.mxu1  ;;  %v4628_v40 = vld [vmem:[#allocation2 + $0x64] sm:$0xf] }
 0x25c   : > { %v4357_v0 = vor.u32 %v4628_v40, %v4354_v28  ;;  %v4632_v40 = vld [vmem:[#allocation2 + $0x84] sm:$0xf]  ;;  %v4370_v28 = vld [vmem:[#allocation2 + $0x88] sm:$0xf0] }
 0x25e   : > { %4496 = vmatmul.msk.bf16.gmra.mxu1 %vm894_vm4, %v4341_v62  ;;  %v4539_v62 = vld [vmem:[#allocation2 + $0x34] sm:$0xf0] }
 0x25f   : > { %2463 = vmatmul.bf16.vlgmr.msrb.gmra.mxu2 %v4321_v60  ;;  %v4128_v60 = vld [vmem:[#allocation2 + $0x30] sm:$0xf] }
 0x260   : > { %4292 = vmatmul.msk.bf16.gmra.mxu0 %vm894_vm4, %v4221_v26 }
 0x262   : > { %v1638_v9 = vpop.f32.mrf.mxu2 }
 0x263   : > { %v5346_v10 = vadd.f32 %v1638_v9, %v1549_v17  ;;  %v4129_v9 = vor.u32 %v4539_v62, %v4128_v60 }
 0x266   : > { %1968 = vmatmul.bf16.gmra.mxu3 %v4113_v4 }
 0x269   : > { %v5350_v24 = vpop.f32.mrf.mxu3 }
 0x26a   : > { %6007 = vst [vmem:[#allocation5_spill] sm:$0xff] %v5350_v24 }
 0x26b   : > { %v1552_v46 = vpop.f32.mrf.mxu1 }
 0x26e   : > { %4497 = vmatmul.msk.bf16.gmra.mxu1 %vm894_vm4, %v4349_v21 }
 0x26f   : > { %2468 = vmatmul.bf16.gmra.mxu2 %v4329_v20 }
 0x270   : > { %4293 = vmatmul.msk.bf16.gmra.mxu0 %vm894_vm4, %v4229_v2  ;;  %v4136_v2 = vld [vmem:[#allocation2 + $0x40] sm:$0xf] }
 0x271   : > { %v5356_v23 = vpop.f32.mrf.mxu3 }
 0x272   : > { %6008 = vst [vmem:[#allocation6_spill] sm:$0xff] %v5356_v23  ;;  %v1641_v27 = vpop.f32.mrf.mxu2 }
 0x273   : > { %v5358_v61 = vadd.f32 %v1641_v27, %v1552_v46  ;;  %v1554_v33 = vpop.f32.mrf.mxu1  ;;  %v4365_v46 = vor.u32 %v4630_v54, %v4362_v51  ;;  %v4541_v27 = vld [vmem:[#allocation2 + $0x44] sm:$0xf0]  ;;  %v4634_v54 = vld [vmem:[#allocation2 + $0x94] sm:$0xf] }
 0x276   : > { %1973 = vmatmul.bf16.gmra.mxu3 %v4121_v35  ;;  %v4352_v35 = vld [vmem:[#allocation2 + $0x60] sm:$0xf] }
 0x279   : > { %v5360_v36 = vpop.f32.mrf.mxu3 }
 0x27a   : > { %v1643_v59 = vpop.f32.mrf.mxu2 }
 0x27b   : > { %v5362_v45 = vadd.f32 %v1643_v59, %v1554_v33  ;;  %v1557_v57 = vpop.f32.mrf.mxu1  ;;  %v4137_v33 = vor.u32 %v4541_v27, %v4136_v2 }
 0x27e   : > { %4498 = vmatmul.msk.bf16.gmra.mxu1 %vm894_vm4, %v4357_v0  ;;  %v4353_v0 = vor.u32 %v4629_v3, %v4352_v35 }
 0x27f   : > { %2473 = vmatmul.bf16.gmra.mxu2 %v4337_v38 }
 0x281   : > { %v5365_v52 = vpop.f32.mrf.mxu3 }
 0x282   : > { %v1646_v53 = vpop.f32.mrf.mxu2 }
 0x283   : > { %v5367_v26 = vadd.f32 %v1646_v53, %v1557_v57  ;;  %v1559_v17 = vpop.f32.mrf.mxu1  ;;  %v4373_v53 = vor.u32 %v4632_v40, %v4370_v28  ;;  %v4152_v40 = vld [vmem:[#allocation2 + $0x60] sm:$0xf]  ;;  %v4545_v28 = vld [vmem:[#allocation2 + $0x64] sm:$0xf0] }
 0x286   : > { %1978 = vmatmul.bf16.gmra.mxu3 %v4129_v9  ;;  %v4543_v9 = vld [vmem:[#allocation2 + $0x54] sm:$0xf0] }
 0x289   : > { %v5369_v63 = vpop.f32.mrf.mxu3 }
 0x28a   : > { %v1648_v4 = vpop.f32.mrf.mxu2 }
 0x28b   : > { %v5371_v13 = vadd.f32 %v1648_v4, %v1559_v17  ;;  %v1562_v15 = vpop.f32.mrf.mxu1  ;;  %v4144_v17 = vld [vmem:[#allocation2 + $0x50] sm:$0xf] }
 0x28c   : > { %v4145_v58 = vor.u32 %v4543_v9, %v4144_v17 }
 0x28e   : > { %4499 = vmatmul.msk.bf16.gmra.mxu1 %vm894_vm4, %v4365_v46  ;;  %v4631_v46 = vld [vmem:[#allocation2 + $0x74] sm:$0xf0] }
 0x28f   : > { %2478 = vmatmul.bf16.gmra.mxu2 %v4345_v16  ;;  %v4360_v16 = vld [vmem:[#allocation2 + $0x70] sm:$0xf] }
 0x291   : > { %v5374_v20 = vpop.f32.mrf.mxu3 }
 0x292   : > { %v1651_v21 = vpop.f32.mrf.mxu2 }
 0x293   : > { %v5376_v32 = vadd.f32 %v1651_v21, %v1562_v15  ;;  %v1564_v43 = vpop.f32.mrf.mxu1  ;;  %v4378_v21 = vld [vmem:[#allocation2 + $0x98] sm:$0xf0] }
 0x294   : > { %v4381_v35 = vor.u32 %v4634_v54, %v4378_v21  ;;  %v4386_v54 = vld [vmem:[#allocation2 + $0xa8] sm:$0xf0] }
 0x296   : > { %1983 = vmatmul.bf16.gmra.mxu3 %v4137_v33  ;;  %v4361_v33 = vor.u32 %v4631_v46, %v4360_v16 }
 0x299   : > { %v5378_v29 = vpop.f32.mrf.mxu3 }
 0x29a   : > { %v1653_v59 = vpop.f32.mrf.mxu2 }
 0x29b   : > { %v5380_v57 = vadd.f32 %v1653_v59, %v1564_v43  ;;  %v1567_v38 = vpop.f32.mrf.mxu1 }
 0x29e   : > { %4500 = vmatmul.msk.bf16.gmra.mxu1 %vm894_vm4, %v4373_v53 }
 0x29f   : > { %2483 = vmatmul.bf16.gmra.mxu2 %v4353_v0 }
 0x2a1   : > { %v5383_v60 = vpop.f32.mrf.mxu3 }
 0x2a2   : > { %v1656_v62 = vpop.f32.mrf.mxu2 }
 0x2a3   : > { %v5385_v44 = vadd.f32 %v1656_v62, %v1567_v38  ;;  %v1569_v4 = vpop.f32.mrf.mxu1  ;;  %v4153_v62 = vor.u32 %v4545_v28, %v4152_v40  ;;  %v4376_v28 = vld [vmem:[#allocation2 + $0x90] sm:$0xf] }
 0x2a5   : > { %6009 = vst [vmem:[#allocation7_spill] sm:$0xff] %v5385_v44 }
 0x2a6   : > { %1988 = vmatmul.bf16.gmra.mxu3 %v4145_v58  ;;  %v4636_v58 = vld [vmem:[#allocation2 + $0xa4] sm:$0xf] }
 0x2a7   : > { %v4389_v21 = vor.u32 %v4636_v58, %v4386_v54 }
 0x2a9   : > { %v1676_v15 = vpop.f32.mrf.mxu3 }
 0x2aa   : > { %v1658_v51 = vpop.f32.mrf.mxu2  ;;  %v5390_v27 = vadd.f32 %v1676_v15, %v5360_v36  ;;  %v4368_v36 = vld [vmem:[#allocation2 + $0x80] sm:$0xf] }
 0x2ab   : > { %v5387_v2 = vadd.f32 %v1658_v51, %v1569_v4  ;;  %v1572_v43 = vpop.f32.mrf.mxu1  ;;  %v4633_v4 = vld [vmem:[#allocation2 + $0x84] sm:$0xf0] }
 0x2ac   : > { %6011 = vst [vmem:[#allocation9_spill] sm:$0xff] %v5390_v27  ;;  %v4369_v46 = vor.u32 %v4633_v4, %v4368_v36  ;;  %v4638_v36 = vld [vmem:[#allocation2 + $0xb4] sm:$0xf] }
 0x2ad   : > { %6010 = vst [vmem:[#allocation8_spill] sm:$0xff] %v5387_v2 }
 0x2ae   : > { %4501 = vmatmul.msk.bf16.gmra.mxu1 %vm894_vm4, %v4381_v35  ;;  %v4547_v35 = vld [vmem:[#allocation2 + $0x74] sm:$0xf0] }
 0x2af   : > { %2488 = vmatmul.bf16.gmra.mxu2 %v4361_v33  ;;  %v4160_v33 = vld [vmem:[#allocation2 + $0x70] sm:$0xf] }
 0x2b0   : > { %v4161_v40 = vor.u32 %v4547_v35, %v4160_v33 }
 0x2b1   : > { %v1678_v3 = vpop.f32.mrf.mxu3 }
 0x2b2   : > { %v1661_v59 = vpop.f32.mrf.mxu2  ;;  %v5396_v0 = vadd.f32 %v1678_v3, %v5365_v52 }
 0x2b3   : > { %v5393_v38 = vadd.f32 %v1661_v59, %v1572_v43  ;;  %v1574_v53 = vpop.f32.mrf.mxu1 }
 0x2b4   : > { %6013 = vst [vmem:[#allocation11_spill] sm:$0xff] %v5396_v0  ;;  %v1614_v0 = vadd.f32 %v5118_v14, %v5109_v25 }
 0x2b5   : > { %6012 = vst [vmem:[#allocation10_spill] sm:$0xff] %v5393_v38 }
 0x2b6   : > { %1993 = vmatmul.bf16.gmra.mxu3 %v4153_v62  ;;  %v4635_v62 = vld [vmem:[#allocation2 + $0x94] sm:$0xf0] }
 0x2b7   : > { %v4377_v58 = vor.u32 %v4635_v62, %v4376_v28  ;;  %v4384_v62 = vld [vmem:[#allocation2 + $0xa0] sm:$0xf] }
 0x2b9   : > { %v1681_v9 = vpop.f32.mrf.mxu3 }
 0x2ba   : > { %v1663_v17 = vpop.f32.mrf.mxu2  ;;  %v5401_v15 = vadd.f32 %v1681_v9, %v5369_v63 }
 0x2bb   : > { %v5398_v51 = vadd.f32 %v1663_v17, %v1574_v53  ;;  %v2553_v16 = vpop.f32.mrf.mxu1  ;;  %v4394_v17 = vld [vmem:[#allocation2 + $0xb8] sm:$0xf0] }
 0x2bc   : > { %6015 = vst [vmem:[#allocation13_spill] sm:$0xff] %v5401_v15  ;;  %v4397_v54 = vor.u32 %v4638_v36, %v4394_v17  ;;  %v4637_v36 = vld [vmem:[#allocation2 + $0xa4] sm:$0xf0]  ;;  %v4402_v17 = vld [vmem:[#allocation2 + $0xc8] sm:$0xf0] }
 0x2bd   : > { %6014 = vst [vmem:[#allocation12_spill] sm:$0xff] %v5398_v51 }
 0x2be   : > { %4502 = vmatmul.msk.bf16.gmra.mxu1 %vm894_vm4, %v4389_v21  ;;  %v4168_v21 = vld [vmem:[#allocation2 + $0x80] sm:$0xf] }
 0x2bf   : > { %2493 = vmatmul.bf16.gmra.mxu2 %v4369_v46 }
 0x2c1   : > { %v1683_v43 = vpop.f32.mrf.mxu3 }
 0x2c2   : > { %v5404_v52 = vpop.f32.mrf.mxu2  ;;  %v5407_v59 = vadd.f32 %v1683_v43, %v5374_v20  ;;  %v4549_v43 = vld [vmem:[#allocation2 + $0x84] sm:$0xf0] }
 0x2c3   : > { %6016 = vst [vmem:[#allocation14_spill] sm:$0xff] %v5404_v52  ;;  %v2555_v3 = vpop.f32.mrf.mxu1 }
 0x2c4   : > { %6017 = vst [vmem:[#allocation15_spill] sm:$0xff] %v5407_v59  ;;  %v4385_v59 = vor.u32 %v4637_v36, %v4384_v62  ;;  %v4639_v36 = vld [vmem:[#allocation2 + $0xb4] sm:$0xf0] }
 0x2c6   : > { %1998 = vmatmul.bf16.gmra.mxu3 %v4161_v40  ;;  %v4169_v40 = vor.u32 %v4549_v43, %v4168_v21  ;;  %v4176_v21 = vld [vmem:[#allocation2 + $0x90] sm:$0xf]  ;;  %v4551_v43 = vld [vmem:[#allocation2 + $0x94] sm:$0xf0] }
 0x2c9   : > { %v1686_v53 = vpop.f32.mrf.mxu3 }
 0x2ca   : > { %v5409_v63 = vpop.f32.mrf.mxu2  ;;  %v5412_v9 = vadd.f32 %v1686_v53, %v5378_v29  ;;  %v4640_v29 = vld [vmem:[#allocation2 + $0xc4] sm:$0xf] }
 0x2cb   : > { %6018 = vst [vmem:[#allocation16_spill] sm:$0xff] %v5409_v63  ;;  %v2558_v4 = vpop.f32.mrf.mxu1  ;;  %v4643_v63 = vld [vmem:[#allocation2 + $0xd4] sm:$0xf0] }
 0x2cc   : > { %6019 = vst [vmem:[#allocation17_spill] sm:$0xff] %v5412_v9  ;;  %v4405_v9 = vor.u32 %v4640_v29, %v4402_v17  ;;  %v4642_v29 = vld [vmem:[#allocation2 + $0xd4] sm:$0xf]  ;;  %v4410_v17 = vld [vmem:[#allocation2 + $0xd8] sm:$0xf0] }
 0x2cd   : > { %v4413_v25 = vor.u32 %v4642_v29, %v4410_v17 }
 0x2ce   : > { %4503 = vmatmul.msk.bf16.gmra.mxu1 %vm894_vm4, %v4397_v54 }
 0x2cf   : > { %2498 = vmatmul.bf16.gmra.mxu2 %v4377_v58 }
 0x2d1   : > { %v1688_v46 = vpop.f32.mrf.mxu3 }
 0x2d2   : > { %v5415_v20 = vpop.f32.mrf.mxu2  ;;  %v5418_v33 = vadd.f32 %v1688_v46, %v5383_v60 }
 0x2d3   : > { %6020 = vst [vmem:[#allocation18_spill] sm:$0xff] %v5415_v20  ;;  %v5420_v35 = vpop.f32.mrf.mxu1 }
 0x2d4   : > { %6021 = vst [vmem:[#allocation19_spill] sm:$0xff] %v5418_v33 }
 0x2d6   : > { %2003 = vmatmul.bf16.gmra.mxu3 %v4169_v40 }
 0x2d9   : > { %v1964_v28 = vpop.f32.mrf.mxu3 }
 0x2da   : > { %v5422_v53 = vpop.f32.mrf.mxu2  ;;  %v1965_v58 = vadd.f32 %v1964_v28, %v5107_v5  ;;  %v4177_v28 = vor.u32 %v4551_v43, %v4176_v21 }
 0x2db   : > { %6022 = vst [vmem:[#allocation20_spill] sm:$0xff] %v5422_v53  ;;  %v5425_v54 = vpop.f32.mrf.mxu1 }
 0x2dc   : > { %v2054_v40 = vadd.f32 %v5292_v42, %v1965_v58 }
 0x2de   : > { %4504 = vmatmul.msk.bf16.gmra.mxu1 %vm894_vm4, %v4405_v9  ;;  %v4392_v9 = vld [vmem:[#allocation2 + $0xb0] sm:$0xf] }
 0x2df   : > { %2503 = vmatmul.bf16.gmra.mxu2 %v4385_v59  ;;  %v4393_v23 = vor.u32 %v4639_v36, %v4392_v9  ;;  %v5445_v9 = vld [vmem:[#allocation2 + $0xf4] sm:$0xf] }
 0x2e1   : > { %v1966_v60 = vpop.f32.mrf.mxu3 }
 0x2e2   : > { %v2464_v46 = vpop.f32.mrf.mxu2  ;;  %v1967_v27 = vadd.f32 %v1966_v60, %v1614_v0  ;;  %v4553_v60 = vld [vmem:[#allocation2 + $0xa4] sm:$0xf0] }
 0x2e3   : > { %v2554_v33 = vadd.f32 %v2553_v16, %v2464_v46  ;;  %v5429_v15 = vpop.f32.mrf.mxu1 }
 0x2e4   : > { %v2056_v53 = vadd.f32 %v5303_v8, %v1967_v27  ;;  %v1619_v27 = vadd.f32 %v5152_v34, %v5135_v41 }
 0x2e5   : > { %v2633_v5 = vadd.f32 %v2554_v33, %v2054_v40  ;;  %v4184_v33 = vld [vmem:[#allocation2 + $0xa0] sm:$0xf] }
 0x2e6   : > { %2008 = vmatmul.bf16.gmra.mxu3 %v4177_v28 }
 0x2e9   : > { %v1969_v59 = vpop.f32.mrf.mxu3 }
 0x2ea   : > { %v2466_v62 = vpop.f32.mrf.mxu2  ;;  %v1970_v42 = vadd.f32 %v1969_v59, %v5131_v30  ;;  %v4185_v30 = vor.u32 %v4553_v60, %v4184_v33  ;;  %v5454_v60 = vld [vmem:[#allocation2 + $0xc0] sm:$0xf] }
 0x2eb   : > { %v2556_v16 = vadd.f32 %v2555_v3, %v2466_v62  ;;  %v5435_v58 = vpop.f32.mrf.mxu1  ;;  %v4400_v3 = vld [vmem:[#allocation2 + $0xc0] sm:$0xf]  ;;  %v4644_v62 = vld [vmem:[#allocation2 + $0xe4] sm:$0xf] }
 0x2ec   : > { %v2059_v21 = vadd.f32 %v5313_v18, %v1970_v42  ;;  %v4418_v18 = vld [vmem:[#allocation2 + $0xe8] sm:$0xf0] }
 0x2ed   : > { %v2634_v46 = vadd.f32 %v2556_v16, %v2056_v53  ;;  %v4641_v53 = vld [vmem:[#allocation2 + $0xc4] sm:$0xf0]  ;;  %v4421_v33 = vor.u32 %v4644_v62, %v4418_v18 }
 0x2ee   : > { %4505 = vmatmul.msk.bf16.gmra.mxu1 %vm894_vm4, %v4413_v25  ;;  %v5448_v25 = vld [vmem:[#allocation2 + $0xf8] sm:$0xf0] }
 0x2ef   : > { %2508 = vmatmul.bf16.gmra.mxu2 %v4393_v23  ;;  %v2665_v23 = vsel %vm894_vm4, %v2633_v5, -inf }
 0x2f1   : > { %v1971_v14 = vpop.f32.mrf.mxu3 }
 0x2f2   : > { %v2469_v0 = vpop.f32.mrf.mxu2  ;;  %v1972_v29 = vadd.f32 %v1971_v14, %v1619_v27 }
 0x2f3   : > { %v2559_v43 = vadd.f32 %v2558_v4, %v2469_v0  ;;  %v5439_v40 = vpop.f32.mrf.mxu1  ;;  %v4401_v4 = vor.u32 %v4641_v53, %v4400_v3  ;;  %v5462_v3 = vld [vmem:[#allocation2 + $0xe0] sm:$0xf] }
 0x2f5   : > { %v2635_v8 = vadd.f32 %v2559_v43, %v2059_v21  ;;  %v5456_v21 = vld [vmem:[#allocation2 + $0xc4] sm:$0xf0]  ;;  %v2061_v43 = vadd.f32 %v5323_v19, %v1972_v29  ;;  %v5470_v29 = vpop.f32.mrf.mxu0 }
 0x2f6   : > { %2013 = vmatmul.bf16.gmra.mxu3 %v4185_v30 }
 0x2f7   : > { %v2666_v28 = vsel %vm894_vm4, %v2635_v8, -inf }
 0x2f8   : > { %v2667_v59 = vmax.f32 %v2665_v23, %v2666_v28 }
 0x2f9   : > { %v1974_v34 = vpop.f32.mrf.mxu3 }
 0x2fa   : > { %v2729_v36 = vrot.slane %v2667_v59, 2  ;;  %v2730_v17 = vrot.slane %v2667_v59, 4  ;;  %v2731_v42 = vrot.slane %v2667_v59, 6  ;;  %v2826_v41 = vsel %vm2825_vm11, %v2667_v59, -inf  ;;  %v2471_v16 = vpop.f32.mrf.mxu2  ;;  %v5466_v59 = vld [vmem:[#allocation2 + $0xe4] sm:$0xf0] }
 0x2fb   : > { %v2827_v5 = vrot.slane %v2826_v41, 4  ;;  %v5451_v0 = vadd.f32 %v1974_v34, %v5167_v56  ;;  %v2561_v14 = vadd.f32 %v5420_v35, %v2471_v16  ;;  %v5464_v35 = vpop.f32.mrf.mxu1  ;;  %v4555_v34 = vld [vmem:[#allocation2 + $0xb4] sm:$0xf0]  ;;  %v2668_v16 = vsel %vm894_vm4, %v2634_v46, -inf }
 0x2fc   : > { %v2833_v8 = vsel %vm2825_vm11, %v2729_v36, -inf  ;;  %v2840_v30 = vsel %vm2825_vm11, %v2730_v17, -inf  ;;  %v2847_v27 = vsel %vm2825_vm11, %v2731_v42, -inf }
 0x2fd   : > { %v2828_v53 = vmax.f32 %v2826_v41, %v2827_v5  ;;  %v2834_v56 = vrot.slane %v2833_v8, 4  ;;  %v2841_v23 = vrot.slane %v2840_v30, 4  ;;  %v2848_v28 = vrot.slane %v2847_v27, 4  ;;  %v4192_v41 = vld [vmem:[#allocation2 + $0xb0] sm:$0xf] }
 0x2fe   : > { %v2636_v62 = vadd.f32 %v2561_v14, %v2061_v43  ;;  %4506 = vmatmul.msk.bf16.gmra.mxu1 %vm894_vm4, %v4421_v33  ;;  %v5483_v33 = vadd.f32 %v5319_v50, %v5307_v7  ;;  %v4408_v43 = vld [vmem:[#allocation2 + $0xd0] sm:$0xf]  ;;  %v5489_v50 = vld [vmem:[%s5997_s4] ss:$0 sm:$0xff] }
 0x2ff   : > { %v2829_v18 = vrot.slane %v2828_v53, 2  ;;  %v2835_v36 = vmax.f32 %v2833_v8, %v2834_v56  ;;  %v2842_v17 = vmax.f32 %v2840_v30, %v2841_v23  ;;  %v2849_v42 = vmax.f32 %v2847_v27, %v2848_v28  ;;  %2513 = vmatmul.bf16.gmra.mxu2 %v4401_v4 }
 0x300   : > { %v2669_v5 = vsel %vm894_vm4, %v2636_v62, -inf  ;;  %v1624_v4 = vadd.f32 %v5185_v31, %v5181_v47  ;;  %v4193_v23 = vor.u32 %v4555_v34, %v4192_v41 }
 0x301   : > { %v2830_v19 = vmax.f32 %v2828_v53, %v2829_v18  ;;  %v2836_v51 = vrot.slane %v2835_v36, 2  ;;  %v2843_v8 = vrot.slane %v2842_v17, 2  ;;  %v2850_v30 = vrot.slane %v2849_v42, 2  ;;  %v1976_v27 = vpop.f32.mrf.mxu3 }
 0x302   : > { %v2670_v46 = vmax.f32 %v2668_v16, %v2669_v5  ;;  %v2474_v56 = vpop.f32.mrf.mxu2 }
 0x303   : > { %v2831_v28 = vrot.slane %v2830_v19, 1  ;;  %v2837_v62 = vmax.f32 %v2835_v36, %v2836_v51  ;;  %v2844_v14 = vmax.f32 %v2842_v17, %v2843_v8  ;;  %v2851_v38 = vmax.f32 %v2849_v42, %v2850_v30  ;;  %v5494_v16 = vpop.f32.mrf.mxu1 }
 0x304   : > { %v2732_v53 = vrot.slane %v2670_v46, 2  ;;  %v2733_v18 = vrot.slane %v2670_v46, 4  ;;  %v2734_v20 = vrot.slane %v2670_v46, 6  ;;  %v2854_v24 = vsel %vm2825_vm11, %v2670_v46, -inf }
 0x305   : > { %v2832_v47 = vmax.f32 %v2830_v19, %v2831_v28  ;;  %v2838_v31 = vrot.slane %v2837_v62, 1  ;;  %v2845_v6 = vrot.slane %v2844_v14, 1  ;;  %v2852_v7 = vrot.slane %v2851_v38, 1  ;;  %v5496_v28 = vpop.f32.mrf.mxu0 }
 0x306   : > { %v2855_v41 = vrot.slane %v2854_v24, 4  ;;  %v2861_v51 = vsel %vm2825_vm11, %v2732_v53, -inf  ;;  %v2868_v36 = vsel %vm2825_vm11, %v2733_v18, -inf  ;;  %v2875_v17 = vsel %vm2825_vm11, %v2734_v20, -inf  ;;  %2018 = vmatmul.bf16.gmra.mxu3 %v4193_v23 }
 0x307   : > { %v2839_v42 = vmax.f32 %v2837_v62, %v2838_v31  ;;  %v2846_v34 = vmax.f32 %v2844_v14, %v2845_v6  ;;  %v4409_v19 = vor.u32 %v4643_v63, %v4408_v43  ;;  %v2862_v8 = vrot.slane %v2861_v51, 4 }
 0x308   : > { %v2856_v5 = vmax.f32 %v2854_v24, %v2855_v41  ;;  %v2869_v30 = vrot.slane %v2868_v36, 4  ;;  %v2876_v46 = vrot.slane %v2875_v17, 4  ;;  %v2853_v52 = vmax.f32 %v2851_v38, %v2852_v7 }
 0x309   : > { %v3278_v53 = vadd.f32 %v5489_v50, %v2832_v47  ;;  %v3279_v18 = vadd.f32 %v5489_v50, %v2839_v42  ;;  %v3280_v20 = vadd.f32 %v5489_v50, %v2846_v34  ;;  %v2863_v6 = vmax.f32 %v2861_v51, %v2862_v8  ;;  %v1979_v49 = vpop.f32.mrf.mxu3 }
 0x30a   : > { %v2857_v62 = vrot.slane %v2856_v5, 2  ;;  %v2870_v14 = vmax.f32 %v2868_v36, %v2869_v30  ;;  %v2877_v31 = vmax.f32 %v2875_v17, %v2876_v46  ;;  %v2476_v23 = vpop.f32.mrf.mxu2  ;;  %v1977_v43 = vadd.f32 %v1976_v27, %v1624_v4 }
 0x30b   : > { %v3343_v63 = vmax.f32 %v3279_v18, 0.0  ;;  %v3344_v24 = vmax.f32 %v3280_v20, 0.0  ;;  %v2864_v2 = vrot.slane %v2863_v6, 2  ;;  %v3281_v47 = vadd.f32 %v5489_v50, %v2853_v52 }
 0x30c   : > { %v2858_v41 = vmax.f32 %v2856_v5, %v2857_v62  ;;  %v2871_v38 = vrot.slane %v2870_v14, 2  ;;  %v2878_v7 = vrot.slane %v2877_v31, 2  ;;  %v3342_v42 = vmax.f32 %v3278_v53, 0.0 }
 0x30d   : > { %v3470_v44 = vrot.slane %v3343_v63, 7  ;;  %v2064_v51 = vadd.f32 %v5332_v37, %v5451_v0  ;;  %v2865_v17 = vmax.f32 %v2863_v6, %v2864_v2  ;;  %v3473_v30 = vrot.slane %v3344_v24, 6  ;;  %v5512_v2 = vpop.f32.mrf.mxu0 }
 0x30e   : > { %v2859_v36 = vrot.slane %v2858_v41, 1  ;;  %v2872_v34 = vmax.f32 %v2870_v14, %v2871_v38  ;;  %v2879_v8 = vmax.f32 %v2877_v31, %v2878_v7  ;;  %v2564_v46 = vadd.f32 %v5425_v54, %v2474_v56 }
 0x30f   : > { %v1980_v4 = vadd.f32 %v1979_v49, %v5206_v39  ;;  %v2566_v27 = vadd.f32 %v5429_v15, %v2476_v23  ;;  %2518 = vmatmul.bf16.gmra.mxu2 %v4409_v19  ;;  %v2866_v18 = vrot.slane %v2865_v17, 1  ;;  %v2066_v53 = vadd.f32 %v5340_v55, %v1977_v43  ;;  %v5515_v49 = vpop.f32.mrf.mxu1 }
 0x310   : > { %v2860_v5 = vmax.f32 %v2858_v41, %v2859_v36  ;;  %v2873_v52 = vrot.slane %v2872_v34, 1  ;;  %v6023_v37 = vor.u32 %v5445_v9, %v5448_v25  ;;  %v3345_v0 = vmax.f32 %v3281_v47, 0.0 }
 0x311   : > { %v3472_v54 = vsel %vm3471_vm12, %v3470_v44, %v3342_v42  ;;  %v2880_v56 = vrot.slane %v2879_v8, 1  ;;  %v2637_v39 = vadd.f32 %v2564_v46, %v2064_v51  ;;  %v2867_v15 = vmax.f32 %v2865_v17, %v2866_v18  ;;  %v1981_v55 = vpop.f32.mrf.mxu3 }
 0x312   : > { %4507 = vmatmul.msk.bf16.gmra.mxu1 %vm894_vm4, %v6023_v37  ;;  %v2874_v19 = vmax.f32 %v2872_v34, %v2873_v52  ;;  %v3282_v20 = vadd.f32 %v5489_v50, %v2860_v5  ;;  %v5518_v62 = vadd.f32 %v2566_v27, %v2066_v53  ;;  %v2479_v6 = vpop.f32.mrf.mxu2  ;;  %v2069_v25 = vadd.f32 %v5348_v12, %v1980_v4 }
 0x313   : > { %v2881_v9 = vmax.f32 %v2879_v8, %v2880_v56  ;;  %v2569_v14 = vadd.f32 %v5435_v58, %v2479_v6  ;;  %v3475_v44 = vsel %vm3474_vm13, %v3473_v30, %v3472_v54  ;;  %v3283_v31 = vadd.f32 %v5489_v50, %v2867_v15  ;;  %v4648_v56 = vld [vmem:[#allocation2 + $0x104] sm:$0xf] }
 0x314   : > { %v3284_v23 = vadd.f32 %v5489_v50, %v2874_v19  ;;  %v3346_v63 = vmax.f32 %v3282_v20, 0.0  ;;  %v3476_v24 = vrot.slane %v3345_v0, 5  ;;  %v1982_v41 = vadd.f32 %v1981_v55, %v5483_v33 }
 0x315   : > { %v3285_v43 = vadd.f32 %v5489_v50, %v2881_v9  ;;  %v2639_v38 = vadd.f32 %v2569_v14, %v2069_v25  ;;  %v3347_v7 = vmax.f32 %v3283_v31, 0.0  ;;  %v2671_v51 = vsel %vm894_vm4, %v2637_v39, -inf  ;;  %v5536_v0 = vpop.f32.mrf.mxu0  ;;  %v4434_v39 = vld [vmem:[#allocation2 + $0x108] sm:$0xf0] }
 0x316   : > { %v3348_v47 = vmax.f32 %v3284_v23, 0.0  ;;  %v3479_v42 = vrot.slane %v3346_v63, 4  ;;  %v3478_v12 = vsel %vm3477_vm14, %v3476_v24, %v3475_v44  ;;  %v6024_v17 = vor.u32 %v5456_v21, %v5454_v60 }
 0x317   : > { %v3349_v58 = vmax.f32 %v3285_v43, 0.0  ;;  %v2672_v36 = vsel %vm894_vm4, %v2639_v38, -inf  ;;  %v3482_v34 = vrot.slane %v3347_v7, 3  ;;  %v2071_v46 = vadd.f32 %v5353_v22, %v1982_v41  ;;  %v5538_v21 = vpop.f32.mrf.mxu1  ;;  %v4208_v38 = vld [vmem:[#allocation2 + $0xd0] sm:$0xf] }
 0x318   : > { %2023 = vmatmul.bf16.gmra.mxu3 %v6024_v17  ;;  %v3485_v8 = vrot.slane %v3348_v47, 2  ;;  %v2673_v30 = vmax.f32 %v2671_v51, %v2672_v36  ;;  %v3481_v33 = vsel %vm3480_vm15, %v3479_v42, %v3478_v12  ;;  %v4437_v31 = vor.u32 %v4648_v56, %v4434_v39  ;;  %v4559_v7 = vld [vmem:[#allocation2 + $0xd4] sm:$0xf0] }
 0x319   : > { %v3488_v4 = vrot.slane %v3349_v58, 1  ;;  %v1984_v53 = vpop.f32.mrf.mxu3  ;;  %v3484_v15 = vsel %vm3483_vm0, %v3482_v34, %v3481_v33  ;;  %v6025_v41 = vor.u32 %v5466_v59, %v5462_v3  ;;  %v2674_v47 = vsel %vm894_vm4, %v5518_v62, -inf }
 0x31a   : > { %v2735_v27 = vrot.slane %v2673_v30, 2  ;;  %v2736_v5 = vrot.slane %v2673_v30, 4  ;;  %v2737_v18 = vrot.slane %v2673_v30, 6  ;;  %v2882_v52 = vsel %vm2825_vm11, %v2673_v30, -inf  ;;  %v2481_v37 = vpop.f32.mrf.mxu2 }
 0x31b   : > { %v2883_v60 = vrot.slane %v2882_v52, 4  ;;  %v5541_v54 = vadd.f32 %v1984_v53, %v5326_v11  ;;  %v2571_v22 = vadd.f32 %v5439_v40, %v2481_v37  ;;  %v3487_v6 = vsel %vm3486_vm1, %v3485_v8, %v3484_v15 }
 0x31c   : > { %v2889_v19 = vsel %vm2825_vm11, %v2735_v27, -inf  ;;  %v2896_v20 = vsel %vm2825_vm11, %v2736_v5, -inf  ;;  %v2903_v55 = vsel %vm2825_vm11, %v2737_v18, -inf  ;;  %v5550_v40 = vsel %vm3489_vm2, %v3488_v4, %v3487_v6  ;;  %v4424_v6 = vld [vmem:[#allocation2 + $0xf0] sm:$0xf] }
 0x31d   : > { %v2884_v9 = vmax.f32 %v2882_v52, %v2883_v60  ;;  %v2890_v25 = vrot.slane %v2889_v19, 4  ;;  %v2897_v14 = vrot.slane %v2896_v20, 4  ;;  %v2904_v44 = vrot.slane %v2903_v55, 4  ;;  %v5560_v18 = vpop.f32.mrf.mxu0 }
 0x31e   : > { %v2640_v11 = vadd.f32 %v2571_v22, %v2071_v46  ;;  %v4209_v30 = vor.u32 %v4559_v7, %v4208_v38 }
 0x31f   : > { %v2885_v23 = vrot.slane %v2884_v9, 2  ;;  %v2891_v63 = vmax.f32 %v2889_v19, %v2890_v25  ;;  %v2898_v24 = vmax.f32 %v2896_v20, %v2897_v14  ;;  %v2905_v43 = vmax.f32 %v2903_v55, %v2904_v44  ;;  %2523 = vmatmul.bf16.gmra.mxu2 %v6025_v41  ;;  %v5562_v22 = vpop.f32.mrf.mxu1 }
 0x320   : > { %v2675_v42 = vsel %vm894_vm4, %v2640_v11, -inf  ;;  %v4647_v11 = vld [vmem:[#allocation2 + $0xf4] sm:$0xf0] }
 0x321   : > { %v2886_v12 = vmax.f32 %v2884_v9, %v2885_v23  ;;  %v2892_v58 = vrot.slane %v2891_v63, 2  ;;  %v2899_v51 = vrot.slane %v2898_v24, 2  ;;  %v2906_v36 = vrot.slane %v2905_v43, 2  ;;  %v1986_v34 = vpop.f32.mrf.mxu3 }
 0x322   : > { %4508 = vmatmul.msk.bf16.gmra.mxu1 %vm894_vm4, %v4437_v31  ;;  %v2676_v17 = vmax.f32 %v2674_v47, %v2675_v42  ;;  %v2484_v8 = vpop.f32.mrf.mxu2 }
 0x323   : > { %v2887_v33 = vrot.slane %v2886_v12, 1  ;;  %v2893_v3 = vmax.f32 %v2891_v63, %v2892_v58  ;;  %v2900_v59 = vmax.f32 %v2898_v24, %v2899_v51  ;;  %v2907_v46 = vmax.f32 %v2905_v43, %v2906_v36 }
 0x324   : > { %v2738_v4 = vrot.slane %v2676_v17, 2  ;;  %v2739_v27 = vrot.slane %v2676_v17, 4  ;;  %v2740_v5 = vrot.slane %v2676_v17, 6  ;;  %v2910_v62 = vsel %vm2825_vm11, %v2676_v17, -inf }
 0x325   : > { %v2888_v52 = vmax.f32 %v2886_v12, %v2887_v33  ;;  %v2894_v53 = vrot.slane %v2893_v3, 1  ;;  %v2901_v37 = vrot.slane %v2900_v59, 1  ;;  %v2908_v60 = vrot.slane %v2907_v46, 1 }
 0x326   : > { %v2911_v56 = vrot.slane %v2910_v62, 4  ;;  %v2917_v39 = vsel %vm2825_vm11, %v2738_v4, -inf  ;;  %v2924_v15 = vsel %vm2825_vm11, %v2739_v27, -inf  ;;  %v2931_v19 = vsel %vm2825_vm11, %v2740_v5, -inf }
 0x327   : > { %v2895_v20 = vmax.f32 %v2893_v3, %v2894_v53  ;;  %v2902_v55 = vmax.f32 %v2900_v59, %v2901_v37  ;;  %v2918_v25 = vrot.slane %v2917_v39, 4  ;;  %v2925_v14 = vrot.slane %v2924_v15, 4  ;;  %v5574_v37 = vpop.f32.mrf.mxu0 }
 0x328   : > { %2028 = vmatmul.bf16.gmra.mxu3 %v4209_v30  ;;  %v2912_v9 = vmax.f32 %v2910_v62, %v2911_v56  ;;  %v2932_v44 = vrot.slane %v2931_v19, 4  ;;  %v2909_v31 = vmax.f32 %v2907_v46, %v2908_v60  ;;  %v3286_v23 = vadd.f32 %v5489_v50, %v2888_v52 }
 0x329   : > { %v3287_v63 = vadd.f32 %v5489_v50, %v2895_v20  ;;  %v3288_v24 = vadd.f32 %v5489_v50, %v2902_v55  ;;  %v2919_v41 = vmax.f32 %v2917_v39, %v2918_v25  ;;  %v2926_v38 = vmax.f32 %v2924_v15, %v2925_v14  ;;  %v1989_v47 = vpop.f32.mrf.mxu3 }
 0x32a   : > { %v2913_v43 = vrot.slane %v2912_v9, 2  ;;  %v2933_v7 = vmax.f32 %v2931_v19, %v2932_v44  ;;  %v2486_v42 = vpop.f32.mrf.mxu2  ;;  %v1987_v51 = vadd.f32 %v1986_v34, %v5334_v1  ;;  %v4425_v36 = vor.u32 %v4647_v11, %v4424_v6  ;;  %v5577_v34 = vpop.f32.mrf.mxu1  ;;  %v4561_v11 = vld [vmem:[#allocation2 + $0xe4] sm:$0xf0] }
 0x32b   : > { %v3351_v12 = vmax.f32 %v3287_v63, 0.0  ;;  %v3352_v58 = vmax.f32 %v3288_v24, 0.0  ;;  %v2920_v30 = vrot.slane %v2919_v41, 2  ;;  %v2927_v33 = vrot.slane %v2926_v38, 2 }
 0x32c   : > { %v2914_v17 = vmax.f32 %v2912_v9, %v2913_v43  ;;  %v2934_v3 = vrot.slane %v2933_v7, 2  ;;  %v3289_v59 = vadd.f32 %v5489_v50, %v2909_v31  ;;  %v3350_v46 = vmax.f32 %v3286_v23, 0.0 }
 0x32d   : > { %v3491_v4 = vrot.slane %v3351_v12, 7  ;;  %v2074_v27 = vadd.f32 %v5470_v29, %v5541_v54  ;;  %v2921_v62 = vmax.f32 %v2919_v41, %v2920_v30  ;;  %v2928_v52 = vmax.f32 %v2926_v38, %v2927_v33 }
 0x32e   : > { %v2915_v5 = vrot.slane %v2914_v17, 1  ;;  %v2935_v53 = vmax.f32 %v2933_v7, %v2934_v3  ;;  %v3493_v60 = vrot.slane %v3352_v58, 6  ;;  %v2574_v1 = vadd.f32 %v5464_v35, %v2484_v8  ;;  %v4432_v58 = vld [vmem:[#allocation2 + $0x100] sm:$0xf] }
 0x32f   : > { %v1990_v56 = vadd.f32 %v1989_v47, %v5338_v48  ;;  %v2576_v39 = vadd.f32 %v5494_v16, %v2486_v42  ;;  %2528 = vmatmul.bf16.gmra.mxu2 %v4425_v36  ;;  %v2922_v19 = vrot.slane %v2921_v62, 1  ;;  %v2929_v20 = vrot.slane %v2928_v52, 1  ;;  %v4216_v16 = vld [vmem:[#allocation2 + $0xe0] sm:$0xf] }
 0x330   : > { %v2916_v15 = vmax.f32 %v2914_v17, %v2915_v5  ;;  %v2076_v29 = vadd.f32 %v5496_v28, %v1987_v51  ;;  %v3353_v54 = vmax.f32 %v3289_v59, 0.0  ;;  %v3492_v55 = vsel %vm3471_vm12, %v3491_v4, %v3350_v46  ;;  %v4649_v17 = vld [vmem:[#allocation2 + $0x104] sm:$0xf0] }
 0x331   : > { %v2936_v6 = vrot.slane %v2935_v53, 1  ;;  %v2641_v9 = vadd.f32 %v2574_v1, %v2074_v27  ;;  %v2923_v25 = vmax.f32 %v2921_v62, %v2922_v19  ;;  %v2930_v14 = vmax.f32 %v2928_v52, %v2929_v20  ;;  %v1991_v48 = vpop.f32.mrf.mxu3 }
 0x332   : > { %v3290_v35 = vadd.f32 %v5489_v50, %v2916_v15  ;;  %v5584_v8 = vadd.f32 %v2576_v39, %v2076_v29  ;;  %v2489_v44 = vpop.f32.mrf.mxu2  ;;  %v2079_v23 = vadd.f32 %v5512_v2, %v1990_v56  ;;  %v1992_v28 = vadd.f32 %v1991_v48, %v5346_v10  ;;  %v5593_v10 = vpop.f32.mrf.mxu0 }
 0x333   : > { %v2937_v31 = vmax.f32 %v2935_v53, %v2936_v6  ;;  %v2579_v63 = vadd.f32 %v5515_v49, %v2489_v44  ;;  %v3494_v24 = vsel %vm3474_vm13, %v3493_v60, %v3492_v55  ;;  %v3291_v43 = vadd.f32 %v5489_v50, %v2923_v25  ;;  %v5599_v62 = vpop.f32.mrf.mxu1 }
 0x334   : > { %v3292_v41 = vadd.f32 %v5489_v50, %v2930_v14  ;;  %v3354_v38 = vmax.f32 %v3290_v35, 0.0  ;;  %v3495_v7 = vrot.slane %v3353_v54, 5  ;;  %v4217_v12 = vor.u32 %v4561_v11, %v4216_v16  ;;  %v4650_v11 = vld [vmem:[#allocation2 + $0x114] sm:$0xf] }
 0x335   : > { %v3293_v47 = vadd.f32 %v5489_v50, %v2937_v31  ;;  %v2643_v42 = vadd.f32 %v2579_v63, %v2079_v23  ;;  %v3355_v51 = vmax.f32 %v3291_v43, 0.0  ;;  %v2677_v33 = vsel %vm894_vm4, %v2641_v9, -inf  ;;  %v4563_v43 = vld [vmem:[#allocation2 + $0xf4] sm:$0xf0] }
 0x336   : > { %v3356_v36 = vmax.f32 %v3292_v41, 0.0  ;;  %v3497_v2 = vrot.slane %v3354_v38, 4  ;;  %v3496_v49 = vsel %vm3477_vm14, %v3495_v7, %v3494_v24  ;;  %v2081_v52 = vadd.f32 %v5536_v0, %v1992_v28  ;;  %v4224_v24 = vld [vmem:[#allocation2 + $0xf0] sm:$0xf] }
 0x337   : > { %v3357_v30 = vmax.f32 %v3293_v47, 0.0  ;;  %v2678_v3 = vsel %vm894_vm4, %v2643_v42, -inf  ;;  %v3499_v46 = vrot.slane %v3355_v51, 3  ;;  %v4433_v53 = vor.u32 %v4649_v17, %v4432_v58 }
 0x338   : > { %2033 = vmatmul.bf16.gmra.mxu3 %v4217_v12  ;;  %v3498_v59 = vsel %vm3480_vm15, %v3497_v2, %v3496_v49  ;;  %v3501_v4 = vrot.slane %v3356_v36, 2  ;;  %v2679_v27 = vmax.f32 %v2677_v33, %v2678_v3  ;;  %v2680_v41 = vsel %vm894_vm4, %v5584_v8, -inf }
 0x339   : > { %v3503_v5 = vrot.slane %v3357_v30, 1  ;;  %v1994_v15 = vpop.f32.mrf.mxu3  ;;  %v3500_v55 = vsel %vm3483_vm0, %v3499_v46, %v3498_v59  ;;  %v4225_v49 = vor.u32 %v4563_v43, %v4224_v24 }
 0x33a   : > { %v2741_v60 = vrot.slane %v2679_v27, 2  ;;  %v2742_v1 = vrot.slane %v2679_v27, 4  ;;  %v2743_v56 = vrot.slane %v2679_v27, 6  ;;  %v2938_v39 = vsel %vm2825_vm11, %v2679_v27, -inf  ;;  %v2491_v19 = vpop.f32.mrf.mxu2  ;;  %v5618_v47 = vpop.f32.mrf.mxu0 }
 0x33b   : > { %v2939_v20 = vrot.slane %v2938_v39, 4  ;;  %v5604_v29 = vadd.f32 %v1994_v15, %v5358_v61  ;;  %v2581_v54 = vadd.f32 %v5538_v21, %v2491_v19  ;;  %v3502_v25 = vsel %vm3486_vm1, %v3501_v4, %v3500_v55  ;;  %v4442_v61 = vld [vmem:[#allocation2 + $0x118] sm:$0xf0]  ;;  %v5621_v8 = vpop.f32.mrf.mxu1 }
 0x33c   : > { %v2945_v6 = vsel %vm2825_vm11, %v2741_v60, -inf  ;;  %v2952_v0 = vsel %vm2825_vm11, %v2742_v1, -inf  ;;  %v2959_v9 = vsel %vm2825_vm11, %v2743_v56, -inf  ;;  %v5613_v31 = vsel %vm3489_vm2, %v3503_v5, %v3502_v25 }
 0x33d   : > { %v2940_v14 = vmax.f32 %v2938_v39, %v2939_v20  ;;  %v2946_v35 = vrot.slane %v2945_v6, 4  ;;  %v2953_v48 = vrot.slane %v2952_v0, 4  ;;  %v2960_v44 = vrot.slane %v2959_v9, 4 }
 0x33e   : > { %v2644_v16 = vadd.f32 %v2581_v54, %v2081_v52  ;;  %v4445_v7 = vor.u32 %v4650_v11, %v4442_v61  ;;  %v2084_v43 = vadd.f32 %v5560_v18, %v5604_v29 }
 0x33f   : > { %v2941_v21 = vrot.slane %v2940_v14, 2  ;;  %v2947_v23 = vmax.f32 %v2945_v6, %v2946_v35  ;;  %v2954_v28 = vmax.f32 %v2952_v0, %v2953_v48  ;;  %v2961_v63 = vmax.f32 %v2959_v9, %v2960_v44  ;;  %2533 = vmatmul.bf16.gmra.mxu2 %v4433_v53 }
 0x340   : > { %v2681_v38 = vsel %vm894_vm4, %v2644_v16, -inf  ;;  %4509 = vmatmul.msk.bf16.gmra.mxu1 %vm894_vm4, %v4445_v7 }
 0x341   : > { %v2942_v42 = vmax.f32 %v2940_v14, %v2941_v21  ;;  %v2948_v12 = vrot.slane %v2947_v23, 2  ;;  %v2955_v58 = vrot.slane %v2954_v28, 2  ;;  %v2962_v51 = vrot.slane %v2961_v63, 2  ;;  %v1996_v2 = vpop.f32.mrf.mxu3 }
 0x342   : > { %v2682_v36 = vmax.f32 %v2680_v41, %v2681_v38  ;;  %v2494_v17 = vpop.f32.mrf.mxu2  ;;  %v1997_v41 = vadd.f32 %v1996_v2, %v5362_v45  ;;  %v4440_v2 = vld [vmem:[#allocation2 + $0x110] sm:$0xf] }
 0x343   : > { %v2943_v30 = vrot.slane %v2942_v42, 1  ;;  %v2949_v33 = vmax.f32 %v2947_v23, %v2948_v12  ;;  %v2956_v3 = vmax.f32 %v2954_v28, %v2955_v58  ;;  %v2963_v59 = vmax.f32 %v2961_v63, %v2962_v51  ;;  %v5630_v28 = vpop.f32.mrf.mxu0 }
 0x344   : > { %v2744_v46 = vrot.slane %v2682_v36, 2  ;;  %v2745_v4 = vrot.slane %v2682_v36, 4  ;;  %v2746_v27 = vrot.slane %v2682_v36, 6  ;;  %v2966_v5 = vsel %vm2825_vm11, %v2682_v36, -inf }
 0x345   : > { %v2944_v52 = vmax.f32 %v2942_v42, %v2943_v30  ;;  %v2950_v53 = vrot.slane %v2949_v33, 1  ;;  %v2957_v60 = vrot.slane %v2956_v3, 1  ;;  %v2964_v1 = vrot.slane %v2963_v59, 1  ;;  %v5636_v30 = vpop.f32.mrf.mxu1 }
 0x346   : > { %v2967_v56 = vrot.slane %v2966_v5, 4  ;;  %v2973_v39 = vsel %vm2825_vm11, %v2744_v46, -inf  ;;  %v2980_v15 = vsel %vm2825_vm11, %v2745_v4, -inf  ;;  %v2987_v19 = vsel %vm2825_vm11, %v2746_v27, -inf  ;;  %v4651_v27 = vld [vmem:[#allocation2 + $0x114] sm:$0xf0] }
 0x347   : > { %v2951_v20 = vmax.f32 %v2949_v33, %v2950_v53  ;;  %v2958_v54 = vmax.f32 %v2956_v3, %v2957_v60  ;;  %v2974_v6 = vrot.slane %v2973_v39, 4  ;;  %v2981_v0 = vrot.slane %v2980_v15, 4 }
 0x348   : > { %2038 = vmatmul.bf16.gmra.mxu3 %v4225_v49  ;;  %v2968_v55 = vmax.f32 %v2966_v5, %v2967_v56  ;;  %v2988_v9 = vrot.slane %v2987_v19, 4  ;;  %v2965_v25 = vmax.f32 %v2963_v59, %v2964_v1  ;;  %v3294_v14 = vadd.f32 %v5489_v50, %v2944_v52 }
 0x349   : > { %v3295_v35 = vadd.f32 %v5489_v50, %v2951_v20  ;;  %v3296_v48 = vadd.f32 %v5489_v50, %v2958_v54  ;;  %v2975_v16 = vmax.f32 %v2973_v39, %v2974_v6  ;;  %v2982_v11 = vmax.f32 %v2980_v15, %v2981_v0  ;;  %v1999_v21 = vpop.f32.mrf.mxu3 }
 0x34a   : > { %v2969_v44 = vrot.slane %v2968_v55, 2  ;;  %v2989_v61 = vmax.f32 %v2987_v19, %v2988_v9  ;;  %v2496_v23 = vpop.f32.mrf.mxu2  ;;  %v3297_v58 = vadd.f32 %v5489_v50, %v2965_v25  ;;  %v3358_v51 = vmax.f32 %v3294_v14, 0.0 }
 0x34b   : > { %v3359_v63 = vmax.f32 %v3295_v35, 0.0  ;;  %v3360_v24 = vmax.f32 %v3296_v48, 0.0  ;;  %v2976_v7 = vrot.slane %v2975_v16, 2  ;;  %v2983_v42 = vrot.slane %v2982_v11, 2  ;;  %v5652_v35 = vpop.f32.mrf.mxu0 }
 0x34c   : > { %v2970_v38 = vmax.f32 %v2968_v55, %v2969_v44  ;;  %v2990_v12 = vrot.slane %v2989_v61, 2  ;;  %v2086_v4 = vadd.f32 %v5574_v37, %v1997_v41  ;;  %v2584_v18 = vadd.f32 %v5562_v22, %v2494_v17 }
 0x34d   : > { %v3505_v36 = vrot.slane %v3359_v63, 7  ;;  %v3507_v49 = vrot.slane %v3360_v24, 6  ;;  %v2977_v3 = vmax.f32 %v2975_v16, %v2976_v7  ;;  %v2984_v59 = vmax.f32 %v2982_v11, %v2983_v42 }
 0x34e   : > { %v2971_v33 = vrot.slane %v2970_v38, 1  ;;  %v2991_v46 = vmax.f32 %v2989_v61, %v2990_v12  ;;  %v2000_v45 = vadd.f32 %v1999_v21, %v5367_v26  ;;  %v2586_v29 = vadd.f32 %v5577_v34, %v2496_v23  ;;  %v5656_v23 = vpop.f32.mrf.mxu1 }
 0x34f   : > { %v3506_v5 = vsel %vm3471_vm12, %v3505_v36, %v3358_v51  ;;  %v2978_v53 = vrot.slane %v2977_v3, 1  ;;  %v2985_v60 = vrot.slane %v2984_v59, 1  ;;  %v3361_v1 = vmax.f32 %v3297_v58, 0.0 }
 0x350   : > { %v2972_v52 = vmax.f32 %v2970_v38, %v2971_v33  ;;  %v2992_v56 = vrot.slane %v2991_v46, 1  ;;  %v2645_v39 = vadd.f32 %v2584_v18, %v2084_v43  ;;  %v5643_v15 = vadd.f32 %v2586_v29, %v2086_v4 }
 0x351   : > { %v2979_v19 = vmax.f32 %v2977_v3, %v2978_v53  ;;  %v2986_v37 = vmax.f32 %v2984_v59, %v2985_v60  ;;  %v2001_v17 = vpop.f32.mrf.mxu3  ;;  %v4441_v20 = vor.u32 %v4651_v27, %v4440_v2  ;;  %v3508_v34 = vsel %vm3474_vm13, %v3507_v49, %v3506_v5 }
 0x352   : > { %v3298_v22 = vadd.f32 %v5489_v50, %v2972_v52  ;;  %v2499_v26 = vpop.f32.mrf.mxu2  ;;  %v2993_v54 = vmax.f32 %v2991_v46, %v2992_v56  ;;  %v2089_v55 = vadd.f32 %v5593_v10, %v2000_v45  ;;  %v2002_v6 = vadd.f32 %v2001_v17, %v5371_v13 }
 0x353   : > { %v3299_v0 = vadd.f32 %v5489_v50, %v2979_v19  ;;  %v3300_v9 = vadd.f32 %v5489_v50, %v2986_v37  ;;  %v2589_v14 = vadd.f32 %v5599_v62, %v2499_v26  ;;  %v3509_v48 = vrot.slane %v3361_v1, 5  ;;  %v5674_v1 = vpop.f32.mrf.mxu0 }
 0x354   : > { %v3362_v25 = vmax.f32 %v3298_v22, 0.0  ;;  %v3301_v44 = vadd.f32 %v5489_v50, %v2993_v54  ;;  %v2683_v10 = vsel %vm894_vm4, %v2645_v39, -inf  ;;  %v3600_v7 = vrot.slane %v5550_v40, 4 }
 0x355   : > { %v3363_v16 = vmax.f32 %v3299_v0, 0.0  ;;  %v3364_v11 = vmax.f32 %v3300_v9, 0.0  ;;  %v2647_v21 = vadd.f32 %v2589_v14, %v2089_v55  ;;  %v3510_v63 = vsel %vm3477_vm14, %v3509_v48, %v3508_v34 }
 0x356   : > { %v3511_v61 = vrot.slane %v3362_v25, 4  ;;  %v3365_v13 = vmax.f32 %v3301_v44, 0.0  ;;  %v2091_v42 = vadd.f32 %v5618_v47, %v2002_v6  ;;  %v2686_v17 = vsel %vm894_vm4, %v5643_v15, -inf  ;;  %v5681_v26 = vpop.f32.mrf.mxu1 }
 0x357   : > { %v3513_v24 = vrot.slane %v3363_v16, 3  ;;  %v3515_v43 = vrot.slane %v3364_v11, 2  ;;  %v2684_v62 = vsel %vm894_vm4, %v2647_v21, -inf }
 0x358   : > { %2538 = vmatmul.bf16.vlgmr.msra.gmra.mxu3 %v4441_v20  ;;  %v3512_v41 = vsel %vm3480_vm15, %v3511_v61, %v3510_v63  ;;  %v2685_v38 = vmax.f32 %v2683_v10, %v2684_v62  ;;  %v3517_v36 = vrot.slane %v3365_v13, 1 }
 0x359   : > { %v2004_v12 = vpop.f32.mrf.mxu3  ;;  %v3514_v51 = vsel %vm3483_vm0, %v3513_v24, %v3512_v41 }
 0x35a   : > { %v2501_v58 = vpop.f32.mrf.mxu2  ;;  %v2747_v49 = vrot.slane %v2685_v38, 2  ;;  %v2748_v33 = vrot.slane %v2685_v38, 4  ;;  %v2749_v3 = vrot.slane %v2685_v38, 6  ;;  %v2994_v59 = vsel %vm2825_vm11, %v2685_v38, -inf }
 0x35b   : > { %v2995_v46 = vrot.slane %v2994_v59, 4  ;;  %v5666_v4 = vadd.f32 %v2004_v12, %v5376_v32  ;;  %v2591_v18 = vadd.f32 %v5621_v8, %v2501_v58  ;;  %v3516_v45 = vsel %vm3486_vm1, %v3515_v43, %v3514_v51  ;;  %v5694_v12 = vpop.f32.mrf.mxu0 }
 0x35c   : > { %v3001_v47 = vsel %vm2825_vm11, %v2747_v49, -inf  ;;  %v3008_v29 = vsel %vm2825_vm11, %v2748_v33, -inf  ;;  %v3015_v2 = vsel %vm2825_vm11, %v2749_v3, -inf  ;;  %v3518_v27 = vsel %vm3489_vm2, %v3517_v36, %v3516_v45 }
 0x35d   : > { %v2996_v5 = vmax.f32 %v2994_v59, %v2995_v46  ;;  %v3002_v52 = vrot.slane %v3001_v47, 4  ;;  %v3009_v53 = vrot.slane %v3008_v29, 4  ;;  %v3016_v60 = vrot.slane %v3015_v2, 4 }
 0x35e   : > { %v2648_v32 = vadd.f32 %v2591_v18, %v2091_v42  ;;  %v3597_v56 = vrot.slane %v3518_v27, 4  ;;  %v5677_v8 = vsel %vm3598_vm3, %v3518_v27, %v3600_v7  ;;  %v5698_v45 = vpop.f32.mrf.mxu1 }
 0x35f   : > { %v2997_v39 = vrot.slane %v2996_v5, 2  ;;  %v3003_v19 = vmax.f32 %v3001_v47, %v3002_v52  ;;  %v3010_v37 = vmax.f32 %v3008_v29, %v3009_v53  ;;  %v3017_v22 = vmax.f32 %v3015_v2, %v3016_v60 }
 0x360   : > { %v2687_v20 = vsel %vm894_vm4, %v2648_v32, -inf  ;;  %v5686_v34 = vsel %vm3598_vm3, %v3597_v56, %v5550_v40  ;;  %v2094_v60 = vadd.f32 %v5630_v28, %v5666_v4 }
 0x361   : > { %v2998_v54 = vmax.f32 %v2996_v5, %v2997_v39  ;;  %v3004_v55 = vrot.slane %v3003_v19, 2  ;;  %v3011_v6 = vrot.slane %v3010_v37, 2  ;;  %v3018_v0 = vrot.slane %v3017_v22, 2  ;;  %v2006_v9 = vpop.f32.mrf.mxu3 }
 0x362   : > { %v2504_v25 = vpop.f32.mrf.mxu2  ;;  %v2688_v14 = vmax.f32 %v2686_v17, %v2687_v20  ;;  %v2007_v48 = vadd.f32 %v2006_v9, %v5380_v57  ;;  %v4711_v20 = vmov 1983009808  }
 0x363   : > { %v2594_v44 = vadd.f32 %v5636_v30, %v2504_v25  ;;  %v2999_v15 = vrot.slane %v2998_v54, 1  ;;  %v3005_v16 = vmax.f32 %v3003_v19, %v3004_v55  ;;  %v3012_v11 = vmax.f32 %v3010_v37, %v3011_v6 }
 0x364   : > { %v3019_v61 = vmax.f32 %v3017_v22, %v3018_v0  ;;  %v2750_v21 = vrot.slane %v2688_v14, 2  ;;  %v2751_v10 = vrot.slane %v2688_v14, 4  ;;  %v2752_v13 = vrot.slane %v2688_v14, 6 }
 0x365   : > { %v3022_v40 = vsel %vm2825_vm11, %v2688_v14, -inf  ;;  %v3006_v63 = vrot.slane %v3005_v16, 1  ;;  %v3013_v24 = vrot.slane %v3012_v11, 1  ;;  %v3000_v30 = vmax.f32 %v2998_v54, %v2999_v15  ;;  %v6026_v15 = vld [vmem:[#allocation7_spill] sm:$0xff] }
 0x366   : > { %v3020_v43 = vrot.slane %v3019_v61, 1  ;;  %v3023_v62 = vrot.slane %v3022_v40, 4  ;;  %v3029_v41 = vsel %vm2825_vm11, %v2750_v21, -inf  ;;  %v3036_v38 = vsel %vm2825_vm11, %v2751_v10, -inf }
 0x367   : > { %v3043_v57 = vsel %vm2825_vm11, %v2752_v13, -inf  ;;  %v3007_v7 = vmax.f32 %v3005_v16, %v3006_v63  ;;  %v3014_v42 = vmax.f32 %v3012_v11, %v3013_v24  ;;  %v3030_v51 = vrot.slane %v3029_v41, 4 }
 0x368   : > { %v3024_v58 = vmax.f32 %v3022_v40, %v3023_v62  ;;  %v3037_v36 = vrot.slane %v3036_v38, 4  ;;  %v3044_v49 = vrot.slane %v3043_v57, 4  ;;  %v3021_v33 = vmax.f32 %v3019_v61, %v3020_v43  ;;  %v5710_v43 = vpop.f32.mrf.mxu0 }
 0x369   : > { %v3303_v3 = vadd.f32 %v5489_v50, %v3007_v7  ;;  %v3304_v59 = vadd.f32 %v5489_v50, %v3014_v42  ;;  %v2009_v46 = vpop.f32.mrf.mxu3  ;;  %v3031_v29 = vmax.f32 %v3029_v41, %v3030_v51  ;;  %v3302_v5 = vadd.f32 %v5489_v50, %v3000_v30  ;;  %v6027_v41 = vld [vmem:[#allocation8_spill] sm:$0xff] }
 0x36a   : > { %v2506_v18 = vpop.f32.mrf.mxu2  ;;  %v3025_v47 = vrot.slane %v3024_v58, 2  ;;  %v3038_v2 = vmax.f32 %v3036_v38, %v3037_v36  ;;  %v3045_v27 = vmax.f32 %v3043_v57, %v3044_v49  ;;  %v3305_v37 = vadd.f32 %v5489_v50, %v3021_v33  ;;  %v6028_v38 = vld [vmem:[#allocation3_spill] sm:$0xff]  ;;  %v6029_v57 = vld [vmem:[#allocation14_spill] sm:$0xff] }
 0x36b   : > { %v3367_v52 = vmax.f32 %v3303_v3, 0.0  ;;  %v3368_v53 = vmax.f32 %v3304_v59, 0.0  ;;  %v3032_v56 = vrot.slane %v3031_v29, 2  ;;  %v2649_v17 = vadd.f32 %v2594_v44, %v2094_v60  ;;  %v2603_v3 = vpop.f32.mrf.mxu1  ;;  %v6030_v59 = vld [vmem:[#allocation4_spill] sm:$0xff] }
 0x36c   : > { %v3026_v32 = vmax.f32 %v3024_v58, %v3025_v47  ;;  %v3039_v39 = vrot.slane %v3038_v2, 2  ;;  %v3046_v19 = vrot.slane %v3045_v27, 2  ;;  %v3603_v54 = vunpack.c.l.s4 %v4711_v20 }
 0x36d   : > { %v3519_v22 = vrot.slane %v3367_v52, 7  ;;  %v3033_v6 = vmax.f32 %v3031_v29, %v3032_v56  ;;  %v3366_v25 = vmax.f32 %v3302_v5, 0.0  ;;  %v2096_v14 = vadd.f32 %v5652_v35, %v2007_v48 }
 0x36e   : > { %v3027_v55 = vrot.slane %v3026_v32, 1  ;;  %v3040_v0 = vmax.f32 %v3038_v2, %v3039_v39  ;;  %v3047_v9 = vmax.f32 %v3045_v27, %v3046_v19  ;;  %v2010_v16 = vadd.f32 %v2009_v46, %v6026_v15  ;;  %v6031_v46 = vld [vmem:[#allocation16_spill] sm:$0xff] }
 0x36f   : > { %v2596_v28 = vadd.f32 %v5656_v23, %v2506_v18  ;;  %v3521_v4 = vrot.slane %v3368_v53, 6  ;;  %v3034_v61 = vrot.slane %v3033_v6, 1  ;;  %v3369_v10 = vmax.f32 %v3305_v37, 0.0 }
 0x370   : > { %v3028_v11 = vmax.f32 %v3026_v32, %v3027_v55  ;;  %v3041_v21 = vrot.slane %v3040_v0, 1  ;;  %v3520_v44 = vsel %vm3471_vm12, %v3519_v22, %v3366_v25  ;;  %v3048_v13 = vrot.slane %v3047_v9, 1  ;;  %v6032_v22 = vld [vmem:[#allocation5_spill] sm:$0xff] }
 0x371   : > { %v5708_v40 = vadd.f32 %v2596_v28, %v2096_v14  ;;  %v2011_v63 = vpop.f32.mrf.mxu3  ;;  %v3035_v62 = vmax.f32 %v3033_v6, %v3034_v61  ;;  %v5716_v30 = vadd.f32 %v6029_v57, %v6028_v38  ;;  %v2099_v42 = vadd.f32 %v5674_v1, %v2010_v16  ;;  %v6034_v28 = vld [vmem:[#allocation10_spill] sm:$0xff] }
 0x372   : > { %v2509_v24 = vpop.f32.mrf.mxu2  ;;  %v3042_v35 = vmax.f32 %v3040_v0, %v3041_v21  ;;  %v3306_v48 = vadd.f32 %v5489_v50, %v3028_v11  ;;  %v2012_v23 = vadd.f32 %v2011_v63, %v6027_v41  ;;  %v3049_v7 = vmax.f32 %v3047_v9, %v3048_v13 }
 0x373   : > { %v2599_v58 = vadd.f32 %v5681_v26, %v2509_v24  ;;  %v3522_v51 = vsel %vm3474_vm13, %v3521_v4, %v3520_v44  ;;  %v3307_v36 = vadd.f32 %v5489_v50, %v3035_v62  ;;  %v5725_v18 = vadd.f32 %v6031_v46, %v6030_v59 }
 0x374   : > { %v3308_v49 = vadd.f32 %v5489_v50, %v3042_v35  ;;  %v3370_v33 = vmax.f32 %v3306_v48, 0.0  ;;  %v3523_v47 = vrot.slane %v3369_v10, 5  ;;  %v3309_v29 = vadd.f32 %v5489_v50, %v3049_v7  ;;  %v6033_v50 = vld [vmem:[#allocation18_spill] sm:$0xff]  ;;  %v5753_v35 = vpop.f32.mrf.mxu1 }
 0x375   : > { %v2651_v2 = vadd.f32 %v2599_v58, %v2099_v42  ;;  %v3371_v27 = vmax.f32 %v3307_v36, 0.0  ;;  %v5728_v26 = vunpack.c.0.s8 %v3603_v54  ;;  %v2689_v53 = vsel %vm894_vm4, %v2649_v17, -inf }
 0x376   : > { %v3372_v1 = vmax.f32 %v3308_v49, 0.0  ;;  %v3525_v5 = vrot.slane %v3370_v33, 4  ;;  %v3373_v52 = vmax.f32 %v3309_v29, 0.0  ;;  %v3524_v32 = vsel %vm3477_vm14, %v3523_v47, %v3522_v51 }
 0x377   : > { %v2690_v60 = vsel %vm894_vm4, %v2651_v2, -inf  ;;  %v3527_v56 = vrot.slane %v3371_v27, 3  ;;  %v5736_v20 = vadd.f32 %v6033_v50, %v6032_v22  ;;  %v2101_v55 = vadd.f32 %v5694_v12, %v2012_v23  ;;  %v5747_v12 = vpop.f32.mrf.mxu0  ;;  %v6035_v27 = vld [vmem:[#allocation12_spill] sm:$0xff] }
 0x378   : > { %v3529_v39 = vrot.slane %v3372_v1, 2  ;;  %v2691_v19 = vmax.f32 %v2689_v53, %v2690_v60  ;;  %v3526_v37 = vsel %vm3480_vm15, %v3525_v5, %v3524_v32  ;;  %v3531_v0 = vrot.slane %v3373_v52, 1 }
 0x379   : > { %v2014_v54 = vpop.f32.mrf.mxu3  ;;  %v5741_v17 = vperm.slane %v5686_v34, %v5728_v26  ;;  %v3528_v61 = vsel %vm3483_vm0, %v3527_v56, %v3526_v37  ;;  %v5760_v41 = vperm.slane %v5677_v8, %v5728_v26  ;;  %v3612_v23 = vrot.slane %v5613_v31, 4 }
 0x37a   : > { %v2511_v6 = vpop.f32.mrf.mxu2  ;;  %v2753_v9 = vrot.slane %v2691_v19, 2  ;;  %v2754_v25 = vrot.slane %v2691_v19, 4  ;;  %v2755_v14 = vrot.slane %v2691_v19, 6  ;;  %v3050_v15 = vsel %vm2825_vm11, %v2691_v19, -inf }
 0x37b   : > { %v3051_v16 = vrot.slane %v3050_v15, 4  ;;  %v2015_v4 = vadd.f32 %v2014_v54, %v6034_v28  ;;  %v2601_v11 = vadd.f32 %v5698_v45, %v2511_v6  ;;  %v3530_v44 = vsel %vm3486_vm1, %v3529_v39, %v3528_v61 }
 0x37c   : > { %v3057_v21 = vsel %vm2825_vm11, %v2753_v9, -inf  ;;  %v3064_v10 = vsel %vm2825_vm11, %v2754_v25, -inf  ;;  %v3071_v34 = vsel %vm2825_vm11, %v2755_v14, -inf  ;;  %v5756_v45 = vsel %vm3489_vm2, %v3531_v0, %v3530_v44  ;;  %v5779_v44 = vld [vmem:[%s5997_s4] ss:$0 sm:$0xff] }
 0x37d   : > { %v3052_v13 = vmax.f32 %v3050_v15, %v3051_v16  ;;  %v3058_v63 = vrot.slane %v3057_v21, 4  ;;  %v3065_v24 = vrot.slane %v3064_v10, 4  ;;  %v3072_v62 = vrot.slane %v3071_v34, 4 }
 0x37e   : > { %v2652_v48 = vadd.f32 %v2601_v11, %v2101_v55  ;;  %v2692_v58 = vsel %vm894_vm4, %v5708_v40, -inf  ;;  %v3613_v36 = vsel %vm3598_vm3, %v5756_v45, %v3612_v23  ;;  %v3648_v49 = vrot.slane %v5741_v17, 4  ;;  %v2608_v11 = vpop.f32.mrf.mxu1 }
 0x37f   : > { %v3053_v38 = vrot.slane %v3052_v13, 2  ;;  %v3059_v57 = vmax.f32 %v3057_v21, %v3058_v63  ;;  %v3066_v7 = vmax.f32 %v3064_v10, %v3065_v24  ;;  %v3073_v42 = vmax.f32 %v3071_v34, %v3072_v62  ;;  %v2108_v6 = vpop.f32.mrf.mxu0 }
 0x380   : > { %v2693_v51 = vsel %vm894_vm4, %v2652_v48, -inf  ;;  %v3660_v52 = vrot.slane %v5760_v41, 4  ;;  %v2104_v28 = vadd.f32 %v5710_v43, %v2015_v4 }
 0x381   : > { %v3054_v33 = vmax.f32 %v3052_v13, %v3053_v38  ;;  %v3060_v59 = vrot.slane %v3059_v57, 2  ;;  %v3067_v8 = vrot.slane %v3066_v7, 2  ;;  %v3074_v46 = vrot.slane %v3073_v42, 2  ;;  %v2016_v47 = vpop.f32.mrf.mxu3 }
 0x382   : > { %v2514_v29 = vpop.f32.mrf.mxu2  ;;  %v2694_v2 = vmax.f32 %v2692_v58, %v2693_v51  ;;  %v2017_v1 = vadd.f32 %v2016_v47, %v6035_v27  ;;  %v3621_v58 = vperm.slane %v3613_v36, %v5728_v26  ;;  %v3610_v51 = vrot.slane %v5756_v45, 4 }
 0x383   : > { %v2604_v5 = vadd.f32 %v2603_v3, %v2514_v29  ;;  %v3055_v40 = vrot.slane %v3054_v33, 1  ;;  %v3061_v53 = vmax.f32 %v3059_v57, %v3060_v59  ;;  %v3068_v60 = vmax.f32 %v3066_v7, %v3067_v8 }
 0x384   : > { %v3075_v32 = vmax.f32 %v3073_v42, %v3074_v46  ;;  %v2756_v56 = vrot.slane %v2694_v2, 2  ;;  %v2757_v39 = vrot.slane %v2694_v2, 4  ;;  %v2758_v19 = vrot.slane %v2694_v2, 6 }
 0x385   : > { %v3078_v37 = vsel %vm2825_vm11, %v2694_v2, -inf  ;;  %v3056_v22 = vmax.f32 %v3054_v33, %v3055_v40  ;;  %v3062_v50 = vrot.slane %v3061_v53, 1  ;;  %v3069_v55 = vrot.slane %v3068_v60, 1 }
 0x386   : > { %v3076_v54 = vrot.slane %v3075_v32, 1  ;;  %v3079_v0 = vrot.slane %v3078_v37, 4  ;;  %v3085_v9 = vsel %vm2825_vm11, %v2756_v56, -inf  ;;  %v3092_v3 = vsel %vm2825_vm11, %v2757_v39, -inf }
 0x387   : > { %v3099_v25 = vsel %vm2825_vm11, %v2758_v19, -inf  ;;  %v3063_v14 = vmax.f32 %v3061_v53, %v3062_v50  ;;  %v3070_v15 = vmax.f32 %v3068_v60, %v3069_v55  ;;  %v3086_v21 = vrot.slane %v3085_v9, 4  ;;  %v2110_v45 = vpop.f32.mrf.mxu0 }
 0x388   : > { %v3077_v16 = vmax.f32 %v3075_v32, %v3076_v54  ;;  %v3080_v61 = vmax.f32 %v3078_v37, %v3079_v0  ;;  %v3093_v10 = vrot.slane %v3092_v3, 4  ;;  %v3100_v34 = vrot.slane %v3099_v25, 4 }
 0x389   : > { %v3310_v13 = vadd.f32 %v5779_v44, %v3056_v22  ;;  %v3311_v63 = vadd.f32 %v5779_v44, %v3063_v14  ;;  %v3312_v24 = vadd.f32 %v5779_v44, %v3070_v15  ;;  %v2019_v48 = vpop.f32.mrf.mxu3  ;;  %v3087_v23 = vmax.f32 %v3085_v9, %v3086_v21  ;;  %v2610_v14 = vpop.f32.mrf.mxu1 }
 0x38a   : > { %v3313_v62 = vadd.f32 %v5779_v44, %v3077_v16  ;;  %v2516_v43 = vpop.f32.mrf.mxu2  ;;  %v3081_v4 = vrot.slane %v3080_v61, 2  ;;  %v3094_v38 = vmax.f32 %v3092_v3, %v3093_v10  ;;  %v3101_v57 = vmax.f32 %v3099_v25, %v3100_v34 }
 0x38b   : > { %v3375_v7 = vmax.f32 %v3311_v63, 0.0  ;;  %v3376_v42 = vmax.f32 %v3312_v24, 0.0  ;;  %v3088_v59 = vrot.slane %v3087_v23, 2  ;;  %v3374_v47 = vmax.f32 %v3310_v13, 0.0 }
 0x38c   : > { %v3082_v33 = vmax.f32 %v3080_v61, %v3081_v4  ;;  %v3095_v8 = vrot.slane %v3094_v38, 2  ;;  %v3102_v46 = vrot.slane %v3101_v57, 2  ;;  %v3377_v29 = vmax.f32 %v3313_v62, 0.0 }
 0x38d   : > { %v3533_v2 = vrot.slane %v3375_v7, 7  ;;  %v2653_v27 = vadd.f32 %v2604_v5, %v2104_v28  ;;  %v3089_v53 = vmax.f32 %v3087_v23, %v3088_v59  ;;  %v3535_v56 = vrot.slane %v3376_v42, 6 }
 0x38e   : > { %v3083_v40 = vrot.slane %v3082_v33, 1  ;;  %v3096_v60 = vmax.f32 %v3094_v38, %v3095_v8  ;;  %v3103_v32 = vmax.f32 %v3101_v57, %v3102_v46  ;;  %v2106_v39 = vadd.f32 %v5747_v12, %v2017_v1 }
 0x38f   : > { %v2020_v19 = vadd.f32 %v2019_v48, %v5716_v30  ;;  %v2606_v36 = vadd.f32 %v5753_v35, %v2516_v43  ;;  %v3534_v37 = vsel %vm3471_vm12, %v3533_v2, %v3374_v47  ;;  %v3090_v50 = vrot.slane %v3089_v53, 1  ;;  %v5818_v2 = vpop.f32.mrf.mxu0 }
 0x390   : > { %v3084_v22 = vmax.f32 %v3082_v33, %v3083_v40  ;;  %v3097_v55 = vrot.slane %v3096_v60, 1  ;;  %v3537_v54 = vrot.slane %v3377_v29, 5  ;;  %v3104_v0 = vrot.slane %v3103_v32, 1 }
 0x391   : > { %v2109_v5 = vadd.f32 %v2108_v6, %v2020_v19  ;;  %v2654_v9 = vadd.f32 %v2606_v36, %v2106_v39  ;;  %v2021_v3 = vpop.f32.mrf.mxu3  ;;  %v3091_v15 = vmax.f32 %v3089_v53, %v3090_v50  ;;  %v3536_v35 = vsel %vm3474_vm13, %v3535_v56, %v3534_v37  ;;  %v5825_v56 = vpop.f32.mrf.mxu1 }
 0x392   : > { %v2519_v25 = vpop.f32.mrf.mxu2  ;;  %v3098_v16 = vmax.f32 %v3096_v60, %v3097_v55  ;;  %v3314_v12 = vadd.f32 %v5779_v44, %v3084_v22  ;;  %v2022_v30 = vadd.f32 %v2021_v3, %v5725_v18  ;;  %v3105_v1 = vmax.f32 %v3103_v32, %v3104_v0 }
 0x393   : > { %v2609_v28 = vadd.f32 %v2608_v11, %v2519_v25  ;;  %v3658_v61 = vrot.slane %v3621_v58, 4  ;;  %v3315_v21 = vadd.f32 %v5779_v44, %v3091_v15  ;;  %v2695_v34 = vsel %vm894_vm4, %v2653_v27, -inf }
 0x394   : > { %v3316_v10 = vadd.f32 %v5779_v44, %v3098_v16  ;;  %v3378_v6 = vmax.f32 %v3314_v12, 0.0  ;;  %v3317_v13 = vadd.f32 %v5779_v44, %v3105_v1  ;;  %v3611_v18 = vsel %vm3598_vm3, %v3610_v51, %v5613_v31 }
 0x395   : > { %v2655_v63 = vadd.f32 %v2609_v28, %v2109_v5  ;;  %v5800_v24 = vsel %vm3598_vm3, %v3658_v61, %v5760_v41  ;;  %v3379_v62 = vmax.f32 %v3315_v21, 0.0  ;;  %v3538_v43 = vsel %vm3477_vm14, %v3537_v54, %v3536_v35 }
 0x396   : > { %v3380_v11 = vmax.f32 %v3316_v10, 0.0  ;;  %v3539_v48 = vrot.slane %v3378_v6, 4  ;;  %v3381_v4 = vmax.f32 %v3317_v13, 0.0  ;;  %v3617_v38 = vperm.slane %v3611_v18, %v5728_v26 }
 0x397   : > { %v2696_v23 = vsel %vm894_vm4, %v2655_v63, -inf  ;;  %v5810_v57 = vsel %vm3598_vm3, %v3621_v58, %v3660_v52  ;;  %v3541_v7 = vrot.slane %v3379_v62, 3  ;;  %v2111_v51 = vadd.f32 %v2110_v45, %v2022_v30  ;;  %v5842_v13 = vpop.f32.mrf.mxu0 }
 0x398   : > { %v3543_v42 = vrot.slane %v3380_v11, 2  ;;  %v2697_v33 = vmax.f32 %v2695_v34, %v2696_v23  ;;  %v3540_v31 = vsel %vm3480_vm15, %v3539_v48, %v3538_v43  ;;  %v3545_v46 = vrot.slane %v3381_v4, 1 }
 0x399   : > { %v5816_v47 = vsel %vm3598_vm3, %v3617_v38, %v3648_v49  ;;  %v3646_v29 = vrot.slane %v3617_v38, 4  ;;  %v3542_v32 = vsel %vm3483_vm0, %v3541_v7, %v3540_v31  ;;  %v2698_v25 = vsel %vm894_vm4, %v2654_v9, -inf  ;;  %v5845_v43 = vpop.f32.mrf.mxu1 }
 0x39a   : > { %v2521_v8 = vpop.f32.mrf.mxu2  ;;  %v2759_v41 = vrot.slane %v2697_v33, 2  ;;  %v2760_v52 = vrot.slane %v2697_v33, 4  ;;  %v2761_v58 = vrot.slane %v2697_v33, 6  ;;  %v3106_v27 = vsel %vm2825_vm11, %v2697_v33, -inf }
 0x39b   : > { %v2024_v59 = vpop.f32.mrf.mxu3  ;;  %v3107_v40 = vrot.slane %v3106_v27, 4  ;;  %v2611_v60 = vadd.f32 %v2610_v14, %v2521_v8  ;;  %v3544_v36 = vsel %vm3486_vm1, %v3543_v42, %v3542_v32  ;;  %v5838_v15 = vsel %vm3598_vm3, %v3646_v29, %v5741_v17 }
 0x39c   : > { %v5822_v53 = vadd.f32 %v2024_v59, %v5736_v20  ;;  %v3113_v49 = vsel %vm2825_vm11, %v2759_v41, -inf  ;;  %v3120_v39 = vsel %vm2825_vm11, %v2760_v52, -inf  ;;  %v3127_v19 = vsel %vm2825_vm11, %v2761_v58, -inf }
 0x39d   : > { %v3108_v45 = vmax.f32 %v3106_v27, %v3107_v40  ;;  %v3114_v37 = vrot.slane %v3113_v49, 4  ;;  %v3121_v22 = vrot.slane %v3120_v39, 4  ;;  %v3128_v50 = vrot.slane %v3127_v19, 4 }
 0x39e   : > { %v2656_v55 = vadd.f32 %v2611_v60, %v2111_v51  ;;  %v5832_v20 = vsel %vm3489_vm2, %v3545_v46, %v3544_v36 }
 0x39f   : > { %v3109_v54 = vrot.slane %v3108_v45, 2  ;;  %v3115_v0 = vmax.f32 %v3113_v49, %v3114_v37  ;;  %v3122_v5 = vmax.f32 %v3120_v39, %v3121_v22  ;;  %v3129_v3 = vmax.f32 %v3127_v19, %v3128_v50 }
 0x3a0   : > { %v2699_v14 = vsel %vm894_vm4, %v2656_v55, -inf }
 0x3a1   : > { %v3110_v16 = vmax.f32 %v3108_v45, %v3109_v54  ;;  %v3116_v12 = vrot.slane %v3115_v0, 2  ;;  %v3123_v30 = vrot.slane %v3122_v5, 2  ;;  %v3130_v35 = vrot.slane %v3129_v3, 2 }
 0x3a2   : > { %v2524_v28 = vpop.f32.mrf.mxu2  ;;  %v2700_v61 = vmax.f32 %v2698_v25, %v2699_v14 }
 0x3a3   : > { %v5840_v1 = vpop.f32.mrf.mxu3  ;;  %v3111_v21 = vrot.slane %v3110_v16, 1  ;;  %v3117_v10 = vmax.f32 %v3115_v0, %v3116_v12  ;;  %v3124_v6 = vmax.f32 %v3122_v5, %v3123_v30  ;;  %v3131_v34 = vmax.f32 %v3129_v3, %v3130_v35  ;;  %v2118_v5 = vpop.f32.mrf.mxu0  ;;  %v6036_v12 = vld [vmem:[#allocation6_spill] sm:$0xff]  ;;  %v6037_v30 = vld [vmem:[#allocation20_spill] sm:$0xff] }
 0x3a4   : > { %v2762_v9 = vrot.slane %v2700_v61, 2  ;;  %v2763_v63 = vrot.slane %v2700_v61, 4  ;;  %v2764_v18 = vrot.slane %v2700_v61, 6  ;;  %v3134_v17 = vsel %vm2825_vm11, %v2700_v61, -inf }
 0x3a5   : > { %v3118_v62 = vrot.slane %v3117_v10, 1  ;;  %v3125_v11 = vrot.slane %v3124_v6, 1  ;;  %v3132_v48 = vrot.slane %v3131_v34, 1  ;;  %v3135_v4 = vrot.slane %v3134_v17, 4 }
 0x3a6   : > { %v3141_v23 = vsel %vm2825_vm11, %v2762_v9, -inf  ;;  %v3148_v38 = vsel %vm2825_vm11, %v2763_v63, -inf  ;;  %v3155_v7 = vsel %vm2825_vm11, %v2764_v18, -inf  ;;  %v3112_v42 = vmax.f32 %v3110_v16, %v3111_v21 }
 0x3a7   : > { %v3119_v33 = vmax.f32 %v3117_v10, %v3118_v62  ;;  %v3126_v31 = vmax.f32 %v3124_v6, %v3125_v11  ;;  %v3133_v51 = vmax.f32 %v3131_v34, %v3132_v48  ;;  %v3136_v59 = vmax.f32 %v3134_v17, %v3135_v4  ;;  %v6038_v10 = vld [vmem:[#allocation9_spill] sm:$0xff]  ;;  %v2618_v34 = vpop.f32.mrf.mxu1 }
 0x3a8   : > { %v3142_v8 = vrot.slane %v3141_v23, 4  ;;  %v3149_v46 = vrot.slane %v3148_v38, 4  ;;  %v3156_v29 = vrot.slane %v3155_v7, 4  ;;  %v3318_v19 = vadd.f32 %v5779_v44, %v3112_v42 }
 0x3a9   : > { %v3319_v41 = vadd.f32 %v5779_v44, %v3119_v33  ;;  %v3320_v52 = vadd.f32 %v5779_v44, %v3126_v31  ;;  %v3321_v58 = vadd.f32 %v5779_v44, %v3133_v51  ;;  %v3137_v60 = vrot.slane %v3136_v59, 2 }
 0x3aa   : > { %v2526_v40 = vpop.f32.mrf.mxu2  ;;  %v3143_v32 = vmax.f32 %v3141_v23, %v3142_v8  ;;  %v3150_v49 = vmax.f32 %v3148_v38, %v3149_v46  ;;  %v3157_v39 = vmax.f32 %v3155_v7, %v3156_v29  ;;  %v1674_v35 = vadd.f32 %v6037_v30, %v6036_v12 }
 0x3ab   : > { %v2029_v27 = vpop.f32.mrf.mxu3  ;;  %v3383_v36 = vmax.f32 %v3319_v41, 0.0  ;;  %v3384_v45 = vmax.f32 %v3320_v52, 0.0  ;;  %v3138_v37 = vmax.f32 %v3136_v59, %v3137_v60  ;;  %v3385_v54 = vmax.f32 %v3321_v58, 0.0  ;;  %v6039_v41 = vld [vmem:[#allocation11_spill] sm:$0xff] }
 0x3ac   : > { %v3144_v22 = vrot.slane %v3143_v32, 2  ;;  %v3151_v50 = vrot.slane %v3150_v49, 2  ;;  %v3158_v55 = vrot.slane %v3157_v39, 2  ;;  %v3382_v61 = vmax.f32 %v3318_v19, 0.0 }
 0x3ad   : > { %v3547_v0 = vrot.slane %v3383_v36, 7  ;;  %v3139_v3 = vrot.slane %v3138_v37, 1  ;;  %v2614_v21 = vadd.f32 %v5825_v56, %v2524_v28  ;;  %v2030_v6 = vadd.f32 %v2029_v27, %v6038_v10 }
 0x3ae   : > { %v3145_v25 = vmax.f32 %v3143_v32, %v3144_v22  ;;  %v3152_v14 = vmax.f32 %v3150_v49, %v3151_v50  ;;  %v3159_v16 = vmax.f32 %v3157_v39, %v3158_v55  ;;  %v3549_v9 = vrot.slane %v3384_v45, 6 }
 0x3af   : > { %v3140_v63 = vmax.f32 %v3138_v37, %v3139_v3  ;;  %v3548_v62 = vsel %vm3471_vm12, %v3547_v0, %v3382_v61  ;;  %v2114_v11 = vadd.f32 %v5818_v2, %v5822_v53  ;;  %v2027_v4 = vadd.f32 %v5840_v1, %v1674_v35  ;;  %v2120_v37 = vpop.f32.mrf.mxu0  ;;  %v2620_v3 = vpop.f32.mrf.mxu1 }
 0x3b0   : > { %v3146_v18 = vrot.slane %v3145_v25, 1  ;;  %v3153_v17 = vrot.slane %v3152_v14, 1  ;;  %v3160_v48 = vrot.slane %v3159_v16, 1  ;;  %v3551_v7 = vrot.slane %v3385_v54, 5 }
 0x3b1   : > { %v3322_v28 = vadd.f32 %v5779_v44, %v3140_v63  ;;  %v2657_v31 = vadd.f32 %v2614_v21, %v2114_v11  ;;  %v2119_v51 = vadd.f32 %v2118_v5, %v2030_v6  ;;  %v3550_v8 = vsel %vm3474_vm13, %v3549_v9, %v3548_v62 }
 0x3b2   : > { %v2529_v38 = vpop.f32.mrf.mxu2  ;;  %v3147_v42 = vmax.f32 %v3145_v25, %v3146_v18  ;;  %v3154_v56 = vmax.f32 %v3152_v14, %v3153_v17  ;;  %v3161_v33 = vmax.f32 %v3159_v16, %v3160_v48  ;;  %v2616_v29 = vadd.f32 %v5845_v43, %v2526_v40 }
 0x3b3   : > { %v2031_v23 = vpop.f32.mrf.mxu3  ;;  %v2619_v59 = vadd.f32 %v2618_v34, %v2529_v38  ;;  %v3386_v53 = vmax.f32 %v3322_v28, 0.0  ;;  %v2116_v49 = vadd.f32 %v5842_v13, %v2027_v4  ;;  %v3552_v39 = vsel %vm3477_vm14, %v3551_v7, %v3550_v8 }
 0x3b4   : > { %v3323_v46 = vadd.f32 %v5779_v44, %v3147_v42  ;;  %v3324_v2 = vadd.f32 %v5779_v44, %v3154_v56  ;;  %v3325_v1 = vadd.f32 %v5779_v44, %v3161_v33  ;;  %v2032_v52 = vadd.f32 %v2031_v23, %v6039_v41 }
 0x3b5   : > { %v2659_v58 = vadd.f32 %v2619_v59, %v2119_v51  ;;  %v3553_v32 = vrot.slane %v3386_v53, 4  ;;  %v2701_v36 = vsel %vm894_vm4, %v2657_v31, -inf  ;;  %v2658_v55 = vadd.f32 %v2616_v29, %v2116_v49 }
 0x3b6   : > { %v3387_v27 = vmax.f32 %v3323_v46, 0.0  ;;  %v3388_v60 = vmax.f32 %v3324_v2, 0.0  ;;  %v3389_v19 = vmax.f32 %v3325_v1, 0.0  ;;  %v2121_v54 = vadd.f32 %v2120_v37, %v2032_v52 }
 0x3b7   : > { %v2702_v45 = vsel %vm894_vm4, %v2659_v58, -inf  ;;  %v3554_v22 = vsel %vm3480_vm15, %v3553_v32, %v3552_v39  ;;  %v2704_v7 = vsel %vm894_vm4, %v2658_v55, -inf  ;;  %v5889_v1 = vpop.f32.mrf.mxu0 }
 0x3b8   : > { %v3555_v50 = vrot.slane %v3387_v27, 3  ;;  %v3557_v43 = vrot.slane %v3388_v60, 2  ;;  %v2703_v40 = vmax.f32 %v2701_v36, %v2702_v45  ;;  %v3559_v12 = vrot.slane %v3389_v19, 1  ;;  %v2623_v27 = vpop.f32.mrf.mxu1 }
 0x3ba   : > { %v2531_v5 = vpop.f32.mrf.mxu2  ;;  %v2765_v13 = vrot.slane %v2703_v40, 2  ;;  %v2766_v25 = vrot.slane %v2703_v40, 4  ;;  %v2767_v14 = vrot.slane %v2703_v40, 6  ;;  %v3162_v16 = vsel %vm2825_vm11, %v2703_v40, -inf }
 0x3bb   : > { %v5874_v0 = vpop.f32.mrf.mxu3  ;;  %v3163_v30 = vrot.slane %v3162_v16, 4  ;;  %v2621_v35 = vadd.f32 %v2620_v3, %v2531_v5  ;;  %v3556_v61 = vsel %vm3483_vm0, %v3555_v50, %v3554_v22 }
 0x3bc   : > { %v3169_v21 = vsel %vm2825_vm11, %v2765_v13, -inf  ;;  %v3176_v10 = vsel %vm2825_vm11, %v2766_v25, -inf  ;;  %v3183_v6 = vsel %vm2825_vm11, %v2767_v14, -inf  ;;  %v3558_v34 = vsel %vm3486_vm1, %v3557_v43, %v3556_v61 }
 0x3bd   : > { %v3164_v9 = vmax.f32 %v3162_v16, %v3163_v30  ;;  %v3170_v63 = vrot.slane %v3169_v21, 4  ;;  %v3177_v18 = vrot.slane %v3176_v10, 4  ;;  %v3184_v17 = vrot.slane %v3183_v6, 4 }
 0x3be   : > { %v2660_v62 = vadd.f32 %v2621_v35, %v2121_v54  ;;  %v5883_v11 = vsel %vm3489_vm2, %v3559_v12, %v3558_v34 }
 0x3bf   : > { %v3165_v48 = vrot.slane %v3164_v9, 2  ;;  %v3171_v4 = vmax.f32 %v3169_v21, %v3170_v63  ;;  %v3178_v23 = vmax.f32 %v3176_v10, %v3177_v18  ;;  %v3185_v38 = vmax.f32 %v3183_v6, %v3184_v17 }
 0x3c0   : > { %v2705_v42 = vsel %vm894_vm4, %v2660_v62, -inf  ;;  %v2125_v62 = vpop.f32.mrf.mxu0 }
 0x3c1   : > { %v3166_v56 = vmax.f32 %v3164_v9, %v3165_v48  ;;  %v3172_v28 = vrot.slane %v3171_v4, 2  ;;  %v3179_v33 = vrot.slane %v3178_v23, 2  ;;  %v3186_v31 = vrot.slane %v3185_v38, 2 }
 0x3c2   : > { %v2706_v59 = vmax.f32 %v2704_v7, %v2705_v42  ;;  %v2625_v7 = vpop.f32.mrf.mxu1 }
 0x3c3   : > { %v5887_v51 = vpop.f32.mrf.mxu3  ;;  %v3167_v8 = vrot.slane %v3166_v56, 1  ;;  %v3173_v46 = vmax.f32 %v3171_v4, %v3172_v28  ;;  %v3180_v2 = vmax.f32 %v3178_v23, %v3179_v33  ;;  %v3187_v53 = vmax.f32 %v3185_v38, %v3186_v31 }
 0x3c4   : > { %v2768_v29 = vrot.slane %v2706_v59, 2  ;;  %v2769_v41 = vrot.slane %v2706_v59, 4  ;;  %v2770_v52 = vrot.slane %v2706_v59, 6  ;;  %v3190_v58 = vsel %vm2825_vm11, %v2706_v59, -inf }
 0x3c5   : > { %v3168_v60 = vmax.f32 %v3166_v56, %v3167_v8  ;;  %v3174_v32 = vrot.slane %v3173_v46, 1  ;;  %v3181_v49 = vrot.slane %v3180_v2, 1  ;;  %v3188_v39 = vrot.slane %v3187_v53, 1 }
 0x3c6   : > { %v3191_v19 = vrot.slane %v3190_v58, 4  ;;  %v3197_v36 = vsel %vm2825_vm11, %v2768_v29, -inf  ;;  %v3204_v45 = vsel %vm2825_vm11, %v2769_v41, -inf  ;;  %v3211_v37 = vsel %vm2825_vm11, %v2770_v52, -inf }
 0x3c7   : > { %v3175_v22 = vmax.f32 %v3173_v46, %v3174_v32  ;;  %v3182_v50 = vmax.f32 %v3180_v2, %v3181_v49  ;;  %v3198_v40 = vrot.slane %v3197_v36, 4  ;;  %v3205_v55 = vrot.slane %v3204_v45, 4  ;;  %v2534_v46 = vpop.f32.mrf.mxu2 }
 0x3c8   : > { %v3192_v43 = vmax.f32 %v3190_v58, %v3191_v19  ;;  %v3212_v54 = vrot.slane %v3211_v37, 4  ;;  %v3189_v5 = vmax.f32 %v3187_v53, %v3188_v39  ;;  %v3326_v3 = vadd.f32 %v5779_v44, %v3168_v60  ;;  %v6040_v58 = vld [vmem:[#allocation13_spill] sm:$0xff] }
 0x3c9   : > { %v3327_v13 = vadd.f32 %v5779_v44, %v3175_v22  ;;  %v3328_v25 = vadd.f32 %v5779_v44, %v3182_v50  ;;  %v3199_v12 = vmax.f32 %v3197_v36, %v3198_v40  ;;  %v3206_v30 = vmax.f32 %v3204_v45, %v3205_v55  ;;  %v6041_v22 = vld [vmem:[#allocation17_spill] sm:$0xff] }
 0x3ca   : > { %v3193_v16 = vrot.slane %v3192_v43, 2  ;;  %v3213_v35 = vmax.f32 %v3211_v37, %v3212_v54  ;;  %v3329_v63 = vadd.f32 %v5779_v44, %v3189_v5  ;;  %v3390_v18 = vmax.f32 %v3326_v3, 0.0 }
 0x3cb   : > { %v2039_v14 = vpop.f32.mrf.mxu3  ;;  %v3391_v61 = vmax.f32 %v3327_v13, 0.0  ;;  %v3392_v21 = vmax.f32 %v3328_v25, 0.0  ;;  %v3200_v6 = vrot.slane %v3199_v12, 2  ;;  %v3207_v34 = vrot.slane %v3206_v30, 2  ;;  %v2128_v13 = vpop.f32.mrf.mxu0 }
 0x3cc   : > { %v3194_v10 = vmax.f32 %v3192_v43, %v3193_v16  ;;  %v3214_v9 = vrot.slane %v3213_v35, 2  ;;  %v3393_v8 = vmax.f32 %v3329_v63, 0.0  ;;  %v2035_v60 = vadd.f32 %v5874_v0, %v6040_v58  ;;  %v2628_v0 = vpop.f32.mrf.mxu1 }
 0x3cd   : > { %v3561_v17 = vrot.slane %v3391_v61, 7  ;;  %v3201_v4 = vmax.f32 %v3199_v12, %v3200_v6  ;;  %v3208_v23 = vmax.f32 %v3206_v30, %v3207_v34  ;;  %v3563_v56 = vrot.slane %v3392_v21, 6  ;;  %v6042_v34 = vld [vmem:[#allocation15_spill] sm:$0xff] }
 0x3ce   : > { %v3195_v48 = vrot.slane %v3194_v10, 1  ;;  %v3215_v38 = vmax.f32 %v3213_v35, %v3214_v9  ;;  %v3565_v45 = vrot.slane %v3393_v8, 5  ;;  %v2624_v37 = vadd.f32 %v2623_v27, %v2534_v46 }
 0x3cf   : > { %v3562_v42 = vsel %vm3471_vm12, %v3561_v17, %v3390_v18  ;;  %v3202_v33 = vrot.slane %v3201_v4, 1  ;;  %v3209_v31 = vrot.slane %v3208_v23, 1  ;;  %v2040_v50 = vadd.f32 %v2039_v14, %v6041_v22 }
 0x3d0   : > { %v3196_v28 = vmax.f32 %v3194_v10, %v3195_v48  ;;  %v3216_v59 = vrot.slane %v3215_v38, 1  ;;  %v3564_v32 = vsel %vm3474_vm13, %v3563_v56, %v3562_v42  ;;  %v2124_v5 = vadd.f32 %v5889_v1, %v2035_v60  ;;  %v2536_v10 = vpop.f32.mrf.mxu2  ;;  %v6043_v42 = vld [vmem:[#allocation19_spill] sm:$0xff] }
 0x3d1   : > { %v3203_v53 = vmax.f32 %v3201_v4, %v3202_v33  ;;  %v3210_v29 = vmax.f32 %v3208_v23, %v3209_v31  ;;  %v3566_v3 = vsel %vm3477_vm14, %v3565_v45, %v3564_v32  ;;  %v2129_v61 = vadd.f32 %v2128_v13, %v2040_v50 }
 0x3d2   : > { %v3217_v41 = vmax.f32 %v3215_v38, %v3216_v59  ;;  %v3330_v52 = vadd.f32 %v5779_v44, %v3196_v28  ;;  %v2661_v30 = vadd.f32 %v2624_v37, %v2124_v5  ;;  %v3624_v1 = vrot.slane %v5832_v20, 4 }
 0x3d3   : > { %v2041_v2 = vpop.f32.mrf.mxu3  ;;  %v3331_v49 = vadd.f32 %v5779_v44, %v3203_v53  ;;  %v3332_v39 = vadd.f32 %v5779_v44, %v3210_v29  ;;  %v2037_v9 = vadd.f32 %v5887_v51, %v6042_v34  ;;  %v2626_v23 = vadd.f32 %v2625_v7, %v2536_v10 }
 0x3d4   : > { %v3394_v19 = vmax.f32 %v3330_v52, 0.0  ;;  %v3333_v36 = vadd.f32 %v5779_v44, %v3217_v41  ;;  %v2707_v4 = vsel %vm894_vm4, %v2661_v30, -inf  ;;  %v2042_v56 = vadd.f32 %v2041_v2, %v6043_v42  ;;  %v2630_v53 = vpop.f32.mrf.mxu1  ;;  %v2130_v41 = vpop.f32.mrf.mxu0 }
 0x3d5   : > { %v3395_v43 = vmax.f32 %v3331_v49, 0.0  ;;  %v3396_v55 = vmax.f32 %v3332_v39, 0.0  ;;  %v2126_v51 = vadd.f32 %v2125_v62, %v2037_v9 }
 0x3d6   : > { %v3567_v40 = vrot.slane %v3394_v19, 4  ;;  %v3397_v54 = vmax.f32 %v3333_v36, 0.0  ;;  %v2131_v60 = vadd.f32 %v2130_v41, %v2042_v56 }
 0x3d7   : > { %v3569_v25 = vrot.slane %v3395_v43, 3  ;;  %v3571_v12 = vrot.slane %v3396_v55, 2  ;;  %v2662_v52 = vadd.f32 %v2626_v23, %v2126_v51 }
 0x3d8   : > { %v3568_v16 = vsel %vm3480_vm15, %v3567_v40, %v3566_v3  ;;  %v3573_v21 = vrot.slane %v3397_v54, 1 }
 0x3d9   : > { %v3570_v14 = vsel %vm3483_vm0, %v3569_v25, %v3568_v16  ;;  %v2710_v43 = vsel %vm894_vm4, %v2662_v52, -inf }
 0x3da   : > { %v3572_v6 = vsel %vm3486_vm1, %v3571_v12, %v3570_v14 }
 0x3db   : > { %v2539_v35 = vpop.f32.mrf.mxu3  ;;  %v3574_v18 = vsel %vm3489_vm2, %v3573_v21, %v3572_v6 }
 0x3dc   : > { %v2629_v27 = vadd.f32 %v2628_v0, %v2539_v35  ;;  %v3622_v17 = vrot.slane %v3574_v18, 4  ;;  %v5918_v48 = vsel %vm3598_vm3, %v3574_v18, %v3624_v1 }
 0x3de   : > { %v2663_v63 = vadd.f32 %v2629_v27, %v2129_v61  ;;  %v5925_v33 = vsel %vm3598_vm3, %v3622_v17, %v5832_v20 }
 0x3e0   : > { %v2708_v38 = vsel %vm894_vm4, %v2663_v63, -inf }
 0x3e1   : > { %v2709_v28 = vmax.f32 %v2707_v4, %v2708_v38 }
 0x3e3   : > { %v2771_v31 = vrot.slane %v2709_v28, 2  ;;  %v2772_v59 = vrot.slane %v2709_v28, 4  ;;  %v2773_v8 = vrot.slane %v2709_v28, 6  ;;  %v3218_v46 = vsel %vm2825_vm11, %v2709_v28, -inf  ;;  %v2541_v29 = vpop.f32.mrf.mxu3 }
 0x3e4   : > { %v3219_v7 = vrot.slane %v3218_v46, 4  ;;  %v2631_v58 = vadd.f32 %v2630_v53, %v2541_v29 }
 0x3e5   : > { %v3225_v2 = vsel %vm2825_vm11, %v2771_v31, -inf  ;;  %v3232_v32 = vsel %vm2825_vm11, %v2772_v59, -inf  ;;  %v3239_v20 = vsel %vm2825_vm11, %v2773_v8, -inf }
 0x3e6   : > { %v3220_v49 = vmax.f32 %v3218_v46, %v3219_v7  ;;  %v3226_v62 = vrot.slane %v3225_v2, 4  ;;  %v3233_v39 = vrot.slane %v3232_v32, 4  ;;  %v3240_v19 = vrot.slane %v3239_v20, 4 }
 0x3e7   : > { %v2664_v36 = vadd.f32 %v2631_v58, %v2131_v60 }
 0x3e8   : > { %v3221_v45 = vrot.slane %v3220_v49, 2  ;;  %v3227_v37 = vmax.f32 %v3225_v2, %v3226_v62  ;;  %v3234_v22 = vmax.f32 %v3232_v32, %v3233_v39  ;;  %v3241_v50 = vmax.f32 %v3239_v20, %v3240_v19 }
 0x3e9   : > { %v2711_v40 = vsel %vm894_vm4, %v2664_v36, -inf }
 0x3ea   : > { %v3222_v55 = vmax.f32 %v3220_v49, %v3221_v45  ;;  %v3228_v54 = vrot.slane %v3227_v37, 2  ;;  %v3235_v5 = vrot.slane %v3234_v22, 2  ;;  %v3242_v0 = vrot.slane %v3241_v50, 2 }
 0x3eb   : > { %v2712_v3 = vmax.f32 %v2710_v43, %v2711_v40 }
 0x3ec   : > { %v3223_v13 = vrot.slane %v3222_v55, 1  ;;  %v3229_v25 = vmax.f32 %v3227_v37, %v3228_v54  ;;  %v3236_v16 = vmax.f32 %v3234_v22, %v3235_v5  ;;  %v3243_v12 = vmax.f32 %v3241_v50, %v3242_v0 }
 0x3ed   : > { %v2774_v30 = vrot.slane %v2712_v3, 2  ;;  %v2775_v35 = vrot.slane %v2712_v3, 4  ;;  %v2776_v61 = vrot.slane %v2712_v3, 6  ;;  %v3246_v27 = vsel %vm2825_vm11, %v2712_v3, -inf }
 0x3ee   : > { %v3230_v14 = vrot.slane %v3229_v25, 1  ;;  %v3237_v21 = vrot.slane %v3236_v16, 1  ;;  %v3244_v10 = vrot.slane %v3243_v12, 1  ;;  %v3247_v6 = vrot.slane %v3246_v27, 4 }
 0x3ef   : > { %v3253_v1 = vsel %vm2825_vm11, %v2774_v30, -inf  ;;  %v3260_v34 = vsel %vm2825_vm11, %v2775_v35, -inf  ;;  %v3267_v9 = vsel %vm2825_vm11, %v2776_v61, -inf  ;;  %v3224_v63 = vmax.f32 %v3222_v55, %v3223_v13 }
 0x3f0   : > { %v3231_v18 = vmax.f32 %v3229_v25, %v3230_v14  ;;  %v3238_v17 = vmax.f32 %v3236_v16, %v3237_v21  ;;  %v3248_v4 = vmax.f32 %v3246_v27, %v3247_v6  ;;  %v3254_v23 = vrot.slane %v3253_v1, 4 }
 0x3f1   : > { %v3261_v38 = vrot.slane %v3260_v34, 4  ;;  %v3268_v42 = vrot.slane %v3267_v9, 4  ;;  %v3245_v56 = vmax.f32 %v3243_v12, %v3244_v10  ;;  %v3334_v53 = vadd.f32 %v5779_v44, %v3224_v63 }
 0x3f2   : > { %v3335_v28 = vadd.f32 %v5779_v44, %v3231_v18  ;;  %v3336_v51 = vadd.f32 %v5779_v44, %v3238_v17  ;;  %v3249_v31 = vrot.slane %v3248_v4, 2  ;;  %v3255_v59 = vmax.f32 %v3253_v1, %v3254_v23 }
 0x3f3   : > { %v3262_v8 = vmax.f32 %v3260_v34, %v3261_v38  ;;  %v3269_v46 = vmax.f32 %v3267_v9, %v3268_v42  ;;  %v3337_v2 = vadd.f32 %v5779_v44, %v3245_v56  ;;  %v3398_v19 = vmax.f32 %v3334_v53, 0.0 }
 0x3f4   : > { %v3399_v29 = vmax.f32 %v3335_v28, 0.0  ;;  %v3400_v41 = vmax.f32 %v3336_v51, 0.0  ;;  %v3250_v52 = vmax.f32 %v3248_v4, %v3249_v31  ;;  %v3256_v7 = vrot.slane %v3255_v59, 2 }
 0x3f5   : > { %v3263_v58 = vrot.slane %v3262_v8, 2  ;;  %v3270_v60 = vrot.slane %v3269_v46, 2  ;;  %v3401_v50 = vmax.f32 %v3337_v2, 0.0  ;;  %v4712_v34 = vmov 1934713408  }
 0x3f6   : > { %v3575_v32 = vrot.slane %v3399_v29, 7  ;;  %v3251_v20 = vrot.slane %v3250_v52, 1  ;;  %v3257_v49 = vmax.f32 %v3255_v59, %v3256_v7  ;;  %v3577_v36 = vrot.slane %v3400_v41, 6 }
 0x3f7   : > { %v3264_v62 = vmax.f32 %v3262_v8, %v3263_v58  ;;  %v3271_v39 = vmax.f32 %v3269_v46, %v3270_v60  ;;  %v3579_v12 = vrot.slane %v3401_v50, 5  ;;  %v3651_v9 = vunpack.c.l.s4 %v4712_v34 }
 0x3f8   : > { %v3252_v45 = vmax.f32 %v3250_v52, %v3251_v20  ;;  %v3258_v37 = vrot.slane %v3257_v49, 1  ;;  %v3576_v43 = vsel %vm3471_vm12, %v3575_v32, %v3398_v19  ;;  %v3633_v17 = vperm.slane %v5918_v48, %v5728_v26 }
 0x3f9   : > { %v3265_v22 = vrot.slane %v3264_v62, 1  ;;  %v3272_v40 = vrot.slane %v3271_v39, 1  ;;  %v3578_v3 = vsel %vm3474_vm13, %v3577_v36, %v3576_v43  ;;  %v3636_v4 = vrot.slane %v5883_v11, 4 }
 0x3fa   : > { %v3259_v55 = vmax.f32 %v3257_v49, %v3258_v37  ;;  %v3338_v5 = vadd.f32 %v5779_v44, %v3252_v45  ;;  %v3580_v21 = vsel %vm3477_vm14, %v3579_v12, %v3578_v3  ;;  %v3629_v38 = vperm.slane %v5925_v33, %v5728_v26 }
 0x3fb   : > { %v3266_v54 = vmax.f32 %v3264_v62, %v3265_v22  ;;  %v3273_v0 = vmax.f32 %v3271_v39, %v3272_v40  ;;  %v3652_v56 = vunpack.c.0.s8 %v3651_v9  ;;  %v3684_v31 = vrot.slane %v3633_v17, 4 }
 0x3fc   : > { %v3339_v13 = vadd.f32 %v5779_v44, %v3259_v55  ;;  %v3402_v16 = vmax.f32 %v3338_v5, 0.0  ;;  %v3672_v29 = vrot.slane %v3629_v38, 4 }
 0x3fd   : > { %v3340_v25 = vadd.f32 %v5779_v44, %v3266_v54  ;;  %v3341_v30 = vadd.f32 %v5779_v44, %v3273_v0  ;;  %v3665_v59 = vperm.slane %v5800_v24, %v3652_v56  ;;  %v3657_v8 = vperm.slane %v5816_v47, %v3652_v56 }
 0x3fe   : > { %v3403_v35 = vmax.f32 %v3339_v13, 0.0  ;;  %v3581_v27 = vrot.slane %v3402_v16, 4  ;;  %v3653_v7 = vperm.slane %v5838_v15, %v3652_v56  ;;  %v3669_v62 = vperm.slane %v5810_v57, %v3652_v56 }
 0x3ff   : > { %v3404_v61 = vmax.f32 %v3340_v25, 0.0  ;;  %v3405_v14 = vmax.f32 %v3341_v30, 0.0  ;;  %v3704_v24 = vrot.slane %v3665_v59, 4  ;;  %v3700_v32 = vrot.slane %v3657_v8, 4 }
 0x400   : > { %v3583_v10 = vrot.slane %v3403_v35, 3  ;;  %v3582_v1 = vsel %vm3480_vm15, %v3581_v27, %v3580_v21  ;;  %v3696_v49 = vrot.slane %v3653_v7, 4  ;;  %v3708_v19 = vrot.slane %v3669_v62, 4 }
 0x401   : > { %v3585_v6 = vrot.slane %v3404_v61, 2  ;;  %v3587_v18 = vrot.slane %v3405_v14, 1 }
 0x402   : > { %v3584_v63 = vsel %vm3483_vm0, %v3583_v10, %v3582_v1 }
 0x403   : > { %v3586_v44 = vsel %vm3486_vm1, %v3585_v6, %v3584_v63 }
 0x404   : > { %v3588_v23 = vsel %vm3489_vm2, %v3587_v18, %v3586_v44 }
 0x405   : > { %v3637_v42 = vsel %vm3598_vm3, %v3588_v23, %v3636_v4  ;;  %v3634_v28 = vrot.slane %v3588_v23, 4 }
 0x406   : > { %v3645_v51 = vperm.slane %v3637_v42, %v5728_v26 }
 0x407   : > { %v3635_v48 = vsel %vm3598_vm3, %v3634_v28, %v5883_v11 }
 0x408   : > { %v3682_v46 = vrot.slane %v3645_v51, 4  ;;  %v3641_v53 = vperm.slane %v3635_v48, %v5728_v26  ;;  %v3685_v33 = vsel %vm3598_vm3, %v3645_v51, %v3684_v31 }
 0x409   : > { %v3693_v39 = vperm.slane %v3685_v33, %v3652_v56 }
 0x40a   : > { %v3683_v41 = vsel %vm3598_vm3, %v3682_v46, %v3633_v17  ;;  %v3673_v52 = vsel %vm3598_vm3, %v3641_v53, %v3672_v29  ;;  %v3670_v58 = vrot.slane %v3641_v53, 4 }
 0x40b   : > { %v3689_v60 = vperm.slane %v3683_v41, %v3652_v56  ;;  %v3681_v2 = vperm.slane %v3673_v52, %v3652_v56  ;;  %v3709_v36 = vsel %vm3598_vm3, %v3693_v39, %v3708_v19  ;;  %v3706_v13 = vrot.slane %v3693_v39, 4 }
 0x40c   : > { %v3671_v47 = vsel %vm3598_vm3, %v3670_v58, %v3629_v38 }
 0x40d   : > { %v3705_v11 = vsel %vm3598_vm3, %v3689_v60, %v3704_v24  ;;  %v3701_v26 = vsel %vm3598_vm3, %v3681_v2, %v3700_v32  ;;  %v3677_v20 = vperm.slane %v3671_v47, %v3652_v56  ;;  %v3698_v45 = vrot.slane %v3681_v2, 4 }
 0x40e   : > { %3719 = vrot.lane.b32.xlu0 %v3705_v11, %s4709_s30  ;;  %3715 = vrot.lane.b32.xlu2 %v3701_v26, %s4709_s30  ;;  %v3702_v43 = vrot.slane %v3689_v60, 4  ;;  %v3707_v25 = vsel %vm3598_vm3, %v3706_v13, %v3669_v62 }
 0x40f   : > { %v3697_v15 = vsel %vm3598_vm3, %v3677_v20, %v3696_v49  ;;  %v3699_v22 = vsel %vm3598_vm3, %v3698_v45, %v3657_v8  ;;  %v3694_v57 = vrot.slane %v3677_v20, 4 }
 0x410   : > { %3711 = vrot.lane.b32.xlu1 %v3697_v15, %s4709_s30  ;;  %v3703_v55 = vsel %vm3598_vm3, %v3702_v43, %v3665_v59 }
 0x411   : > { %v3695_v0 = vsel %vm3598_vm3, %v3694_v57, %v3653_v7 }
 0x418   : > { %3723 = vrot.lane.b32.xlu1 %v3709_v36, %s4709_s30 }
 0x468   : > { %v3716_v37 = vpop.permute.xlu2 %3715 }
 0x469   : > { %v3727_v50 = vsel %vm894_vm4, %v3699_v22, %v3716_v37 }
 0x46a   : > { %3731 = vst [vmem:[%s224_s21 + $0x8] sm:$0xff] %v3727_v50 }
 0x480   : > { %v3720_v40 = vpop.permute.xlu0 %3719 }
 0x481   : > { %v3728_v54 = vsel %vm894_vm4, %v3703_v55, %v3720_v40 }
 0x482   : > { %3732 = vst [vmem:[%s224_s21 + $0x10] sm:$0xff] %v3728_v54  ;;  %v3712_v5 = vpop.permute.xlu1 %3711 }
 0x483   : > { %v3726_v3 = vsel %vm894_vm4, %v3695_v0, %v3712_v5 }
 0x484   : > { %3730 = vst [vmem:[%s224_s21] sm:$0xff] %v3726_v3 }
 0x48a   : > { %v3724_v16 = vpop.permute.xlu1 %3723 }
 0x48b   : > { %v3729_v12 = vsel %vm894_vm4, %v3707_v25, %v3724_v16 }
 0x48c   : > { %3733 = vst [vmem:[%s224_s21 + $0x18] sm:$0xff] %v3729_v12 }
 0x48d PF: > { %s15_s18 = sadd.s32 1, %s4707_s18  }
 0x48e   : > { %p12_p4 = scmp.ge.s32.totalorder %s15_s18, 4  }
 0x490   :  { %14 = sbr.rel (!%p12_p4) target bundleno = 1 (0x1), region = 75 }

</bundles_post_ra>
